<compile_context>
chip_gen: v6e
topology: v6e:2x2x1
jax: 0.10.0
libtpu: 0.0.40
codegen_flags: <defaults>
</compile_context>

<pallas_src>
import functools

import jax
import jax.numpy as jnp
from jax import lax
from jax.experimental import pallas as pl
from jax.experimental.pallas import tpu as pltpu


# ----------------------------------------------------------------------------
# Fused Pallas kernel: num_layers LSTM layers + FC head, all in VMEM.
# ----------------------------------------------------------------------------
def fused_lstm_kernel(*refs, T, B, H, num_layers):
    # refs = [x, (wih, whh, b) * num_layers, fc_w, fc_b, out, act_scr]
    x_ref = refs[0]
    fc_w_ref = refs[1 + 3 * num_layers]
    fc_b_ref = refs[2 + 3 * num_layers]
    out_ref = refs[3 + 3 * num_layers]
    act_scr = refs[4 + 3 * num_layers]          # (T*B, H) inter-layer activations

    layer_in = x_ref[...]                        # (T*B, I) for layer 0
    h = None
    for l in range(num_layers):
        wih = refs[1 + 3 * l][...]               # (in_sz, 4H)
        whh = refs[2 + 3 * l][...]               # (H, 4H)
        b = refs[3 + 3 * l][...]                 # (1, 4H)

        # Hoisted input projection: all T timesteps in one MXU matmul.
        x_proj = (
            jnp.dot(layer_in, wih, preferred_element_type=jnp.float32) + b
        )                                        # (T*B, 4H), gate order i,f,g,o

        h = jnp.zeros((B, H), jnp.float32)
        c = jnp.zeros((B, H), jnp.float32)
        last_layer = l == num_layers - 1

        for t in range(T):                       # static unrolled recurrence
            gates = x_proj[t * B:(t + 1) * B, :] + jnp.dot(
                h, whh, preferred_element_type=jnp.float32
            )                                    # (B, 4H)
            # i|f share the first 128-lane vreg -> one sigmoid over both.
            sig_if = jax.nn.sigmoid(gates[:, : 2 * H])
            i_g = sig_if[:, :H]
            f_g = sig_if[:, H:]
            g_g = jnp.tanh(gates[:, 2 * H:3 * H])
            o_g = jax.nn.sigmoid(gates[:, 3 * H:])

            c = f_g * c + i_g * g_g
            h = o_g * jnp.tanh(c)

            if not last_layer:                   # only needed to feed next layer
                act_scr[t * B:(t + 1) * B, :] = h

        if not last_layer:
            layer_in = act_scr[...]              # (T*B, H)

    # FC on the final hidden state of the last layer (== out[:, -1, :] @ W^T + b).
    out_ref[...] = (
        jnp.dot(h, fc_w_ref[...], preferred_element_type=jnp.float32)
        + fc_b_ref[...]
    )


# ----------------------------------------------------------------------------
# Wrapper
# ----------------------------------------------------------------------------
@functools.partial(jax.jit, static_argnames=("hidden_size", "num_layers"))
def lstm_forward(x_bti, params, hidden_size, num_layers):
    """Forward of the PyTorch LSTM module: num_layers-layer LSTM -> last timestep -> fc.

    x_bti: (B, T, input_size), batch_first like PyTorch.
    """
    # TODO(synk): inter-layer dropout is training-only in nn.LSTM; skipped (eval forward).
    B, T, I = x_bti.shape
    H = hidden_size

    # (B, T, I) -> (T, B, I) -> (T*B, I); row index = t*B + b.
    x2d = jnp.transpose(x_bti, (1, 0, 2)).reshape(T * B, I)

    flat_args = [x2d]
    in_specs = [pl.BlockSpec((T * B, I), lambda: (0, 0))]
    for l in range(num_layers):
        wih_t, whh_t, b_row = params["layers"][l]
        in_sz = I if l == 0 else H
        flat_args += [wih_t, whh_t, b_row]
        in_specs += [
            pl.BlockSpec((in_sz, 4 * H), lambda: (0, 0)),
            pl.BlockSpec((H, 4 * H), lambda: (0, 0)),
            pl.BlockSpec((1, 4 * H), lambda: (0, 0)),
        ]

    fc_w_t = params["fc_w_t"]                    # (H, O)
    fc_b_row = params["fc_b_row"]                # (1, O)
    O = fc_w_t.shape[1]
    flat_args += [fc_w_t, fc_b_row]
    in_specs += [
        pl.BlockSpec((H, O), lambda: (0, 0)),
        pl.BlockSpec((1, O), lambda: (0, 0)),
    ]

    kernel = functools.partial(
        fused_lstm_kernel, T=T, B=B, H=H, num_layers=num_layers
    )
    return pl.pallas_call(
        kernel,
        out_shape=jax.ShapeDtypeStruct((B, O), jnp.float32),
        grid=(),
        in_specs=in_specs,
        out_specs=pl.BlockSpec((B, O), lambda: (0, 0)),
        scratch_shapes=[pltpu.VMEM((T * B, H), jnp.float32)],
    )(*flat_args)


# ----------------------------------------------------------------------------
# Deterministic parameter init (PyTorch-style uniform(-1/sqrt(H), 1/sqrt(H)))
# ----------------------------------------------------------------------------
def init_params(key, input_size, hidden_size, num_layers):
    H = hidden_size
    bound = 1.0 / jnp.sqrt(jnp.float32(H))
    layers = []
    for l in range(num_layers):
        in_sz = input_size if l == 0 else H
        key, k1, k2, k3, k4 = jax.random.split(key, 5)
        w_ih = jax.random.uniform(k1, (4 * H, in_sz), jnp.float32, -bound, bound)
        w_hh = jax.random.uniform(k2, (4 * H, H), jnp.float32, -bound, bound)
        b_ih = jax.random.uniform(k3, (4 * H,), jnp.float32, -bound, bound)
        b_hh = jax.random.uniform(k4, (4 * H,), jnp.float32, -bound, bound)
        layers.append((w_ih.T, w_hh.T, (b_ih + b_hh).reshape(1, 4 * H)))
    key, k5, k6 = jax.random.split(key, 3)
    fc_w = jax.random.uniform(k5, (1, H), jnp.float32, -bound, bound)
    fc_b = jax.random.uniform(k6, (1,), jnp.float32, -bound, bound)
    return {"layers": layers, "fc_w_t": fc_w.T, "fc_b_row": fc_b.reshape(1, 1)}


# ----------------------------------------------------------------------------
# Pure-JAX reference (correctness check)
# ----------------------------------------------------------------------------
def lstm_forward_ref(x_bti, params, hidden_size, num_layers):
    x = jnp.transpose(x_bti, (1, 0, 2))          # (T, B, I)
    H = hidden_size
    for l in range(num_layers):
        wih_t, whh_t, b_row = params["layers"][l]
        B = x.shape[1]
        h0 = jnp.zeros((B, H), jnp.float32)
        c0 = jnp.zeros((B, H), jnp.float32)

        def step(carry, x_t):
            h, c = carry
            gates = x_t @ wih_t + h @ whh_t + b_row
            i = jax.nn.sigmoid(gates[:, 0 * H:1 * H])
            f = jax.nn.sigmoid(gates[:, 1 * H:2 * H])
            g = jnp.tanh(gates[:, 2 * H:3 * H])
            o = jax.nn.sigmoid(gates[:, 3 * H:4 * H])
            c_new = f * c + i * g
            h_new = o * jnp.tanh(c_new)
            return (h_new, c_new), h_new

        (_, _), hs = lax.scan(step, (h0, c0), x)
        x = hs
    h_last = x[-1]
    return h_last @ params["fc_w_t"] + params["fc_b_row"]


# ----------------------------------------------------------------------------
if __name__ == "__main__":
    INPUT_SIZE = 6
    HIDDEN_SIZE = 64
    NUM_LAYERS = 3
    B, T = 2, 8

    key = jax.random.PRNGKey(0)
    key, kx, kp = jax.random.split(key, 3)
    x = jax.random.normal(kx, (B, T, INPUT_SIZE), jnp.float32)
    params = init_params(kp, INPUT_SIZE, HIDDEN_SIZE, NUM_LAYERS)

    out = lstm_forward(x, params, HIDDEN_SIZE, NUM_LAYERS)
    out = jax.block_until_ready(out)

    ref = lstm_forward_ref(x, params, HIDDEN_SIZE, NUM_LAYERS)
    assert out.shape == (B, 1), out.shape
    assert jnp.allclose(out, ref, atol=1e-4, rtol=1e-4), (out, ref)

    print("KERNEL_OK")
</pallas_src>

<mosaic_0001>
module attributes {stable_mosaic.version = 11 : i64} {
  func.func @fused_lstm_kernel(%arg0: memref<16x6xf32, #tpu.memory_space<vmem>>, %arg1: memref<6x256xf32, #tpu.memory_space<vmem>>, %arg2: memref<64x256xf32, #tpu.memory_space<vmem>>, %arg3: memref<1x256xf32, #tpu.memory_space<vmem>>, %arg4: memref<64x256xf32, #tpu.memory_space<vmem>>, %arg5: memref<64x256xf32, #tpu.memory_space<vmem>>, %arg6: memref<1x256xf32, #tpu.memory_space<vmem>>, %arg7: memref<64x256xf32, #tpu.memory_space<vmem>>, %arg8: memref<64x256xf32, #tpu.memory_space<vmem>>, %arg9: memref<1x256xf32, #tpu.memory_space<vmem>>, %arg10: memref<64x1xf32, #tpu.memory_space<vmem>>, %arg11: memref<1x1xf32, #tpu.memory_space<vmem>>, %arg12: memref<2x1xf32, #tpu.memory_space<vmem>>, %arg13: memref<16x64xf32, #tpu.memory_space<vmem>>) attributes {dimension_semantics = [], scalar_prefetch = 0 : i64, scratch_operands = 1 : i64, tpu.core_type = #tpu.core_type<tc>} {
    %c0 = arith.constant 0 : index
    %c0_0 = arith.constant 0 : index
    %0 = vector.load %arg0[%c0, %c0_0] : memref<16x6xf32, #tpu.memory_space<vmem>>, vector<16x6xf32>
    %c0_1 = arith.constant 0 : index
    %c0_2 = arith.constant 0 : index
    %1 = vector.load %arg1[%c0_1, %c0_2] : memref<6x256xf32, #tpu.memory_space<vmem>>, vector<6x256xf32>
    %c0_3 = arith.constant 0 : index
    %c0_4 = arith.constant 0 : index
    %2 = vector.load %arg2[%c0_3, %c0_4] : memref<64x256xf32, #tpu.memory_space<vmem>>, vector<64x256xf32>
    %c0_5 = arith.constant 0 : index
    %c0_6 = arith.constant 0 : index
    %3 = vector.load %arg3[%c0_5, %c0_6] : memref<1x256xf32, #tpu.memory_space<vmem>>, vector<1x256xf32>
    %cst = arith.constant dense<0.000000e+00> : vector<16x256xf32>
    %4 = tpu.matmul %0, %1, %cst {dimension_numbers = #tpu.dot_dimension_numbers<[1], [0], [0], [1], [0, 0, 1, 1], [], []>} : vector<16x6xf32>, vector<6x256xf32>, vector<16x256xf32> -> vector<16x256xf32>
    %5 = vector.broadcast %3 : vector<1x256xf32> to vector<16x256xf32>
    %6 = arith.addf %4, %5 : vector<16x256xf32>
    %cst_7 = arith.constant 0.000000e+00 : f32
    %7 = vector.broadcast %cst_7 : f32 to vector<2x64xf32>
    %cst_8 = arith.constant 0.000000e+00 : f32
    %8 = vector.broadcast %cst_8 : f32 to vector<2x64xf32>
    %9 = vector.extract_strided_slice %6 {offsets = [0, 0], sizes = [2, 256], strides = [1, 1]} : vector<16x256xf32> to vector<2x256xf32>
    %cst_9 = arith.constant dense<0.000000e+00> : vector<2x256xf32>
    %10 = tpu.matmul %7, %2, %cst_9 {dimension_numbers = #tpu.dot_dimension_numbers<[1], [0], [0], [1], [0, 0, 1, 1], [], []>} : vector<2x64xf32>, vector<64x256xf32>, vector<2x256xf32> -> vector<2x256xf32>
    %11 = arith.addf %9, %10 : vector<2x256xf32>
    %12 = vector.extract_strided_slice %11 {offsets = [0, 0], sizes = [2, 128], strides = [1, 1]} : vector<2x256xf32> to vector<2x128xf32>
    %13 = arith.negf %12 : vector<2x128xf32>
    %14 = math.exp %13 : vector<2x128xf32>
    %cst_10 = arith.constant 1.000000e+00 : f32
    %15 = vector.broadcast %cst_10 : f32 to vector<2x128xf32>
    %16 = arith.addf %15, %14 : vector<2x128xf32>
    %17 = arith.divf %15, %16 : vector<2x128xf32>
    %18 = vector.extract_strided_slice %17 {offsets = [0, 0], sizes = [2, 64], strides = [1, 1]} : vector<2x128xf32> to vector<2x64xf32>
    %19 = vector.extract_strided_slice %17 {offsets = [0, 64], sizes = [2, 64], strides = [1, 1]} : vector<2x128xf32> to vector<2x64xf32>
    %20 = vector.extract_strided_slice %11 {offsets = [0, 128], sizes = [2, 64], strides = [1, 1]} : vector<2x256xf32> to vector<2x64xf32>
    %21 = math.tanh %20 : vector<2x64xf32>
    %22 = vector.extract_strided_slice %11 {offsets = [0, 192], sizes = [2, 64], strides = [1, 1]} : vector<2x256xf32> to vector<2x64xf32>
    %23 = arith.negf %22 : vector<2x64xf32>
    %24 = math.exp %23 : vector<2x64xf32>
    %cst_11 = arith.constant 1.000000e+00 : f32
    %25 = vector.broadcast %cst_11 : f32 to vector<2x64xf32>
    %26 = arith.addf %25, %24 : vector<2x64xf32>
    %27 = arith.divf %25, %26 : vector<2x64xf32>
    %28 = arith.mulf %19, %8 : vector<2x64xf32>
    %29 = arith.mulf %18, %21 : vector<2x64xf32>
    %30 = arith.addf %28, %29 : vector<2x64xf32>
    %31 = math.tanh %30 : vector<2x64xf32>
    %32 = arith.mulf %27, %31 : vector<2x64xf32>
    %c0_12 = arith.constant 0 : index
    %c0_13 = arith.constant 0 : index
    %33 = vector.load %arg13[%c0_12, %c0_13] : memref<16x64xf32, #tpu.memory_space<vmem>>, vector<2x64xf32>
    tpu.vector_store %arg13[%c0_12, %c0_13], %32 {strides = array<i32>} : memref<16x64xf32, #tpu.memory_space<vmem>>, vector<2x64xf32>,
    %34 = vector.extract_strided_slice %6 {offsets = [2, 0], sizes = [2, 256], strides = [1, 1]} : vector<16x256xf32> to vector<2x256xf32>
    %cst_14 = arith.constant dense<0.000000e+00> : vector<2x256xf32>
    %35 = tpu.matmul %32, %2, %cst_14 {dimension_numbers = #tpu.dot_dimension_numbers<[1], [0], [0], [1], [0, 0, 1, 1], [], []>} : vector<2x64xf32>, vector<64x256xf32>, vector<2x256xf32> -> vector<2x256xf32>
    %36 = arith.addf %34, %35 : vector<2x256xf32>
    %37 = vector.extract_strided_slice %36 {offsets = [0, 0], sizes = [2, 128], strides = [1, 1]} : vector<2x256xf32> to vector<2x128xf32>
    %38 = arith.negf %37 : vector<2x128xf32>
    %39 = math.exp %38 : vector<2x128xf32>
    %cst_15 = arith.constant 1.000000e+00 : f32
    %40 = vector.broadcast %cst_15 : f32 to vector<2x128xf32>
    %41 = arith.addf %40, %39 : vector<2x128xf32>
    %42 = arith.divf %40, %41 : vector<2x128xf32>
    %43 = vector.extract_strided_slice %42 {offsets = [0, 0], sizes = [2, 64], strides = [1, 1]} : vector<2x128xf32> to vector<2x64xf32>
    %44 = vector.extract_strided_slice %42 {offsets = [0, 64], sizes = [2, 64], strides = [1, 1]} : vector<2x128xf32> to vector<2x64xf32>
    %45 = vector.extract_strided_slice %36 {offsets = [0, 128], sizes = [2, 64], strides = [1, 1]} : vector<2x256xf32> to vector<2x64xf32>
    %46 = math.tanh %45 : vector<2x64xf32>
    %47 = vector.extract_strided_slice %36 {offsets = [0, 192], sizes = [2, 64], strides = [1, 1]} : vector<2x256xf32> to vector<2x64xf32>
    %48 = arith.negf %47 : vector<2x64xf32>
    %49 = math.exp %48 : vector<2x64xf32>
    %cst_16 = arith.constant 1.000000e+00 : f32
    %50 = vector.broadcast %cst_16 : f32 to vector<2x64xf32>
    %51 = arith.addf %50, %49 : vector<2x64xf32>
    %52 = arith.divf %50, %51 : vector<2x64xf32>
    %53 = arith.mulf %44, %30 : vector<2x64xf32>
    %54 = arith.mulf %43, %46 : vector<2x64xf32>
    %55 = arith.addf %53, %54 : vector<2x64xf32>
    %56 = math.tanh %55 : vector<2x64xf32>
    %57 = arith.mulf %52, %56 : vector<2x64xf32>
    %c2 = arith.constant 2 : index
    %c0_17 = arith.constant 0 : index
    %58 = vector.load %arg13[%c2, %c0_17] : memref<16x64xf32, #tpu.memory_space<vmem>>, vector<2x64xf32>
    tpu.vector_store %arg13[%c2, %c0_17], %57 {strides = array<i32>} : memref<16x64xf32, #tpu.memory_space<vmem>>, vector<2x64xf32>,
    %59 = vector.extract_strided_slice %6 {offsets = [4, 0], sizes = [2, 256], strides = [1, 1]} : vector<16x256xf32> to vector<2x256xf32>
    %cst_18 = arith.constant dense<0.000000e+00> : vector<2x256xf32>
    %60 = tpu.matmul %57, %2, %cst_18 {dimension_numbers = #tpu.dot_dimension_numbers<[1], [0], [0], [1], [0, 0, 1, 1], [], []>} : vector<2x64xf32>, vector<64x256xf32>, vector<2x256xf32> -> vector<2x256xf32>
    %61 = arith.addf %59, %60 : vector<2x256xf32>
    %62 = vector.extract_strided_slice %61 {offsets = [0, 0], sizes = [2, 128], strides = [1, 1]} : vector<2x256xf32> to vector<2x128xf32>
    %63 = arith.negf %62 : vector<2x128xf32>
    %64 = math.exp %63 : vector<2x128xf32>
    %cst_19 = arith.constant 1.000000e+00 : f32
    %65 = vector.broadcast %cst_19 : f32 to vector<2x128xf32>
    %66 = arith.addf %65, %64 : vector<2x128xf32>
    %67 = arith.divf %65, %66 : vector<2x128xf32>
    %68 = vector.extract_strided_slice %67 {offsets = [0, 0], sizes = [2, 64], strides = [1, 1]} : vector<2x128xf32> to vector<2x64xf32>
    %69 = vector.extract_strided_slice %67 {offsets = [0, 64], sizes = [2, 64], strides = [1, 1]} : vector<2x128xf32> to vector<2x64xf32>
    %70 = vector.extract_strided_slice %61 {offsets = [0, 128], sizes = [2, 64], strides = [1, 1]} : vector<2x256xf32> to vector<2x64xf32>
    %71 = math.tanh %70 : vector<2x64xf32>
    %72 = vector.extract_strided_slice %61 {offsets = [0, 192], sizes = [2, 64], strides = [1, 1]} : vector<2x256xf32> to vector<2x64xf32>
    %73 = arith.negf %72 : vector<2x64xf32>
    %74 = math.exp %73 : vector<2x64xf32>
    %cst_20 = arith.constant 1.000000e+00 : f32
    %75 = vector.broadcast %cst_20 : f32 to vector<2x64xf32>
    %76 = arith.addf %75, %74 : vector<2x64xf32>
    %77 = arith.divf %75, %76 : vector<2x64xf32>
    %78 = arith.mulf %69, %55 : vector<2x64xf32>
    %79 = arith.mulf %68, %71 : vector<2x64xf32>
    %80 = arith.addf %78, %79 : vector<2x64xf32>
    %81 = math.tanh %80 : vector<2x64xf32>
    %82 = arith.mulf %77, %81 : vector<2x64xf32>
    %c4 = arith.constant 4 : index
    %c0_21 = arith.constant 0 : index
    %83 = vector.load %arg13[%c4, %c0_21] : memref<16x64xf32, #tpu.memory_space<vmem>>, vector<2x64xf32>
    tpu.vector_store %arg13[%c4, %c0_21], %82 {strides = array<i32>} : memref<16x64xf32, #tpu.memory_space<vmem>>, vector<2x64xf32>,
    %84 = vector.extract_strided_slice %6 {offsets = [6, 0], sizes = [2, 256], strides = [1, 1]} : vector<16x256xf32> to vector<2x256xf32>
    %cst_22 = arith.constant dense<0.000000e+00> : vector<2x256xf32>
    %85 = tpu.matmul %82, %2, %cst_22 {dimension_numbers = #tpu.dot_dimension_numbers<[1], [0], [0], [1], [0, 0, 1, 1], [], []>} : vector<2x64xf32>, vector<64x256xf32>, vector<2x256xf32> -> vector<2x256xf32>
    %86 = arith.addf %84, %85 : vector<2x256xf32>
    %87 = vector.extract_strided_slice %86 {offsets = [0, 0], sizes = [2, 128], strides = [1, 1]} : vector<2x256xf32> to vector<2x128xf32>
    %88 = arith.negf %87 : vector<2x128xf32>
    %89 = math.exp %88 : vector<2x128xf32>
    %cst_23 = arith.constant 1.000000e+00 : f32
    %90 = vector.broadcast %cst_23 : f32 to vector<2x128xf32>
    %91 = arith.addf %90, %89 : vector<2x128xf32>
    %92 = arith.divf %90, %91 : vector<2x128xf32>
    %93 = vector.extract_strided_slice %92 {offsets = [0, 0], sizes = [2, 64], strides = [1, 1]} : vector<2x128xf32> to vector<2x64xf32>
    %94 = vector.extract_strided_slice %92 {offsets = [0, 64], sizes = [2, 64], strides = [1, 1]} : vector<2x128xf32> to vector<2x64xf32>
    %95 = vector.extract_strided_slice %86 {offsets = [0, 128], sizes = [2, 64], strides = [1, 1]} : vector<2x256xf32> to vector<2x64xf32>
    %96 = math.tanh %95 : vector<2x64xf32>
    %97 = vector.extract_strided_slice %86 {offsets = [0, 192], sizes = [2, 64], strides = [1, 1]} : vector<2x256xf32> to vector<2x64xf32>
    %98 = arith.negf %97 : vector<2x64xf32>
    %99 = math.exp %98 : vector<2x64xf32>
    %cst_24 = arith.constant 1.000000e+00 : f32
    %100 = vector.broadcast %cst_24 : f32 to vector<2x64xf32>
    %101 = arith.addf %100, %99 : vector<2x64xf32>
    %102 = arith.divf %100, %101 : vector<2x64xf32>
    %103 = arith.mulf %94, %80 : vector<2x64xf32>
    %104 = arith.mulf %93, %96 : vector<2x64xf32>
    %105 = arith.addf %103, %104 : vector<2x64xf32>
    %106 = math.tanh %105 : vector<2x64xf32>
    %107 = arith.mulf %102, %106 : vector<2x64xf32>
    %c6 = arith.constant 6 : index
    %c0_25 = arith.constant 0 : index
    %108 = vector.load %arg13[%c6, %c0_25] : memref<16x64xf32, #tpu.memory_space<vmem>>, vector<2x64xf32>
    tpu.vector_store %arg13[%c6, %c0_25], %107 {strides = array<i32>} : memref<16x64xf32, #tpu.memory_space<vmem>>, vector<2x64xf32>,
    %109 = vector.extract_strided_slice %6 {offsets = [8, 0], sizes = [2, 256], strides = [1, 1]} : vector<16x256xf32> to vector<2x256xf32>
    %cst_26 = arith.constant dense<0.000000e+00> : vector<2x256xf32>
    %110 = tpu.matmul %107, %2, %cst_26 {dimension_numbers = #tpu.dot_dimension_numbers<[1], [0], [0], [1], [0, 0, 1, 1], [], []>} : vector<2x64xf32>, vector<64x256xf32>, vector<2x256xf32> -> vector<2x256xf32>
    %111 = arith.addf %109, %110 : vector<2x256xf32>
    %112 = vector.extract_strided_slice %111 {offsets = [0, 0], sizes = [2, 128], strides = [1, 1]} : vector<2x256xf32> to vector<2x128xf32>
    %113 = arith.negf %112 : vector<2x128xf32>
    %114 = math.exp %113 : vector<2x128xf32>
    %cst_27 = arith.constant 1.000000e+00 : f32
    %115 = vector.broadcast %cst_27 : f32 to vector<2x128xf32>
    %116 = arith.addf %115, %114 : vector<2x128xf32>
    %117 = arith.divf %115, %116 : vector<2x128xf32>
    %118 = vector.extract_strided_slice %117 {offsets = [0, 0], sizes = [2, 64], strides = [1, 1]} : vector<2x128xf32> to vector<2x64xf32>
    %119 = vector.extract_strided_slice %117 {offsets = [0, 64], sizes = [2, 64], strides = [1, 1]} : vector<2x128xf32> to vector<2x64xf32>
    %120 = vector.extract_strided_slice %111 {offsets = [0, 128], sizes = [2, 64], strides = [1, 1]} : vector<2x256xf32> to vector<2x64xf32>
    %121 = math.tanh %120 : vector<2x64xf32>
    %122 = vector.extract_strided_slice %111 {offsets = [0, 192], sizes = [2, 64], strides = [1, 1]} : vector<2x256xf32> to vector<2x64xf32>
    %123 = arith.negf %122 : vector<2x64xf32>
    %124 = math.exp %123 : vector<2x64xf32>
    %cst_28 = arith.constant 1.000000e+00 : f32
    %125 = vector.broadcast %cst_28 : f32 to vector<2x64xf32>
    %126 = arith.addf %125, %124 : vector<2x64xf32>
    %127 = arith.divf %125, %126 : vector<2x64xf32>
    %128 = arith.mulf %119, %105 : vector<2x64xf32>
    %129 = arith.mulf %118, %121 : vector<2x64xf32>
    %130 = arith.addf %128, %129 : vector<2x64xf32>
    %131 = math.tanh %130 : vector<2x64xf32>
    %132 = arith.mulf %127, %131 : vector<2x64xf32>
    %c8 = arith.constant 8 : index
    %c0_29 = arith.constant 0 : index
    %133 = vector.load %arg13[%c8, %c0_29] : memref<16x64xf32, #tpu.memory_space<vmem>>, vector<2x64xf32>
    tpu.vector_store %arg13[%c8, %c0_29], %132 {strides = array<i32>} : memref<16x64xf32, #tpu.memory_space<vmem>>, vector<2x64xf32>,
    %134 = vector.extract_strided_slice %6 {offsets = [10, 0], sizes = [2, 256], strides = [1, 1]} : vector<16x256xf32> to vector<2x256xf32>
    %cst_30 = arith.constant dense<0.000000e+00> : vector<2x256xf32>
    %135 = tpu.matmul %132, %2, %cst_30 {dimension_numbers = #tpu.dot_dimension_numbers<[1], [0], [0], [1], [0, 0, 1, 1], [], []>} : vector<2x64xf32>, vector<64x256xf32>, vector<2x256xf32> -> vector<2x256xf32>
    %136 = arith.addf %134, %135 : vector<2x256xf32>
    %137 = vector.extract_strided_slice %136 {offsets = [0, 0], sizes = [2, 128], strides = [1, 1]} : vector<2x256xf32> to vector<2x128xf32>
    %138 = arith.negf %137 : vector<2x128xf32>
    %139 = math.exp %138 : vector<2x128xf32>
    %cst_31 = arith.constant 1.000000e+00 : f32
    %140 = vector.broadcast %cst_31 : f32 to vector<2x128xf32>
    %141 = arith.addf %140, %139 : vector<2x128xf32>
    %142 = arith.divf %140, %141 : vector<2x128xf32>
    %143 = vector.extract_strided_slice %142 {offsets = [0, 0], sizes = [2, 64], strides = [1, 1]} : vector<2x128xf32> to vector<2x64xf32>
    %144 = vector.extract_strided_slice %142 {offsets = [0, 64], sizes = [2, 64], strides = [1, 1]} : vector<2x128xf32> to vector<2x64xf32>
    %145 = vector.extract_strided_slice %136 {offsets = [0, 128], sizes = [2, 64], strides = [1, 1]} : vector<2x256xf32> to vector<2x64xf32>
    %146 = math.tanh %145 : vector<2x64xf32>
    %147 = vector.extract_strided_slice %136 {offsets = [0, 192], sizes = [2, 64], strides = [1, 1]} : vector<2x256xf32> to vector<2x64xf32>
    %148 = arith.negf %147 : vector<2x64xf32>
    %149 = math.exp %148 : vector<2x64xf32>
    %cst_32 = arith.constant 1.000000e+00 : f32
    %150 = vector.broadcast %cst_32 : f32 to vector<2x64xf32>
    %151 = arith.addf %150, %149 : vector<2x64xf32>
    %152 = arith.divf %150, %151 : vector<2x64xf32>
    %153 = arith.mulf %144, %130 : vector<2x64xf32>
    %154 = arith.mulf %143, %146 : vector<2x64xf32>
    %155 = arith.addf %153, %154 : vector<2x64xf32>
    %156 = math.tanh %155 : vector<2x64xf32>
    %157 = arith.mulf %152, %156 : vector<2x64xf32>
    %c10 = arith.constant 10 : index
    %c0_33 = arith.constant 0 : index
    %158 = vector.load %arg13[%c10, %c0_33] : memref<16x64xf32, #tpu.memory_space<vmem>>, vector<2x64xf32>
    tpu.vector_store %arg13[%c10, %c0_33], %157 {strides = array<i32>} : memref<16x64xf32, #tpu.memory_space<vmem>>, vector<2x64xf32>,
    %159 = vector.extract_strided_slice %6 {offsets = [12, 0], sizes = [2, 256], strides = [1, 1]} : vector<16x256xf32> to vector<2x256xf32>
    %cst_34 = arith.constant dense<0.000000e+00> : vector<2x256xf32>
    %160 = tpu.matmul %157, %2, %cst_34 {dimension_numbers = #tpu.dot_dimension_numbers<[1], [0], [0], [1], [0, 0, 1, 1], [], []>} : vector<2x64xf32>, vector<64x256xf32>, vector<2x256xf32> -> vector<2x256xf32>
    %161 = arith.addf %159, %160 : vector<2x256xf32>
    %162 = vector.extract_strided_slice %161 {offsets = [0, 0], sizes = [2, 128], strides = [1, 1]} : vector<2x256xf32> to vector<2x128xf32>
    %163 = arith.negf %162 : vector<2x128xf32>
    %164 = math.exp %163 : vector<2x128xf32>
    %cst_35 = arith.constant 1.000000e+00 : f32
    %165 = vector.broadcast %cst_35 : f32 to vector<2x128xf32>
    %166 = arith.addf %165, %164 : vector<2x128xf32>
    %167 = arith.divf %165, %166 : vector<2x128xf32>
    %168 = vector.extract_strided_slice %167 {offsets = [0, 0], sizes = [2, 64], strides = [1, 1]} : vector<2x128xf32> to vector<2x64xf32>
    %169 = vector.extract_strided_slice %167 {offsets = [0, 64], sizes = [2, 64], strides = [1, 1]} : vector<2x128xf32> to vector<2x64xf32>
    %170 = vector.extract_strided_slice %161 {offsets = [0, 128], sizes = [2, 64], strides = [1, 1]} : vector<2x256xf32> to vector<2x64xf32>
    %171 = math.tanh %170 : vector<2x64xf32>
    %172 = vector.extract_strided_slice %161 {offsets = [0, 192], sizes = [2, 64], strides = [1, 1]} : vector<2x256xf32> to vector<2x64xf32>
    %173 = arith.negf %172 : vector<2x64xf32>
    %174 = math.exp %173 : vector<2x64xf32>
    %cst_36 = arith.constant 1.000000e+00 : f32
    %175 = vector.broadcast %cst_36 : f32 to vector<2x64xf32>
    %176 = arith.addf %175, %174 : vector<2x64xf32>
    %177 = arith.divf %175, %176 : vector<2x64xf32>
    %178 = arith.mulf %169, %155 : vector<2x64xf32>
    %179 = arith.mulf %168, %171 : vector<2x64xf32>
    %180 = arith.addf %178, %179 : vector<2x64xf32>
    %181 = math.tanh %180 : vector<2x64xf32>
    %182 = arith.mulf %177, %181 : vector<2x64xf32>
    %c12 = arith.constant 12 : index
    %c0_37 = arith.constant 0 : index
    %183 = vector.load %arg13[%c12, %c0_37] : memref<16x64xf32, #tpu.memory_space<vmem>>, vector<2x64xf32>
    tpu.vector_store %arg13[%c12, %c0_37], %182 {strides = array<i32>} : memref<16x64xf32, #tpu.memory_space<vmem>>, vector<2x64xf32>,
    %184 = vector.extract_strided_slice %6 {offsets = [14, 0], sizes = [2, 256], strides = [1, 1]} : vector<16x256xf32> to vector<2x256xf32>
    %cst_38 = arith.constant dense<0.000000e+00> : vector<2x256xf32>
    %185 = tpu.matmul %182, %2, %cst_38 {dimension_numbers = #tpu.dot_dimension_numbers<[1], [0], [0], [1], [0, 0, 1, 1], [], []>} : vector<2x64xf32>, vector<64x256xf32>, vector<2x256xf32> -> vector<2x256xf32>
    %186 = arith.addf %184, %185 : vector<2x256xf32>
    %187 = vector.extract_strided_slice %186 {offsets = [0, 0], sizes = [2, 128], strides = [1, 1]} : vector<2x256xf32> to vector<2x128xf32>
    %188 = arith.negf %187 : vector<2x128xf32>
    %189 = math.exp %188 : vector<2x128xf32>
    %cst_39 = arith.constant 1.000000e+00 : f32
    %190 = vector.broadcast %cst_39 : f32 to vector<2x128xf32>
    %191 = arith.addf %190, %189 : vector<2x128xf32>
    %192 = arith.divf %190, %191 : vector<2x128xf32>
    %193 = vector.extract_strided_slice %192 {offsets = [0, 0], sizes = [2, 64], strides = [1, 1]} : vector<2x128xf32> to vector<2x64xf32>
    %194 = vector.extract_strided_slice %192 {offsets = [0, 64], sizes = [2, 64], strides = [1, 1]} : vector<2x128xf32> to vector<2x64xf32>
    %195 = vector.extract_strided_slice %186 {offsets = [0, 128], sizes = [2, 64], strides = [1, 1]} : vector<2x256xf32> to vector<2x64xf32>
    %196 = math.tanh %195 : vector<2x64xf32>
    %197 = vector.extract_strided_slice %186 {offsets = [0, 192], sizes = [2, 64], strides = [1, 1]} : vector<2x256xf32> to vector<2x64xf32>
    %198 = arith.negf %197 : vector<2x64xf32>
    %199 = math.exp %198 : vector<2x64xf32>
    %cst_40 = arith.constant 1.000000e+00 : f32
    %200 = vector.broadcast %cst_40 : f32 to vector<2x64xf32>
    %201 = arith.addf %200, %199 : vector<2x64xf32>
    %202 = arith.divf %200, %201 : vector<2x64xf32>
    %203 = arith.mulf %194, %180 : vector<2x64xf32>
    %204 = arith.mulf %193, %196 : vector<2x64xf32>
    %205 = arith.addf %203, %204 : vector<2x64xf32>
    %206 = math.tanh %205 : vector<2x64xf32>
    %207 = arith.mulf %202, %206 : vector<2x64xf32>
    %c14 = arith.constant 14 : index
    %c0_41 = arith.constant 0 : index
    %208 = vector.load %arg13[%c14, %c0_41] : memref<16x64xf32, #tpu.memory_space<vmem>>, vector<2x64xf32>
    tpu.vector_store %arg13[%c14, %c0_41], %207 {strides = array<i32>} : memref<16x64xf32, #tpu.memory_space<vmem>>, vector<2x64xf32>,
    %c0_42 = arith.constant 0 : index
    %c0_43 = arith.constant 0 : index
    %209 = vector.load %arg13[%c0_42, %c0_43] : memref<16x64xf32, #tpu.memory_space<vmem>>, vector<16x64xf32>
    %c0_44 = arith.constant 0 : index
    %c0_45 = arith.constant 0 : index
    %210 = vector.load %arg4[%c0_44, %c0_45] : memref<64x256xf32, #tpu.memory_space<vmem>>, vector<64x256xf32>
    %c0_46 = arith.constant 0 : index
    %c0_47 = arith.constant 0 : index
    %211 = vector.load %arg5[%c0_46, %c0_47] : memref<64x256xf32, #tpu.memory_space<vmem>>, vector<64x256xf32>
    %c0_48 = arith.constant 0 : index
    %c0_49 = arith.constant 0 : index
    %212 = vector.load %arg6[%c0_48, %c0_49] : memref<1x256xf32, #tpu.memory_space<vmem>>, vector<1x256xf32>
    %cst_50 = arith.constant dense<0.000000e+00> : vector<16x256xf32>
    %213 = tpu.matmul %209, %210, %cst_50 {dimension_numbers = #tpu.dot_dimension_numbers<[1], [0], [0], [1], [0, 0, 1, 1], [], []>} : vector<16x64xf32>, vector<64x256xf32>, vector<16x256xf32> -> vector<16x256xf32>
    %214 = vector.broadcast %212 : vector<1x256xf32> to vector<16x256xf32>
    %215 = arith.addf %213, %214 : vector<16x256xf32>
    %cst_51 = arith.constant 0.000000e+00 : f32
    %216 = vector.broadcast %cst_51 : f32 to vector<2x64xf32>
    %cst_52 = arith.constant 0.000000e+00 : f32
    %217 = vector.broadcast %cst_52 : f32 to vector<2x64xf32>
    %218 = vector.extract_strided_slice %215 {offsets = [0, 0], sizes = [2, 256], strides = [1, 1]} : vector<16x256xf32> to vector<2x256xf32>
    %cst_53 = arith.constant dense<0.000000e+00> : vector<2x256xf32>
    %219 = tpu.matmul %216, %211, %cst_53 {dimension_numbers = #tpu.dot_dimension_numbers<[1], [0], [0], [1], [0, 0, 1, 1], [], []>} : vector<2x64xf32>, vector<64x256xf32>, vector<2x256xf32> -> vector<2x256xf32>
    %220 = arith.addf %218, %219 : vector<2x256xf32>
    %221 = vector.extract_strided_slice %220 {offsets = [0, 0], sizes = [2, 128], strides = [1, 1]} : vector<2x256xf32> to vector<2x128xf32>
    %222 = arith.negf %221 : vector<2x128xf32>
    %223 = math.exp %222 : vector<2x128xf32>
    %cst_54 = arith.constant 1.000000e+00 : f32
    %224 = vector.broadcast %cst_54 : f32 to vector<2x128xf32>
    %225 = arith.addf %224, %223 : vector<2x128xf32>
    %226 = arith.divf %224, %225 : vector<2x128xf32>
    %227 = vector.extract_strided_slice %226 {offsets = [0, 0], sizes = [2, 64], strides = [1, 1]} : vector<2x128xf32> to vector<2x64xf32>
    %228 = vector.extract_strided_slice %226 {offsets = [0, 64], sizes = [2, 64], strides = [1, 1]} : vector<2x128xf32> to vector<2x64xf32>
    %229 = vector.extract_strided_slice %220 {offsets = [0, 128], sizes = [2, 64], strides = [1, 1]} : vector<2x256xf32> to vector<2x64xf32>
    %230 = math.tanh %229 : vector<2x64xf32>
    %231 = vector.extract_strided_slice %220 {offsets = [0, 192], sizes = [2, 64], strides = [1, 1]} : vector<2x256xf32> to vector<2x64xf32>
    %232 = arith.negf %231 : vector<2x64xf32>
    %233 = math.exp %232 : vector<2x64xf32>
    %cst_55 = arith.constant 1.000000e+00 : f32
    %234 = vector.broadcast %cst_55 : f32 to vector<2x64xf32>
    %235 = arith.addf %234, %233 : vector<2x64xf32>
    %236 = arith.divf %234, %235 : vector<2x64xf32>
    %237 = arith.mulf %228, %217 : vector<2x64xf32>
    %238 = arith.mulf %227, %230 : vector<2x64xf32>
    %239 = arith.addf %237, %238 : vector<2x64xf32>
    %240 = math.tanh %239 : vector<2x64xf32>
    %241 = arith.mulf %236, %240 : vector<2x64xf32>
    %c0_56 = arith.constant 0 : index
    %c0_57 = arith.constant 0 : index
    %242 = vector.load %arg13[%c0_56, %c0_57] : memref<16x64xf32, #tpu.memory_space<vmem>>, vector<2x64xf32>
    tpu.vector_store %arg13[%c0_56, %c0_57], %241 {strides = array<i32>} : memref<16x64xf32, #tpu.memory_space<vmem>>, vector<2x64xf32>,
    %243 = vector.extract_strided_slice %215 {offsets = [2, 0], sizes = [2, 256], strides = [1, 1]} : vector<16x256xf32> to vector<2x256xf32>
    %cst_58 = arith.constant dense<0.000000e+00> : vector<2x256xf32>
    %244 = tpu.matmul %241, %211, %cst_58 {dimension_numbers = #tpu.dot_dimension_numbers<[1], [0], [0], [1], [0, 0, 1, 1], [], []>} : vector<2x64xf32>, vector<64x256xf32>, vector<2x256xf32> -> vector<2x256xf32>
    %245 = arith.addf %243, %244 : vector<2x256xf32>
    %246 = vector.extract_strided_slice %245 {offsets = [0, 0], sizes = [2, 128], strides = [1, 1]} : vector<2x256xf32> to vector<2x128xf32>
    %247 = arith.negf %246 : vector<2x128xf32>
    %248 = math.exp %247 : vector<2x128xf32>
    %cst_59 = arith.constant 1.000000e+00 : f32
    %249 = vector.broadcast %cst_59 : f32 to vector<2x128xf32>
    %250 = arith.addf %249, %248 : vector<2x128xf32>
    %251 = arith.divf %249, %250 : vector<2x128xf32>
    %252 = vector.extract_strided_slice %251 {offsets = [0, 0], sizes = [2, 64], strides = [1, 1]} : vector<2x128xf32> to vector<2x64xf32>
    %253 = vector.extract_strided_slice %251 {offsets = [0, 64], sizes = [2, 64], strides = [1, 1]} : vector<2x128xf32> to vector<2x64xf32>
    %254 = vector.extract_strided_slice %245 {offsets = [0, 128], sizes = [2, 64], strides = [1, 1]} : vector<2x256xf32> to vector<2x64xf32>
    %255 = math.tanh %254 : vector<2x64xf32>
    %256 = vector.extract_strided_slice %245 {offsets = [0, 192], sizes = [2, 64], strides = [1, 1]} : vector<2x256xf32> to vector<2x64xf32>
    %257 = arith.negf %256 : vector<2x64xf32>
    %258 = math.exp %257 : vector<2x64xf32>
    %cst_60 = arith.constant 1.000000e+00 : f32
    %259 = vector.broadcast %cst_60 : f32 to vector<2x64xf32>
    %260 = arith.addf %259, %258 : vector<2x64xf32>
    %261 = arith.divf %259, %260 : vector<2x64xf32>
    %262 = arith.mulf %253, %239 : vector<2x64xf32>
    %263 = arith.mulf %252, %255 : vector<2x64xf32>
    %264 = arith.addf %262, %263 : vector<2x64xf32>
    %265 = math.tanh %264 : vector<2x64xf32>
    %266 = arith.mulf %261, %265 : vector<2x64xf32>
    %c2_61 = arith.constant 2 : index
    %c0_62 = arith.constant 0 : index
    %267 = vector.load %arg13[%c2_61, %c0_62] : memref<16x64xf32, #tpu.memory_space<vmem>>, vector<2x64xf32>
    tpu.vector_store %arg13[%c2_61, %c0_62], %266 {strides = array<i32>} : memref<16x64xf32, #tpu.memory_space<vmem>>, vector<2x64xf32>,
    %268 = vector.extract_strided_slice %215 {offsets = [4, 0], sizes = [2, 256], strides = [1, 1]} : vector<16x256xf32> to vector<2x256xf32>
    %cst_63 = arith.constant dense<0.000000e+00> : vector<2x256xf32>
    %269 = tpu.matmul %266, %211, %cst_63 {dimension_numbers = #tpu.dot_dimension_numbers<[1], [0], [0], [1], [0, 0, 1, 1], [], []>} : vector<2x64xf32>, vector<64x256xf32>, vector<2x256xf32> -> vector<2x256xf32>
    %270 = arith.addf %268, %269 : vector<2x256xf32>
    %271 = vector.extract_strided_slice %270 {offsets = [0, 0], sizes = [2, 128], strides = [1, 1]} : vector<2x256xf32> to vector<2x128xf32>
    %272 = arith.negf %271 : vector<2x128xf32>
    %273 = math.exp %272 : vector<2x128xf32>
    %cst_64 = arith.constant 1.000000e+00 : f32
    %274 = vector.broadcast %cst_64 : f32 to vector<2x128xf32>
    %275 = arith.addf %274, %273 : vector<2x128xf32>
    %276 = arith.divf %274, %275 : vector<2x128xf32>
    %277 = vector.extract_strided_slice %276 {offsets = [0, 0], sizes = [2, 64], strides = [1, 1]} : vector<2x128xf32> to vector<2x64xf32>
    %278 = vector.extract_strided_slice %276 {offsets = [0, 64], sizes = [2, 64], strides = [1, 1]} : vector<2x128xf32> to vector<2x64xf32>
    %279 = vector.extract_strided_slice %270 {offsets = [0, 128], sizes = [2, 64], strides = [1, 1]} : vector<2x256xf32> to vector<2x64xf32>
    %280 = math.tanh %279 : vector<2x64xf32>
    %281 = vector.extract_strided_slice %270 {offsets = [0, 192], sizes = [2, 64], strides = [1, 1]} : vector<2x256xf32> to vector<2x64xf32>
    %282 = arith.negf %281 : vector<2x64xf32>
    %283 = math.exp %282 : vector<2x64xf32>
    %cst_65 = arith.constant 1.000000e+00 : f32
    %284 = vector.broadcast %cst_65 : f32 to vector<2x64xf32>
    %285 = arith.addf %284, %283 : vector<2x64xf32>
    %286 = arith.divf %284, %285 : vector<2x64xf32>
    %287 = arith.mulf %278, %264 : vector<2x64xf32>
    %288 = arith.mulf %277, %280 : vector<2x64xf32>
    %289 = arith.addf %287, %288 : vector<2x64xf32>
    %290 = math.tanh %289 : vector<2x64xf32>
    %291 = arith.mulf %286, %290 : vector<2x64xf32>
    %c4_66 = arith.constant 4 : index
    %c0_67 = arith.constant 0 : index
    %292 = vector.load %arg13[%c4_66, %c0_67] : memref<16x64xf32, #tpu.memory_space<vmem>>, vector<2x64xf32>
    tpu.vector_store %arg13[%c4_66, %c0_67], %291 {strides = array<i32>} : memref<16x64xf32, #tpu.memory_space<vmem>>, vector<2x64xf32>,
    %293 = vector.extract_strided_slice %215 {offsets = [6, 0], sizes = [2, 256], strides = [1, 1]} : vector<16x256xf32> to vector<2x256xf32>
    %cst_68 = arith.constant dense<0.000000e+00> : vector<2x256xf32>
    %294 = tpu.matmul %291, %211, %cst_68 {dimension_numbers = #tpu.dot_dimension_numbers<[1], [0], [0], [1], [0, 0, 1, 1], [], []>} : vector<2x64xf32>, vector<64x256xf32>, vector<2x256xf32> -> vector<2x256xf32>
    %295 = arith.addf %293, %294 : vector<2x256xf32>
    %296 = vector.extract_strided_slice %295 {offsets = [0, 0], sizes = [2, 128], strides = [1, 1]} : vector<2x256xf32> to vector<2x128xf32>
    %297 = arith.negf %296 : vector<2x128xf32>
    %298 = math.exp %297 : vector<2x128xf32>
    %cst_69 = arith.constant 1.000000e+00 : f32
    %299 = vector.broadcast %cst_69 : f32 to vector<2x128xf32>
    %300 = arith.addf %299, %298 : vector<2x128xf32>
    %301 = arith.divf %299, %300 : vector<2x128xf32>
    %302 = vector.extract_strided_slice %301 {offsets = [0, 0], sizes = [2, 64], strides = [1, 1]} : vector<2x128xf32> to vector<2x64xf32>
    %303 = vector.extract_strided_slice %301 {offsets = [0, 64], sizes = [2, 64], strides = [1, 1]} : vector<2x128xf32> to vector<2x64xf32>
    %304 = vector.extract_strided_slice %295 {offsets = [0, 128], sizes = [2, 64], strides = [1, 1]} : vector<2x256xf32> to vector<2x64xf32>
    %305 = math.tanh %304 : vector<2x64xf32>
    %306 = vector.extract_strided_slice %295 {offsets = [0, 192], sizes = [2, 64], strides = [1, 1]} : vector<2x256xf32> to vector<2x64xf32>
    %307 = arith.negf %306 : vector<2x64xf32>
    %308 = math.exp %307 : vector<2x64xf32>
    %cst_70 = arith.constant 1.000000e+00 : f32
    %309 = vector.broadcast %cst_70 : f32 to vector<2x64xf32>
    %310 = arith.addf %309, %308 : vector<2x64xf32>
    %311 = arith.divf %309, %310 : vector<2x64xf32>
    %312 = arith.mulf %303, %289 : vector<2x64xf32>
    %313 = arith.mulf %302, %305 : vector<2x64xf32>
    %314 = arith.addf %312, %313 : vector<2x64xf32>
    %315 = math.tanh %314 : vector<2x64xf32>
    %316 = arith.mulf %311, %315 : vector<2x64xf32>
    %c6_71 = arith.constant 6 : index
    %c0_72 = arith.constant 0 : index
    %317 = vector.load %arg13[%c6_71, %c0_72] : memref<16x64xf32, #tpu.memory_space<vmem>>, vector<2x64xf32>
    tpu.vector_store %arg13[%c6_71, %c0_72], %316 {strides = array<i32>} : memref<16x64xf32, #tpu.memory_space<vmem>>, vector<2x64xf32>,
    %318 = vector.extract_strided_slice %215 {offsets = [8, 0], sizes = [2, 256], strides = [1, 1]} : vector<16x256xf32> to vector<2x256xf32>
    %cst_73 = arith.constant dense<0.000000e+00> : vector<2x256xf32>
    %319 = tpu.matmul %316, %211, %cst_73 {dimension_numbers = #tpu.dot_dimension_numbers<[1], [0], [0], [1], [0, 0, 1, 1], [], []>} : vector<2x64xf32>, vector<64x256xf32>, vector<2x256xf32> -> vector<2x256xf32>
    %320 = arith.addf %318, %319 : vector<2x256xf32>
    %321 = vector.extract_strided_slice %320 {offsets = [0, 0], sizes = [2, 128], strides = [1, 1]} : vector<2x256xf32> to vector<2x128xf32>
    %322 = arith.negf %321 : vector<2x128xf32>
    %323 = math.exp %322 : vector<2x128xf32>
    %cst_74 = arith.constant 1.000000e+00 : f32
    %324 = vector.broadcast %cst_74 : f32 to vector<2x128xf32>
    %325 = arith.addf %324, %323 : vector<2x128xf32>
    %326 = arith.divf %324, %325 : vector<2x128xf32>
    %327 = vector.extract_strided_slice %326 {offsets = [0, 0], sizes = [2, 64], strides = [1, 1]} : vector<2x128xf32> to vector<2x64xf32>
    %328 = vector.extract_strided_slice %326 {offsets = [0, 64], sizes = [2, 64], strides = [1, 1]} : vector<2x128xf32> to vector<2x64xf32>
    %329 = vector.extract_strided_slice %320 {offsets = [0, 128], sizes = [2, 64], strides = [1, 1]} : vector<2x256xf32> to vector<2x64xf32>
    %330 = math.tanh %329 : vector<2x64xf32>
    %331 = vector.extract_strided_slice %320 {offsets = [0, 192], sizes = [2, 64], strides = [1, 1]} : vector<2x256xf32> to vector<2x64xf32>
    %332 = arith.negf %331 : vector<2x64xf32>
    %333 = math.exp %332 : vector<2x64xf32>
    %cst_75 = arith.constant 1.000000e+00 : f32
    %334 = vector.broadcast %cst_75 : f32 to vector<2x64xf32>
    %335 = arith.addf %334, %333 : vector<2x64xf32>
    %336 = arith.divf %334, %335 : vector<2x64xf32>
    %337 = arith.mulf %328, %314 : vector<2x64xf32>
    %338 = arith.mulf %327, %330 : vector<2x64xf32>
    %339 = arith.addf %337, %338 : vector<2x64xf32>
    %340 = math.tanh %339 : vector<2x64xf32>
    %341 = arith.mulf %336, %340 : vector<2x64xf32>
    %c8_76 = arith.constant 8 : index
    %c0_77 = arith.constant 0 : index
    %342 = vector.load %arg13[%c8_76, %c0_77] : memref<16x64xf32, #tpu.memory_space<vmem>>, vector<2x64xf32>
    tpu.vector_store %arg13[%c8_76, %c0_77], %341 {strides = array<i32>} : memref<16x64xf32, #tpu.memory_space<vmem>>, vector<2x64xf32>,
    %343 = vector.extract_strided_slice %215 {offsets = [10, 0], sizes = [2, 256], strides = [1, 1]} : vector<16x256xf32> to vector<2x256xf32>
    %cst_78 = arith.constant dense<0.000000e+00> : vector<2x256xf32>
    %344 = tpu.matmul %341, %211, %cst_78 {dimension_numbers = #tpu.dot_dimension_numbers<[1], [0], [0], [1], [0, 0, 1, 1], [], []>} : vector<2x64xf32>, vector<64x256xf32>, vector<2x256xf32> -> vector<2x256xf32>
    %345 = arith.addf %343, %344 : vector<2x256xf32>
    %346 = vector.extract_strided_slice %345 {offsets = [0, 0], sizes = [2, 128], strides = [1, 1]} : vector<2x256xf32> to vector<2x128xf32>
    %347 = arith.negf %346 : vector<2x128xf32>
    %348 = math.exp %347 : vector<2x128xf32>
    %cst_79 = arith.constant 1.000000e+00 : f32
    %349 = vector.broadcast %cst_79 : f32 to vector<2x128xf32>
    %350 = arith.addf %349, %348 : vector<2x128xf32>
    %351 = arith.divf %349, %350 : vector<2x128xf32>
    %352 = vector.extract_strided_slice %351 {offsets = [0, 0], sizes = [2, 64], strides = [1, 1]} : vector<2x128xf32> to vector<2x64xf32>
    %353 = vector.extract_strided_slice %351 {offsets = [0, 64], sizes = [2, 64], strides = [1, 1]} : vector<2x128xf32> to vector<2x64xf32>
    %354 = vector.extract_strided_slice %345 {offsets = [0, 128], sizes = [2, 64], strides = [1, 1]} : vector<2x256xf32> to vector<2x64xf32>
    %355 = math.tanh %354 : vector<2x64xf32>
    %356 = vector.extract_strided_slice %345 {offsets = [0, 192], sizes = [2, 64], strides = [1, 1]} : vector<2x256xf32> to vector<2x64xf32>
    %357 = arith.negf %356 : vector<2x64xf32>
    %358 = math.exp %357 : vector<2x64xf32>
    %cst_80 = arith.constant 1.000000e+00 : f32
    %359 = vector.broadcast %cst_80 : f32 to vector<2x64xf32>
    %360 = arith.addf %359, %358 : vector<2x64xf32>
    %361 = arith.divf %359, %360 : vector<2x64xf32>
    %362 = arith.mulf %353, %339 : vector<2x64xf32>
    %363 = arith.mulf %352, %355 : vector<2x64xf32>
    %364 = arith.addf %362, %363 : vector<2x64xf32>
    %365 = math.tanh %364 : vector<2x64xf32>
    %366 = arith.mulf %361, %365 : vector<2x64xf32>
    %c10_81 = arith.constant 10 : index
    %c0_82 = arith.constant 0 : index
    %367 = vector.load %arg13[%c10_81, %c0_82] : memref<16x64xf32, #tpu.memory_space<vmem>>, vector<2x64xf32>
    tpu.vector_store %arg13[%c10_81, %c0_82], %366 {strides = array<i32>} : memref<16x64xf32, #tpu.memory_space<vmem>>, vector<2x64xf32>,
    %368 = vector.extract_strided_slice %215 {offsets = [12, 0], sizes = [2, 256], strides = [1, 1]} : vector<16x256xf32> to vector<2x256xf32>
    %cst_83 = arith.constant dense<0.000000e+00> : vector<2x256xf32>
    %369 = tpu.matmul %366, %211, %cst_83 {dimension_numbers = #tpu.dot_dimension_numbers<[1], [0], [0], [1], [0, 0, 1, 1], [], []>} : vector<2x64xf32>, vector<64x256xf32>, vector<2x256xf32> -> vector<2x256xf32>
    %370 = arith.addf %368, %369 : vector<2x256xf32>
    %371 = vector.extract_strided_slice %370 {offsets = [0, 0], sizes = [2, 128], strides = [1, 1]} : vector<2x256xf32> to vector<2x128xf32>
    %372 = arith.negf %371 : vector<2x128xf32>
    %373 = math.exp %372 : vector<2x128xf32>
    %cst_84 = arith.constant 1.000000e+00 : f32
    %374 = vector.broadcast %cst_84 : f32 to vector<2x128xf32>
    %375 = arith.addf %374, %373 : vector<2x128xf32>
    %376 = arith.divf %374, %375 : vector<2x128xf32>
    %377 = vector.extract_strided_slice %376 {offsets = [0, 0], sizes = [2, 64], strides = [1, 1]} : vector<2x128xf32> to vector<2x64xf32>
    %378 = vector.extract_strided_slice %376 {offsets = [0, 64], sizes = [2, 64], strides = [1, 1]} : vector<2x128xf32> to vector<2x64xf32>
    %379 = vector.extract_strided_slice %370 {offsets = [0, 128], sizes = [2, 64], strides = [1, 1]} : vector<2x256xf32> to vector<2x64xf32>
    %380 = math.tanh %379 : vector<2x64xf32>
    %381 = vector.extract_strided_slice %370 {offsets = [0, 192], sizes = [2, 64], strides = [1, 1]} : vector<2x256xf32> to vector<2x64xf32>
    %382 = arith.negf %381 : vector<2x64xf32>
    %383 = math.exp %382 : vector<2x64xf32>
    %cst_85 = arith.constant 1.000000e+00 : f32
    %384 = vector.broadcast %cst_85 : f32 to vector<2x64xf32>
    %385 = arith.addf %384, %383 : vector<2x64xf32>
    %386 = arith.divf %384, %385 : vector<2x64xf32>
    %387 = arith.mulf %378, %364 : vector<2x64xf32>
    %388 = arith.mulf %377, %380 : vector<2x64xf32>
    %389 = arith.addf %387, %388 : vector<2x64xf32>
    %390 = math.tanh %389 : vector<2x64xf32>
    %391 = arith.mulf %386, %390 : vector<2x64xf32>
    %c12_86 = arith.constant 12 : index
    %c0_87 = arith.constant 0 : index
    %392 = vector.load %arg13[%c12_86, %c0_87] : memref<16x64xf32, #tpu.memory_space<vmem>>, vector<2x64xf32>
    tpu.vector_store %arg13[%c12_86, %c0_87], %391 {strides = array<i32>} : memref<16x64xf32, #tpu.memory_space<vmem>>, vector<2x64xf32>,
    %393 = vector.extract_strided_slice %215 {offsets = [14, 0], sizes = [2, 256], strides = [1, 1]} : vector<16x256xf32> to vector<2x256xf32>
    %cst_88 = arith.constant dense<0.000000e+00> : vector<2x256xf32>
    %394 = tpu.matmul %391, %211, %cst_88 {dimension_numbers = #tpu.dot_dimension_numbers<[1], [0], [0], [1], [0, 0, 1, 1], [], []>} : vector<2x64xf32>, vector<64x256xf32>, vector<2x256xf32> -> vector<2x256xf32>
    %395 = arith.addf %393, %394 : vector<2x256xf32>
    %396 = vector.extract_strided_slice %395 {offsets = [0, 0], sizes = [2, 128], strides = [1, 1]} : vector<2x256xf32> to vector<2x128xf32>
    %397 = arith.negf %396 : vector<2x128xf32>
    %398 = math.exp %397 : vector<2x128xf32>
    %cst_89 = arith.constant 1.000000e+00 : f32
    %399 = vector.broadcast %cst_89 : f32 to vector<2x128xf32>
    %400 = arith.addf %399, %398 : vector<2x128xf32>
    %401 = arith.divf %399, %400 : vector<2x128xf32>
    %402 = vector.extract_strided_slice %401 {offsets = [0, 0], sizes = [2, 64], strides = [1, 1]} : vector<2x128xf32> to vector<2x64xf32>
    %403 = vector.extract_strided_slice %401 {offsets = [0, 64], sizes = [2, 64], strides = [1, 1]} : vector<2x128xf32> to vector<2x64xf32>
    %404 = vector.extract_strided_slice %395 {offsets = [0, 128], sizes = [2, 64], strides = [1, 1]} : vector<2x256xf32> to vector<2x64xf32>
    %405 = math.tanh %404 : vector<2x64xf32>
    %406 = vector.extract_strided_slice %395 {offsets = [0, 192], sizes = [2, 64], strides = [1, 1]} : vector<2x256xf32> to vector<2x64xf32>
    %407 = arith.negf %406 : vector<2x64xf32>
    %408 = math.exp %407 : vector<2x64xf32>
    %cst_90 = arith.constant 1.000000e+00 : f32
    %409 = vector.broadcast %cst_90 : f32 to vector<2x64xf32>
    %410 = arith.addf %409, %408 : vector<2x64xf32>
    %411 = arith.divf %409, %410 : vector<2x64xf32>
    %412 = arith.mulf %403, %389 : vector<2x64xf32>
    %413 = arith.mulf %402, %405 : vector<2x64xf32>
    %414 = arith.addf %412, %413 : vector<2x64xf32>
    %415 = math.tanh %414 : vector<2x64xf32>
    %416 = arith.mulf %411, %415 : vector<2x64xf32>
    %c14_91 = arith.constant 14 : index
    %c0_92 = arith.constant 0 : index
    %417 = vector.load %arg13[%c14_91, %c0_92] : memref<16x64xf32, #tpu.memory_space<vmem>>, vector<2x64xf32>
    tpu.vector_store %arg13[%c14_91, %c0_92], %416 {strides = array<i32>} : memref<16x64xf32, #tpu.memory_space<vmem>>, vector<2x64xf32>,
    %c0_93 = arith.constant 0 : index
    %c0_94 = arith.constant 0 : index
    %418 = vector.load %arg13[%c0_93, %c0_94] : memref<16x64xf32, #tpu.memory_space<vmem>>, vector<16x64xf32>
    %c0_95 = arith.constant 0 : index
    %c0_96 = arith.constant 0 : index
    %419 = vector.load %arg7[%c0_95, %c0_96] : memref<64x256xf32, #tpu.memory_space<vmem>>, vector<64x256xf32>
    %c0_97 = arith.constant 0 : index
    %c0_98 = arith.constant 0 : index
    %420 = vector.load %arg8[%c0_97, %c0_98] : memref<64x256xf32, #tpu.memory_space<vmem>>, vector<64x256xf32>
    %c0_99 = arith.constant 0 : index
    %c0_100 = arith.constant 0 : index
    %421 = vector.load %arg9[%c0_99, %c0_100] : memref<1x256xf32, #tpu.memory_space<vmem>>, vector<1x256xf32>
    %cst_101 = arith.constant dense<0.000000e+00> : vector<16x256xf32>
    %422 = tpu.matmul %418, %419, %cst_101 {dimension_numbers = #tpu.dot_dimension_numbers<[1], [0], [0], [1], [0, 0, 1, 1], [], []>} : vector<16x64xf32>, vector<64x256xf32>, vector<16x256xf32> -> vector<16x256xf32>
    %423 = vector.broadcast %421 : vector<1x256xf32> to vector<16x256xf32>
    %424 = arith.addf %422, %423 : vector<16x256xf32>
    %cst_102 = arith.constant 0.000000e+00 : f32
    %425 = vector.broadcast %cst_102 : f32 to vector<2x64xf32>
    %cst_103 = arith.constant 0.000000e+00 : f32
    %426 = vector.broadcast %cst_103 : f32 to vector<2x64xf32>
    %427 = vector.extract_strided_slice %424 {offsets = [0, 0], sizes = [2, 256], strides = [1, 1]} : vector<16x256xf32> to vector<2x256xf32>
    %cst_104 = arith.constant dense<0.000000e+00> : vector<2x256xf32>
    %428 = tpu.matmul %425, %420, %cst_104 {dimension_numbers = #tpu.dot_dimension_numbers<[1], [0], [0], [1], [0, 0, 1, 1], [], []>} : vector<2x64xf32>, vector<64x256xf32>, vector<2x256xf32> -> vector<2x256xf32>
    %429 = arith.addf %427, %428 : vector<2x256xf32>
    %430 = vector.extract_strided_slice %429 {offsets = [0, 0], sizes = [2, 128], strides = [1, 1]} : vector<2x256xf32> to vector<2x128xf32>
    %431 = arith.negf %430 : vector<2x128xf32>
    %432 = math.exp %431 : vector<2x128xf32>
    %cst_105 = arith.constant 1.000000e+00 : f32
    %433 = vector.broadcast %cst_105 : f32 to vector<2x128xf32>
    %434 = arith.addf %433, %432 : vector<2x128xf32>
    %435 = arith.divf %433, %434 : vector<2x128xf32>
    %436 = vector.extract_strided_slice %435 {offsets = [0, 0], sizes = [2, 64], strides = [1, 1]} : vector<2x128xf32> to vector<2x64xf32>
    %437 = vector.extract_strided_slice %435 {offsets = [0, 64], sizes = [2, 64], strides = [1, 1]} : vector<2x128xf32> to vector<2x64xf32>
    %438 = vector.extract_strided_slice %429 {offsets = [0, 128], sizes = [2, 64], strides = [1, 1]} : vector<2x256xf32> to vector<2x64xf32>
    %439 = math.tanh %438 : vector<2x64xf32>
    %440 = vector.extract_strided_slice %429 {offsets = [0, 192], sizes = [2, 64], strides = [1, 1]} : vector<2x256xf32> to vector<2x64xf32>
    %441 = arith.negf %440 : vector<2x64xf32>
    %442 = math.exp %441 : vector<2x64xf32>
    %cst_106 = arith.constant 1.000000e+00 : f32
    %443 = vector.broadcast %cst_106 : f32 to vector<2x64xf32>
    %444 = arith.addf %443, %442 : vector<2x64xf32>
    %445 = arith.divf %443, %444 : vector<2x64xf32>
    %446 = arith.mulf %437, %426 : vector<2x64xf32>
    %447 = arith.mulf %436, %439 : vector<2x64xf32>
    %448 = arith.addf %446, %447 : vector<2x64xf32>
    %449 = math.tanh %448 : vector<2x64xf32>
    %450 = arith.mulf %445, %449 : vector<2x64xf32>
    %451 = vector.extract_strided_slice %424 {offsets = [2, 0], sizes = [2, 256], strides = [1, 1]} : vector<16x256xf32> to vector<2x256xf32>
    %cst_107 = arith.constant dense<0.000000e+00> : vector<2x256xf32>
    %452 = tpu.matmul %450, %420, %cst_107 {dimension_numbers = #tpu.dot_dimension_numbers<[1], [0], [0], [1], [0, 0, 1, 1], [], []>} : vector<2x64xf32>, vector<64x256xf32>, vector<2x256xf32> -> vector<2x256xf32>
    %453 = arith.addf %451, %452 : vector<2x256xf32>
    %454 = vector.extract_strided_slice %453 {offsets = [0, 0], sizes = [2, 128], strides = [1, 1]} : vector<2x256xf32> to vector<2x128xf32>
    %455 = arith.negf %454 : vector<2x128xf32>
    %456 = math.exp %455 : vector<2x128xf32>
    %cst_108 = arith.constant 1.000000e+00 : f32
    %457 = vector.broadcast %cst_108 : f32 to vector<2x128xf32>
    %458 = arith.addf %457, %456 : vector<2x128xf32>
    %459 = arith.divf %457, %458 : vector<2x128xf32>
    %460 = vector.extract_strided_slice %459 {offsets = [0, 0], sizes = [2, 64], strides = [1, 1]} : vector<2x128xf32> to vector<2x64xf32>
    %461 = vector.extract_strided_slice %459 {offsets = [0, 64], sizes = [2, 64], strides = [1, 1]} : vector<2x128xf32> to vector<2x64xf32>
    %462 = vector.extract_strided_slice %453 {offsets = [0, 128], sizes = [2, 64], strides = [1, 1]} : vector<2x256xf32> to vector<2x64xf32>
    %463 = math.tanh %462 : vector<2x64xf32>
    %464 = vector.extract_strided_slice %453 {offsets = [0, 192], sizes = [2, 64], strides = [1, 1]} : vector<2x256xf32> to vector<2x64xf32>
    %465 = arith.negf %464 : vector<2x64xf32>
    %466 = math.exp %465 : vector<2x64xf32>
    %cst_109 = arith.constant 1.000000e+00 : f32
    %467 = vector.broadcast %cst_109 : f32 to vector<2x64xf32>
    %468 = arith.addf %467, %466 : vector<2x64xf32>
    %469 = arith.divf %467, %468 : vector<2x64xf32>
    %470 = arith.mulf %461, %448 : vector<2x64xf32>
    %471 = arith.mulf %460, %463 : vector<2x64xf32>
    %472 = arith.addf %470, %471 : vector<2x64xf32>
    %473 = math.tanh %472 : vector<2x64xf32>
    %474 = arith.mulf %469, %473 : vector<2x64xf32>
    %475 = vector.extract_strided_slice %424 {offsets = [4, 0], sizes = [2, 256], strides = [1, 1]} : vector<16x256xf32> to vector<2x256xf32>
    %cst_110 = arith.constant dense<0.000000e+00> : vector<2x256xf32>
    %476 = tpu.matmul %474, %420, %cst_110 {dimension_numbers = #tpu.dot_dimension_numbers<[1], [0], [0], [1], [0, 0, 1, 1], [], []>} : vector<2x64xf32>, vector<64x256xf32>, vector<2x256xf32> -> vector<2x256xf32>
    %477 = arith.addf %475, %476 : vector<2x256xf32>
    %478 = vector.extract_strided_slice %477 {offsets = [0, 0], sizes = [2, 128], strides = [1, 1]} : vector<2x256xf32> to vector<2x128xf32>
    %479 = arith.negf %478 : vector<2x128xf32>
    %480 = math.exp %479 : vector<2x128xf32>
    %cst_111 = arith.constant 1.000000e+00 : f32
    %481 = vector.broadcast %cst_111 : f32 to vector<2x128xf32>
    %482 = arith.addf %481, %480 : vector<2x128xf32>
    %483 = arith.divf %481, %482 : vector<2x128xf32>
    %484 = vector.extract_strided_slice %483 {offsets = [0, 0], sizes = [2, 64], strides = [1, 1]} : vector<2x128xf32> to vector<2x64xf32>
    %485 = vector.extract_strided_slice %483 {offsets = [0, 64], sizes = [2, 64], strides = [1, 1]} : vector<2x128xf32> to vector<2x64xf32>
    %486 = vector.extract_strided_slice %477 {offsets = [0, 128], sizes = [2, 64], strides = [1, 1]} : vector<2x256xf32> to vector<2x64xf32>
    %487 = math.tanh %486 : vector<2x64xf32>
    %488 = vector.extract_strided_slice %477 {offsets = [0, 192], sizes = [2, 64], strides = [1, 1]} : vector<2x256xf32> to vector<2x64xf32>
    %489 = arith.negf %488 : vector<2x64xf32>
    %490 = math.exp %489 : vector<2x64xf32>
    %cst_112 = arith.constant 1.000000e+00 : f32
    %491 = vector.broadcast %cst_112 : f32 to vector<2x64xf32>
    %492 = arith.addf %491, %490 : vector<2x64xf32>
    %493 = arith.divf %491, %492 : vector<2x64xf32>
    %494 = arith.mulf %485, %472 : vector<2x64xf32>
    %495 = arith.mulf %484, %487 : vector<2x64xf32>
    %496 = arith.addf %494, %495 : vector<2x64xf32>
    %497 = math.tanh %496 : vector<2x64xf32>
    %498 = arith.mulf %493, %497 : vector<2x64xf32>
    %499 = vector.extract_strided_slice %424 {offsets = [6, 0], sizes = [2, 256], strides = [1, 1]} : vector<16x256xf32> to vector<2x256xf32>
    %cst_113 = arith.constant dense<0.000000e+00> : vector<2x256xf32>
    %500 = tpu.matmul %498, %420, %cst_113 {dimension_numbers = #tpu.dot_dimension_numbers<[1], [0], [0], [1], [0, 0, 1, 1], [], []>} : vector<2x64xf32>, vector<64x256xf32>, vector<2x256xf32> -> vector<2x256xf32>
    %501 = arith.addf %499, %500 : vector<2x256xf32>
    %502 = vector.extract_strided_slice %501 {offsets = [0, 0], sizes = [2, 128], strides = [1, 1]} : vector<2x256xf32> to vector<2x128xf32>
    %503 = arith.negf %502 : vector<2x128xf32>
    %504 = math.exp %503 : vector<2x128xf32>
    %cst_114 = arith.constant 1.000000e+00 : f32
    %505 = vector.broadcast %cst_114 : f32 to vector<2x128xf32>
    %506 = arith.addf %505, %504 : vector<2x128xf32>
    %507 = arith.divf %505, %506 : vector<2x128xf32>
    %508 = vector.extract_strided_slice %507 {offsets = [0, 0], sizes = [2, 64], strides = [1, 1]} : vector<2x128xf32> to vector<2x64xf32>
    %509 = vector.extract_strided_slice %507 {offsets = [0, 64], sizes = [2, 64], strides = [1, 1]} : vector<2x128xf32> to vector<2x64xf32>
    %510 = vector.extract_strided_slice %501 {offsets = [0, 128], sizes = [2, 64], strides = [1, 1]} : vector<2x256xf32> to vector<2x64xf32>
    %511 = math.tanh %510 : vector<2x64xf32>
    %512 = vector.extract_strided_slice %501 {offsets = [0, 192], sizes = [2, 64], strides = [1, 1]} : vector<2x256xf32> to vector<2x64xf32>
    %513 = arith.negf %512 : vector<2x64xf32>
    %514 = math.exp %513 : vector<2x64xf32>
    %cst_115 = arith.constant 1.000000e+00 : f32
    %515 = vector.broadcast %cst_115 : f32 to vector<2x64xf32>
    %516 = arith.addf %515, %514 : vector<2x64xf32>
    %517 = arith.divf %515, %516 : vector<2x64xf32>
    %518 = arith.mulf %509, %496 : vector<2x64xf32>
    %519 = arith.mulf %508, %511 : vector<2x64xf32>
    %520 = arith.addf %518, %519 : vector<2x64xf32>
    %521 = math.tanh %520 : vector<2x64xf32>
    %522 = arith.mulf %517, %521 : vector<2x64xf32>
    %523 = vector.extract_strided_slice %424 {offsets = [8, 0], sizes = [2, 256], strides = [1, 1]} : vector<16x256xf32> to vector<2x256xf32>
    %cst_116 = arith.constant dense<0.000000e+00> : vector<2x256xf32>
    %524 = tpu.matmul %522, %420, %cst_116 {dimension_numbers = #tpu.dot_dimension_numbers<[1], [0], [0], [1], [0, 0, 1, 1], [], []>} : vector<2x64xf32>, vector<64x256xf32>, vector<2x256xf32> -> vector<2x256xf32>
    %525 = arith.addf %523, %524 : vector<2x256xf32>
    %526 = vector.extract_strided_slice %525 {offsets = [0, 0], sizes = [2, 128], strides = [1, 1]} : vector<2x256xf32> to vector<2x128xf32>
    %527 = arith.negf %526 : vector<2x128xf32>
    %528 = math.exp %527 : vector<2x128xf32>
    %cst_117 = arith.constant 1.000000e+00 : f32
    %529 = vector.broadcast %cst_117 : f32 to vector<2x128xf32>
    %530 = arith.addf %529, %528 : vector<2x128xf32>
    %531 = arith.divf %529, %530 : vector<2x128xf32>
    %532 = vector.extract_strided_slice %531 {offsets = [0, 0], sizes = [2, 64], strides = [1, 1]} : vector<2x128xf32> to vector<2x64xf32>
    %533 = vector.extract_strided_slice %531 {offsets = [0, 64], sizes = [2, 64], strides = [1, 1]} : vector<2x128xf32> to vector<2x64xf32>
    %534 = vector.extract_strided_slice %525 {offsets = [0, 128], sizes = [2, 64], strides = [1, 1]} : vector<2x256xf32> to vector<2x64xf32>
    %535 = math.tanh %534 : vector<2x64xf32>
    %536 = vector.extract_strided_slice %525 {offsets = [0, 192], sizes = [2, 64], strides = [1, 1]} : vector<2x256xf32> to vector<2x64xf32>
    %537 = arith.negf %536 : vector<2x64xf32>
    %538 = math.exp %537 : vector<2x64xf32>
    %cst_118 = arith.constant 1.000000e+00 : f32
    %539 = vector.broadcast %cst_118 : f32 to vector<2x64xf32>
    %540 = arith.addf %539, %538 : vector<2x64xf32>
    %541 = arith.divf %539, %540 : vector<2x64xf32>
    %542 = arith.mulf %533, %520 : vector<2x64xf32>
    %543 = arith.mulf %532, %535 : vector<2x64xf32>
    %544 = arith.addf %542, %543 : vector<2x64xf32>
    %545 = math.tanh %544 : vector<2x64xf32>
    %546 = arith.mulf %541, %545 : vector<2x64xf32>
    %547 = vector.extract_strided_slice %424 {offsets = [10, 0], sizes = [2, 256], strides = [1, 1]} : vector<16x256xf32> to vector<2x256xf32>
    %cst_119 = arith.constant dense<0.000000e+00> : vector<2x256xf32>
    %548 = tpu.matmul %546, %420, %cst_119 {dimension_numbers = #tpu.dot_dimension_numbers<[1], [0], [0], [1], [0, 0, 1, 1], [], []>} : vector<2x64xf32>, vector<64x256xf32>, vector<2x256xf32> -> vector<2x256xf32>
    %549 = arith.addf %547, %548 : vector<2x256xf32>
    %550 = vector.extract_strided_slice %549 {offsets = [0, 0], sizes = [2, 128], strides = [1, 1]} : vector<2x256xf32> to vector<2x128xf32>
    %551 = arith.negf %550 : vector<2x128xf32>
    %552 = math.exp %551 : vector<2x128xf32>
    %cst_120 = arith.constant 1.000000e+00 : f32
    %553 = vector.broadcast %cst_120 : f32 to vector<2x128xf32>
    %554 = arith.addf %553, %552 : vector<2x128xf32>
    %555 = arith.divf %553, %554 : vector<2x128xf32>
    %556 = vector.extract_strided_slice %555 {offsets = [0, 0], sizes = [2, 64], strides = [1, 1]} : vector<2x128xf32> to vector<2x64xf32>
    %557 = vector.extract_strided_slice %555 {offsets = [0, 64], sizes = [2, 64], strides = [1, 1]} : vector<2x128xf32> to vector<2x64xf32>
    %558 = vector.extract_strided_slice %549 {offsets = [0, 128], sizes = [2, 64], strides = [1, 1]} : vector<2x256xf32> to vector<2x64xf32>
    %559 = math.tanh %558 : vector<2x64xf32>
    %560 = vector.extract_strided_slice %549 {offsets = [0, 192], sizes = [2, 64], strides = [1, 1]} : vector<2x256xf32> to vector<2x64xf32>
    %561 = arith.negf %560 : vector<2x64xf32>
    %562 = math.exp %561 : vector<2x64xf32>
    %cst_121 = arith.constant 1.000000e+00 : f32
    %563 = vector.broadcast %cst_121 : f32 to vector<2x64xf32>
    %564 = arith.addf %563, %562 : vector<2x64xf32>
    %565 = arith.divf %563, %564 : vector<2x64xf32>
    %566 = arith.mulf %557, %544 : vector<2x64xf32>
    %567 = arith.mulf %556, %559 : vector<2x64xf32>
    %568 = arith.addf %566, %567 : vector<2x64xf32>
    %569 = math.tanh %568 : vector<2x64xf32>
    %570 = arith.mulf %565, %569 : vector<2x64xf32>
    %571 = vector.extract_strided_slice %424 {offsets = [12, 0], sizes = [2, 256], strides = [1, 1]} : vector<16x256xf32> to vector<2x256xf32>
    %cst_122 = arith.constant dense<0.000000e+00> : vector<2x256xf32>
    %572 = tpu.matmul %570, %420, %cst_122 {dimension_numbers = #tpu.dot_dimension_numbers<[1], [0], [0], [1], [0, 0, 1, 1], [], []>} : vector<2x64xf32>, vector<64x256xf32>, vector<2x256xf32> -> vector<2x256xf32>
    %573 = arith.addf %571, %572 : vector<2x256xf32>
    %574 = vector.extract_strided_slice %573 {offsets = [0, 0], sizes = [2, 128], strides = [1, 1]} : vector<2x256xf32> to vector<2x128xf32>
    %575 = arith.negf %574 : vector<2x128xf32>
    %576 = math.exp %575 : vector<2x128xf32>
    %cst_123 = arith.constant 1.000000e+00 : f32
    %577 = vector.broadcast %cst_123 : f32 to vector<2x128xf32>
    %578 = arith.addf %577, %576 : vector<2x128xf32>
    %579 = arith.divf %577, %578 : vector<2x128xf32>
    %580 = vector.extract_strided_slice %579 {offsets = [0, 0], sizes = [2, 64], strides = [1, 1]} : vector<2x128xf32> to vector<2x64xf32>
    %581 = vector.extract_strided_slice %579 {offsets = [0, 64], sizes = [2, 64], strides = [1, 1]} : vector<2x128xf32> to vector<2x64xf32>
    %582 = vector.extract_strided_slice %573 {offsets = [0, 128], sizes = [2, 64], strides = [1, 1]} : vector<2x256xf32> to vector<2x64xf32>
    %583 = math.tanh %582 : vector<2x64xf32>
    %584 = vector.extract_strided_slice %573 {offsets = [0, 192], sizes = [2, 64], strides = [1, 1]} : vector<2x256xf32> to vector<2x64xf32>
    %585 = arith.negf %584 : vector<2x64xf32>
    %586 = math.exp %585 : vector<2x64xf32>
    %cst_124 = arith.constant 1.000000e+00 : f32
    %587 = vector.broadcast %cst_124 : f32 to vector<2x64xf32>
    %588 = arith.addf %587, %586 : vector<2x64xf32>
    %589 = arith.divf %587, %588 : vector<2x64xf32>
    %590 = arith.mulf %581, %568 : vector<2x64xf32>
    %591 = arith.mulf %580, %583 : vector<2x64xf32>
    %592 = arith.addf %590, %591 : vector<2x64xf32>
    %593 = math.tanh %592 : vector<2x64xf32>
    %594 = arith.mulf %589, %593 : vector<2x64xf32>
    %595 = vector.extract_strided_slice %424 {offsets = [14, 0], sizes = [2, 256], strides = [1, 1]} : vector<16x256xf32> to vector<2x256xf32>
    %cst_125 = arith.constant dense<0.000000e+00> : vector<2x256xf32>
    %596 = tpu.matmul %594, %420, %cst_125 {dimension_numbers = #tpu.dot_dimension_numbers<[1], [0], [0], [1], [0, 0, 1, 1], [], []>} : vector<2x64xf32>, vector<64x256xf32>, vector<2x256xf32> -> vector<2x256xf32>
    %597 = arith.addf %595, %596 : vector<2x256xf32>
    %598 = vector.extract_strided_slice %597 {offsets = [0, 0], sizes = [2, 128], strides = [1, 1]} : vector<2x256xf32> to vector<2x128xf32>
    %599 = arith.negf %598 : vector<2x128xf32>
    %600 = math.exp %599 : vector<2x128xf32>
    %cst_126 = arith.constant 1.000000e+00 : f32
    %601 = vector.broadcast %cst_126 : f32 to vector<2x128xf32>
    %602 = arith.addf %601, %600 : vector<2x128xf32>
    %603 = arith.divf %601, %602 : vector<2x128xf32>
    %604 = vector.extract_strided_slice %603 {offsets = [0, 0], sizes = [2, 64], strides = [1, 1]} : vector<2x128xf32> to vector<2x64xf32>
    %605 = vector.extract_strided_slice %603 {offsets = [0, 64], sizes = [2, 64], strides = [1, 1]} : vector<2x128xf32> to vector<2x64xf32>
    %606 = vector.extract_strided_slice %597 {offsets = [0, 128], sizes = [2, 64], strides = [1, 1]} : vector<2x256xf32> to vector<2x64xf32>
    %607 = math.tanh %606 : vector<2x64xf32>
    %608 = vector.extract_strided_slice %597 {offsets = [0, 192], sizes = [2, 64], strides = [1, 1]} : vector<2x256xf32> to vector<2x64xf32>
    %609 = arith.negf %608 : vector<2x64xf32>
    %610 = math.exp %609 : vector<2x64xf32>
    %cst_127 = arith.constant 1.000000e+00 : f32
    %611 = vector.broadcast %cst_127 : f32 to vector<2x64xf32>
    %612 = arith.addf %611, %610 : vector<2x64xf32>
    %613 = arith.divf %611, %612 : vector<2x64xf32>
    %614 = arith.mulf %605, %592 : vector<2x64xf32>
    %615 = arith.mulf %604, %607 : vector<2x64xf32>
    %616 = arith.addf %614, %615 : vector<2x64xf32>
    %617 = math.tanh %616 : vector<2x64xf32>
    %618 = arith.mulf %613, %617 : vector<2x64xf32>
    %c0_128 = arith.constant 0 : index
    %c0_129 = arith.constant 0 : index
    %619 = vector.load %arg10[%c0_128, %c0_129] : memref<64x1xf32, #tpu.memory_space<vmem>>, vector<64x1xf32>
    %cst_130 = arith.constant dense<0.000000e+00> : vector<2x1xf32>
    %620 = tpu.matmul %618, %619, %cst_130 {dimension_numbers = #tpu.dot_dimension_numbers<[1], [0], [0], [1], [0, 0, 1, 1], [], []>} : vector<2x64xf32>, vector<64x1xf32>, vector<2x1xf32> -> vector<2x1xf32>
    %c0_131 = arith.constant 0 : index
    %c0_132 = arith.constant 0 : index
    %621 = vector.load %arg11[%c0_131, %c0_132] : memref<1x1xf32, #tpu.memory_space<vmem>>, vector<1x1xf32>
    %622 = vector.broadcast %621 : vector<1x1xf32> to vector<2x1xf32>
    %623 = arith.addf %620, %622 : vector<2x1xf32>
    %c0_133 = arith.constant 0 : index
    %c0_134 = arith.constant 0 : index
    %624 = vector.load %arg12[%c0_133, %c0_134] : memref<2x1xf32, #tpu.memory_space<vmem>>, vector<2x1xf32>
    tpu.vector_store %arg12[%c0_133, %c0_134], %623 {strides = array<i32>} : memref<2x1xf32, #tpu.memory_space<vmem>>, vector<2x1xf32>,
    return
  }
}

</mosaic_0001>

<bundles_post_ra>
// kernel: lstm_forward.1
= control target key start
LH: loop header
LB: loop body
LE: loop exit
PB: predicated region body
PF: predicated region fallthrough
CT: control target
= control target key end

     0   :  { %s4692_s0 = inlined_call_operand.vmem [shape: f32[16,6], index: 0, kind: input, shape index: {}]   ;;  %s4693_s1 = inlined_call_operand.vmem [shape: f32[6,256], index: 1, kind: input, shape index: {}]   ;;  %s4694_s2 = inlined_call_operand.hbm [shape: f32[64,256], index: 2, kind: input, shape index: {}]   ;;  %s4695_s3 = inlined_call_operand.vmem [shape: f32[1,256], index: 3, kind: input, shape index: {}]   ;;  %s4696_s4 = inlined_call_operand.hbm [shape: f32[64,256], index: 4, kind: input, shape index: {}]   ;;  %s4697_s5 = inlined_call_operand.hbm [shape: f32[64,256], index: 5, kind: input, shape index: {}]   ;;  %s4698_s6 = inlined_call_operand.vmem [shape: f32[1,256], index: 6, kind: input, shape index: {}]   ;;  %s4699_s7 = inlined_call_operand.hbm [shape: f32[64,256], index: 7, kind: input, shape index: {}]   ;;  %s4700_s8 = inlined_call_operand.hbm [shape: f32[64,256], index: 8, kind: input, shape index: {}]   ;;  %s4701_s9 = inlined_call_operand.vmem [shape: f32[1,256], index: 9, kind: input, shape index: {}]   ;;  %s4702_s10 = inlined_call_operand.vmem [shape: f32[64,1], index: 10, kind: input, shape index: {}]   ;;  %s4703_s11 = inlined_call_operand.<no memory space> [shape: f32[1,1], index: 11, kind: input, shape index: {}]   ;;  %s4704_s12 = inlined_call_operand.vmem [shape: f32[2,1], index: 12, kind: output, shape index: {}]  }
   0x1   :  { %v17_v0 = vstv %s4703_s11 }
   0x2   :  { %18 = vst [vmem:[#allocation3] sm:$0x1] %v17_v0 }
   0x3   :  { %19 = vsyncpa [#allocation5], 0 }
   0x4   :  { %20 = vsyncpa [#allocation7], 0 }
   0x5   :  { %21 = vsyncpa [#allocation10], 0  ;;  %s3740_s23 = smov [#allocation6]   ;;  %s3741_s25 = smov [#allocation9]  }
   0x6   :  { %s45_s24 = sshll.u32 %s3740_s23, 4  ;;  %s71_s26 = sshll.u32 %s3741_s25, 4  ;;  %s46_s24 = int_to_ptr.vmem [resolvable:$true] %s45_s24  ;;  %s72_s26 = int_to_ptr.vmem [resolvable:$true] %s71_s26 }
   0x7   :  { %s3642_s27 = scalar_lea.vmem %s46_s24, 2048  ;;  %p3647_p1 = scmp.lt.s32.totalorder %s46_s24, %s46_s24 }
   0x8   :  { %p3643_p0 = scmp.ne.s32.totalorder %s46_s24, %s3642_s27  ;;  %p3648_p2 = scmp.lt.s32.totalorder %s3642_s27, %s3642_s27 }
   0xa   :  { %p3649_p3 = por %p3648_p2, %p3647_p1 }
   0xc   :  { %p3650_p4 = pnand %p3649_p3, %p3643_p0 }
   0xe   :  { %3653 = shalt.err (!%p3650_p4)
}
   0xf   :  { %s3742_s28 = smov 256   ;;  %s3743_s29 = smov 16  }
  0x10   :  { %51 = dma.hbm_to_vmem [thread:$0]  %s4696_s4, 2048, %s46_s24, [#allocation7], %s3742_s28, %s3742_s28, %s3743_s29  }
  0x11   :  { %s3662_s13 = scalar_lea.vmem %s72_s26, 2048  ;;  %p3667_p6 = scmp.lt.s32.totalorder %s72_s26, %s72_s26 }
  0x12   :  { %p3663_p5 = scmp.ne.s32.totalorder %s72_s26, %s3662_s13  ;;  %p3668_p7 = scmp.lt.s32.totalorder %s3662_s13, %s3662_s13 }
  0x14   :  { %p3669_p8 = por %p3668_p7, %p3667_p6 }
  0x16   :  { %p3670_p9 = pnand %p3669_p8, %p3663_p5 }
  0x18   :  { %3673 = shalt.err (!%p3670_p9)
}
  0x19   :  { %77 = dma.hbm_to_vmem [thread:$0]  %s4699_s7, 2048, %s72_s26, [#allocation10], %s3742_s28, %s3742_s28, %s3743_s29  }
  0x1a   :  { %s3744_s16 = smov [#allocation4]   ;;  %s3745_s18 = smov [#allocation8]  }
  0x1b   :  { %s31_s17 = sshll.u32 %s3744_s16, 4  ;;  %s57_s19 = sshll.u32 %s3745_s18, 4  ;;  %s32_s17 = int_to_ptr.vmem [resolvable:$true] %s31_s17  ;;  %s58_s19 = int_to_ptr.vmem [resolvable:$true] %s57_s19 }
  0x1c   :  { %s3682_s4 = scalar_lea.vmem %s32_s17, 2048  ;;  %p3687_p11 = scmp.lt.s32.totalorder %s32_s17, %s32_s17 }
  0x1d   :  { %p3683_p10 = scmp.ne.s32.totalorder %s32_s17, %s3682_s4  ;;  %p3688_p12 = scmp.lt.s32.totalorder %s3682_s4, %s3682_s4 }
  0x1f   :  { %p3689_p13 = por %p3688_p12, %p3687_p11 }
  0x21   :  { %p3690_p0 = pnand %p3689_p13, %p3683_p10 }
  0x23   :  { %3693 = shalt.err (!%p3690_p0)
}
  0x24   :  { %37 = dma.hbm_to_vmem [thread:$0]  %s4694_s2, 2048, %s32_s17, [#allocation5], %s3742_s28, %s3742_s28, %s3743_s29  }
  0x25   :  { %s3702_s7 = scalar_lea.vmem %s58_s19, 2048  ;;  %p3707_p2 = scmp.lt.s32.totalorder %s58_s19, %s58_s19 }
  0x26   :  { %p3703_p1 = scmp.ne.s32.totalorder %s58_s19, %s3702_s7  ;;  %p3708_p3 = scmp.lt.s32.totalorder %s3702_s7, %s3702_s7 }
  0x28   :  { %p3709_p4 = por %p3708_p3, %p3707_p2 }
  0x2a   :  { %p3710_p5 = pnand %p3709_p4, %p3703_p1 }
  0x2c   :  { %3713 = shalt.err (!%p3710_p5)
}
  0x2d   :  { %63 = dma.hbm_to_vmem [thread:$0]  %s4697_s5, 2048, %s58_s19, [#allocation7], %s3742_s28, %s3742_s28, %s3743_s29  }
  0x2e   :  { %s3746_s24 = smov [#allocation11]  }
  0x2f   :  { %s83_s25 = sshll.u32 %s3746_s24, 4  ;;  %s84_s25 = int_to_ptr.vmem [resolvable:$true] %s83_s25 }
  0x30   :  { %s3722_s26 = scalar_lea.vmem %s84_s25, 2048  ;;  %p3727_p7 = scmp.lt.s32.totalorder %s84_s25, %s84_s25 }
  0x31   :  { %p3723_p6 = scmp.ne.s32.totalorder %s84_s25, %s3722_s26  ;;  %p3728_p8 = scmp.lt.s32.totalorder %s3722_s26, %s3722_s26 }
  0x33   :  { %p3729_p9 = por %p3728_p8, %p3727_p7 }
  0x35   :  { %p3730_p10 = pnand %p3729_p9, %p3723_p6 }
  0x37   :  { %3733 = shalt.err (!%p3730_p10)
}
  0x38   :  { %89 = dma.hbm_to_vmem [thread:$0]  %s4700_s8, 2048, %s84_s25, [#allocation10], %s3742_s28, %s3742_s28, %s3743_s29  }
  0x39   :  { %3734 = dma.done.wait [#allocation5], 2048  }
  0x3a   :  { %3735 = vsyncadd [#allocation5], 4294965248 }
  0x3b   :  { %3736 = dma.done.wait [#allocation7], 4096  }
  0x3c   :  { %3737 = vsyncadd [#allocation7], 4294963200 }
  0x3d   :  { %3738 = dma.done.wait [#allocation10], 4096  }
  0x3e   :  { %3739 = vsyncadd [#allocation10], 4294963200  ;;  %v3747_v1 = vmov 0.0   ;;  %v3850_v2 = vld [vmem:[#allocation4 + $0x78] sm:$0xff]  ;;  %v3852_v3 = vld [vmem:[#allocation4 + $0x70] sm:$0xff]  ;;  %vm150_vm0 = vcmask 1045504   ;;  %v133_v21 = vlaneseq }
  0x3f   :  { %221 = vmatprep.mubr.f32.mxu0 %v3747_v1  ;;  %302 = vmatprep.mubr.f32.mxu1 %v3747_v1  ;;  %v3854_v4 = vld [vmem:[#allocation4 + $0x68] sm:$0xff]  ;;  %v3857_v5 = vld [vmem:[#allocation4 + $0x60] sm:$0xff]  ;;  %v3860_v6 = vld [vmem:[#allocation4 + $0x58] sm:$0xff]  ;;  %vm143_vm1 = vcmask 48128   ;;  %vm337_vm2 = vcmask 517120   ;;  %vm234_vm3 = vcmask 523264  }
  0x40   :  { %254 = vmatprep.subr.mxu1 %v3850_v2  ;;  %v3863_v7 = vld [vmem:[#allocation4 + $0x50] sm:$0xff]  ;;  %v3869_v9 = vld [vmem:[#allocation4 + $0x48] sm:$0xff]  ;;  %v3878_v12 = vld [vmem:[#allocation4 + $0x40] sm:$0xff]  ;;  %v134_v22 = vshrl.u32 %v133_v21, 7  ;;  %vm449_vm4 = vcmask 519170   ;;  %vm679_vm5 = vcmask 523270  }
  0x41   :  { %255 = vmatpush1.msra.mxu1 %v3852_v3  ;;  %v114_v8 = vld [vmem:[%s4693_s1 + $0x8] sm:$0x3f]  ;;  %v113_v10 = vld [vmem:[%s4693_s1] sm:$0x3f]  ;;  %v3893_v16 = vld [vmem:[#allocation4 + $0x20] sm:$0xff]  ;;  %vm564_vm6 = vcmask 521220  }
  0x42   :  { %256 = vmatprep.subr.mxu1 %v3854_v4  ;;  %3229 = vmatprep.subr.msk.mxu0 %vm150_vm0, %v114_v8  ;;  %v111_v11 = vld [vmem:[%s4692_s0] sm:$0xff]  ;;  %v3881_v13 = vld [vmem:[#allocation4 + $0x38] sm:$0xff]  ;;  %v3909_v20 = vld [vmem:[#allocation4] sm:$0xff]  ;;  %v3945_v23 = vsub.s32 0, %v134_v22  ;;  %v3957_v31 = vsub.s32 1, %v134_v22  ;;  %vm3749_vm7 = vmmov 0  }
  0x43   :  { %257 = vmatpush1.msra.mxu1 %v3857_v5  ;;  %3230 = vmatpush1.msk.msra.mxu0 %vm150_vm0, %v113_v10  ;;  %v3885_v14 = vld [vmem:[#allocation4 + $0x30] sm:$0xff]  ;;  %v3889_v15 = vld [vmem:[#allocation4 + $0x28] sm:$0xff]  ;;  %v3897_v17 = vld [vmem:[#allocation4 + $0x18] sm:$0xff]  ;;  %vm3220_vm8 = vcmask 1024  }
  0x44   :  { %258 = vmatprep.subr.mxu1 %v3860_v6  ;;  %3231 = vmatmul.mubr.msk.f32.vlgmr.msra.gmra.mxu0 %vm143_vm1, %v111_v11  ;;  %v3901_v18 = vld [vmem:[#allocation4 + $0x10] sm:$0xff]  ;;  %v3905_v19 = vld [vmem:[#allocation4 + $0x8] sm:$0xff] }
  0x45   :  { %259 = vmatpush1.msra.mxu1 %v3863_v7  ;;  %357 = vmatprep.subr.mxu0 %v3850_v2  ;;  %v131_v24 = vld [vmem:[%s4695_s3] sm:$0x3]  ;;  %s3748_s3 = smov 64   ;;  %v112_v42 = vld [vmem:[%s4692_s0 + $0x8] sm:$0xff] }
  0x46   :  { %260 = vmatprep.subr.mxu1 %v3869_v9  ;;  %358 = vmatpush1.msra.mxu0 %v3852_v3  ;;  %v3951_v25 = vrot.slane %v131_v24, %v3945_v23  ;;  %v3960_v32 = vrot.slane %v131_v24, %v3957_v31 }
  0x47   :  { %261 = vmatpush1.msra.mxu1 %v3878_v12  ;;  %359 = vmatprep.subr.mxu0 %v3854_v4 }
  0x48   :  { %262 = vmatprep.subr.mxu1 %v3881_v13  ;;  %360 = vmatpush1.msra.mxu0 %v3857_v5 }
  0x49   :  { %263 = vmatpush1.msra.mxu1 %v3885_v14  ;;  %361 = vmatprep.subr.mxu0 %v3860_v6 }
  0x4a   :  { %264 = vmatprep.subr.mxu1 %v3889_v15  ;;  %362 = vmatpush1.msra.mxu0 %v3863_v7 }
  0x4b   :  { %265 = vmatpush1.msra.mxu1 %v3893_v16  ;;  %363 = vmatprep.subr.mxu0 %v3869_v9 }
  0x4c   :  { %266 = vmatprep.subr.mxu1 %v3897_v17  ;;  %364 = vmatpush1.msra.mxu0 %v3878_v12 }
  0x4d   :  { %267 = vmatpush1.msra.mxu1 %v3901_v18  ;;  %365 = vmatprep.subr.mxu0 %v3881_v13 }
  0x4e   :  { %268 = vmatprep.subr.mxu1 %v3905_v19  ;;  %227 = vmatprep.mubr.f32.mxu0 %v3747_v1 }
  0x4f   :  { %269 = vmatpush1.msra.mxu1 %v3909_v20  ;;  %366 = vmatpush1.msra.mxu0 %v3885_v14 }
  0x50   :  { %303 = vmatmul.mubr.f32.vlgmr.msra.gmra.mxu1 %v3747_v1  ;;  %367 = vmatprep.subr.mxu0 %v3889_v15 }
  0x51   :  { %472 = vmatprep.subr.mxu1 %v3850_v2  ;;  %368 = vmatpush1.msra.mxu0 %v3893_v16 }
  0x52   :  { %473 = vmatpush1.msra.mxu1 %v3852_v3  ;;  %369 = vmatprep.subr.mxu0 %v3897_v17 }
  0x53   :  { %474 = vmatprep.subr.mxu1 %v3854_v4  ;;  %370 = vmatpush1.msra.mxu0 %v3901_v18 }
  0x54   :  { %475 = vmatpush1.msra.mxu1 %v3857_v5  ;;  %371 = vmatprep.subr.mxu0 %v3905_v19 }
  0x55   :  { %476 = vmatprep.subr.mxu1 %v3860_v6  ;;  %372 = vmatpush1.msra.mxu0 %v3909_v20 }
  0x56   :  { %477 = vmatpush1.msra.mxu1 %v3863_v7  ;;  %520 = vmatprep.mubr.f32.mxu1 %v3747_v1 }
  0x57   :  { %478 = vmatprep.subr.mxu1 %v3869_v9  ;;  %587 = vmatprep.subr.mxu0 %v3850_v2 }
  0x58   :  { %479 = vmatpush1.msra.mxu1 %v3878_v12  ;;  %3232 = vmatmul.mubr.msk.f32.gmra.mxu0 %vm143_vm1, %v112_v42 }
  0x59   :  { %480 = vmatprep.subr.mxu1 %v3881_v13  ;;  %405 = vmatprep.mubr.f32.mxu0 %v3747_v1 }
  0x5a   :  { %481 = vmatpush1.msra.mxu1 %v3885_v14 }
  0x5b   :  { %482 = vmatprep.subr.mxu1 %v3889_v15 }
  0x5c   :  { %483 = vmatpush1.msra.mxu1 %v3893_v16 }
  0x5d   :  { %484 = vmatprep.subr.mxu1 %v3897_v17 }
  0x5e   :  { %485 = vmatpush1.msra.mxu1 %v3901_v18 }
  0x5f   :  { %486 = vmatprep.subr.mxu1 %v3905_v19 }
  0x60   :  { %487 = vmatpush1.msra.mxu1 %v3909_v20 }
  0x61   :  { %702 = vmatprep.subr.mxu1 %v3850_v2 }
 0x104   :  { %v223_v26 = vpop.f32.mrf.mxu0 }
 0x105   :  { %v3954_v27 = vadd.f32 %v223_v26, %v3951_v25 }
 0x106   :  { %v225_v33 = vpop.f32.mrf.mxu0 }
 0x107   :  { %v3963_v35 = vadd.f32 %v225_v33, %v3960_v32 }
 0x110   :  { %v304_v28 = vpop.f32.mrf.mxu1 }
 0x111   :  { %v309_v29 = vadd.f32 %v304_v28, %v3954_v27 }
 0x112   :  { %v306_v34 = vpop.f32.mrf.mxu1 }
 0x113   :  { %v3233_v30 = vmul.f32 -1.442695, %v309_v29  ;;  %v310_v36 = vadd.f32 %v306_v34, %v3963_v35 }
 0x115   :  { %3346 = vpow2.f32 %v3233_v30  ;;  %v3234_v43 = vmul.f32 -1.442695, %v310_v36 }
 0x116   :  { %3348 = vtanh.f32 %v310_v36 }
 0x118   :  { %v3992_v53 = vpop.f32.mrf.mxu0 }
 0x11a   :  { %v3994_v54 = vpop.f32.mrf.mxu0 }
 0x122   :  { %v3347_v37 = vpop.eup %3346 }
 0x123   :  { %v314_v38 = vadd.f32 1.0, %v3347_v37  ;;  %v3349_v39 = vpop.eup %3348 }
 0x125   :  { %3350 = vrcp.f32 %v314_v38 }
 0x126   :  { %3352 = vpow2.f32 %v3234_v43 }
 0x132   :  { %v3351_v40 = vpop.eup %3350 }
 0x133   :  { %v325_v41 = vmul.f32 %v3351_v40, %v3349_v39  ;;  %v3353_v44 = vpop.eup %3352  ;;  %v324_v46 = vmul.f32 0.0, %v3351_v40 }
 0x134   :  { %v321_v45 = vadd.f32 1.0, %v3353_v44 }
 0x135   :  { %327 = vrot.lane.b32.xlu0 %v325_v41, %s3748_s3 }
 0x136   :  { %3354 = vrcp.f32 %v321_v45 }
 0x143   :  { %v3355_v49 = vpop.eup %3354 }
 0x1a7   :  { %v328_v47 = vpop.permute.xlu0 %327 }
 0x1a8   :  { %v330_v48 = vadd.f32 %v328_v47, %v324_v46 }
 0x1aa   :  { %3356 = vtanh.f32 %v330_v48  ;;  %v434_v8 = vrot.slane %v330_v48, 6 }
 0x1b7   :  { %v3357_v50 = vpop.eup %3356 }
 0x1b8   :  { %v332_v51 = vmul.f32 %v3357_v50, %v3355_v49 }
 0x1ba   :  { %334 = vrot.lane.b32.xlu0 %v332_v51, %s3748_s3 }
 0x22c   :  { %v335_v52 = vpop.permute.xlu0 %334 }
 0x22d   :  { %338 = vst.msk [vmem:[#allocation2] sm:$0x3] %vm337_vm2, %v335_v52  ;;  %3235 = vmatmul.mubr.msk.f32.vlgmr.msra.gmra.mxu0 %vm234_vm3, %v335_v52 }
 0x22e   :  { %588 = vmatpush1.msra.mxu0 %v3852_v3  ;;  %635 = vmatprep.mubr.f32.mxu0 %v3747_v1 }
 0x22f   :  { %589 = vmatprep.subr.mxu0 %v3854_v4 }
 0x230   :  { %590 = vmatpush1.msra.mxu0 %v3857_v5 }
 0x231   :  { %591 = vmatprep.subr.mxu0 %v3860_v6 }
 0x232   :  { %592 = vmatpush1.msra.mxu0 %v3863_v7 }
 0x233   :  { %593 = vmatprep.subr.mxu0 %v3869_v9 }
 0x234   :  { %594 = vmatpush1.msra.mxu0 %v3878_v12 }
 0x235   :  { %595 = vmatprep.subr.mxu0 %v3881_v13 }
 0x236   :  { %596 = vmatpush1.msra.mxu0 %v3885_v14 }
 0x237   :  { %597 = vmatprep.subr.mxu0 %v3889_v15 }
 0x238   :  { %598 = vmatpush1.msra.mxu0 %v3893_v16 }
 0x239   :  { %599 = vmatprep.subr.mxu0 %v3897_v17 }
 0x23a   :  { %600 = vmatpush1.msra.mxu0 %v3901_v18 }
 0x23b   :  { %601 = vmatprep.subr.mxu0 %v3905_v19 }
 0x23c   :  { %602 = vmatpush1.msra.mxu0 %v3909_v20 }
 0x23d   :  { %807 = vmatprep.subr.mxu0 %v3850_v2 }
 0x2ed   :  { %v407_v55 = vpop.f32.mrf.mxu0 }
 0x2ee   :  { %v414_v56 = vrot.slane %v407_v55, 6 }
 0x2ef   :  { %v409_v59 = vpop.f32.mrf.mxu0 }
 0x2f0   :  { %v418_v57 = vadd.f32 %v414_v56, %v3954_v27  ;;  %v415_v60 = vrot.slane %v409_v59, 6 }
 0x2f2   :  { %v3236_v58 = vmul.f32 -1.442695, %v418_v57  ;;  %v419_v61 = vadd.f32 %v415_v60, %v3963_v35 }
 0x2f4   :  { %3358 = vpow2.f32 %v3236_v58  ;;  %v3237_v22 = vmul.f32 -1.442695, %v419_v61 }
 0x2f5   :  { %3360 = vtanh.f32 %v419_v61 }
 0x301   :  { %v3359_v62 = vpop.eup %3358 }
 0x302   :  { %v423_v63 = vadd.f32 1.0, %v3359_v62  ;;  %v3361_v0 = vpop.eup %3360 }
 0x304   :  { %3362 = vrcp.f32 %v423_v63 }
 0x305   :  { %3364 = vpow2.f32 %v3237_v22 }
 0x311   :  { %v3363_v10 = vpop.eup %3362 }
 0x312   :  { %v437_v11 = vmul.f32 %v3363_v10, %v3361_v0  ;;  %v436_v21 = vmul.f32 %v3363_v10, %v434_v8  ;;  %v3365_v24 = vpop.eup %3364 }
 0x313   :  { %v430_v26 = vadd.f32 1.0, %v3365_v24 }
 0x314   :  { %439 = vrot.lane.b32.xlu1 %v437_v11, %s3748_s3 }
 0x315   :  { %3366 = vrcp.f32 %v430_v26 }
 0x322   :  { %v3367_v30 = vpop.eup %3366 }
 0x386   :  { %v440_v28 = vpop.permute.xlu1 %439 }
 0x387   :  { %v442_v29 = vadd.f32 %v440_v28, %v436_v21 }
 0x389   :  { %3368 = vtanh.f32 %v442_v29  ;;  %v549_v48 = vrot.slane %v442_v29, 6 }
 0x396   :  { %v3369_v33 = vpop.eup %3368 }
 0x397   :  { %v3999_v34 = vmul.f32 %v3369_v33, %v3367_v30 }
 0x399   :  { %v451_v36 = vrot.slane %v3999_v34, 2 }
 0x39b   :  { %452 = vrot.lane.b32.xlu1 %v451_v36, %s3748_s3 }
 0x40d   :  { %v453_v37 = vpop.permute.xlu1 %452 }
 0x40e   :  { %3238 = vmatmul.mubr.msk.f32.vlgmr.msra.gmra.mxu1 %vm234_vm3, %v453_v37 }
 0x40f   :  { %703 = vmatpush1.msra.mxu1 %v3852_v3  ;;  %750 = vmatprep.mubr.f32.mxu1 %v3747_v1 }
 0x410   :  { %704 = vmatprep.subr.mxu1 %v3854_v4 }
 0x411   :  { %705 = vmatpush1.msra.mxu1 %v3857_v5 }
 0x412   :  { %706 = vmatprep.subr.mxu1 %v3860_v6 }
 0x413   :  { %707 = vmatpush1.msra.mxu1 %v3863_v7 }
 0x414   :  { %708 = vmatprep.subr.mxu1 %v3869_v9 }
 0x415   :  { %709 = vmatpush1.msra.mxu1 %v3878_v12 }
 0x416   :  { %710 = vmatprep.subr.mxu1 %v3881_v13 }
 0x417   :  { %711 = vmatpush1.msra.mxu1 %v3885_v14 }
 0x418   :  { %712 = vmatprep.subr.mxu1 %v3889_v15 }
 0x419   :  { %713 = vmatpush1.msra.mxu1 %v3893_v16 }
 0x41a   :  { %714 = vmatprep.subr.mxu1 %v3897_v17 }
 0x41b   :  { %715 = vmatpush1.msra.mxu1 %v3901_v18 }
 0x41c   :  { %716 = vmatprep.subr.mxu1 %v3905_v19 }
 0x41d   :  { %717 = vmatpush1.msra.mxu1 %v3909_v20 }
 0x41e   :  { %921 = vmatprep.subr.mxu1 %v3850_v2 }
 0x4ce   :  { %v522_v38 = vpop.f32.mrf.mxu1 }
 0x4cf   :  { %v529_v39 = vrot.slane %v522_v38, 4 }
 0x4d0   :  { %v524_v42 = vpop.f32.mrf.mxu1 }
 0x4d1   :  { %v533_v40 = vadd.f32 %v529_v39, %v3954_v27  ;;  %v530_v43 = vrot.slane %v524_v42, 4 }
 0x4d3   :  { %v3239_v41 = vmul.f32 -1.442695, %v533_v40  ;;  %v534_v44 = vadd.f32 %v530_v43, %v3963_v35 }
 0x4d5   :  { %3370 = vpow2.f32 %v3239_v41  ;;  %v3240_v52 = vmul.f32 -1.442695, %v534_v44 }
 0x4d6   :  { %3372 = vtanh.f32 %v534_v44 }
 0x4e2   :  { %v3371_v45 = vpop.eup %3370 }
 0x4e3   :  { %v538_v46 = vadd.f32 1.0, %v3371_v45  ;;  %v3373_v47 = vpop.eup %3372  ;;  %v4072_v45 = vadd.f32 %v3992_v53, %v3951_v25 }
 0x4e5   :  { %3374 = vrcp.f32 %v538_v46 }
 0x4e6   :  { %3376 = vpow2.f32 %v3240_v52 }
 0x4f2   :  { %v3375_v49 = vpop.eup %3374 }
 0x4f3   :  { %v552_v50 = vmul.f32 %v3375_v49, %v3373_v47  ;;  %v551_v51 = vmul.f32 %v3375_v49, %v549_v48  ;;  %v3377_v55 = vpop.eup %3376 }
 0x4f4   :  { %v545_v56 = vadd.f32 1.0, %v3377_v55 }
 0x4f5   :  { %554 = vrot.lane.b32.xlu0 %v552_v50, %s3748_s3  ;;  %v4077_v50 = vadd.f32 %v3994_v54, %v3960_v32 }
 0x4f6   :  { %3378 = vrcp.f32 %v545_v56 }
 0x503   :  { %v3379_v59 = vpop.eup %3378 }
 0x567   :  { %v555_v57 = vpop.permute.xlu0 %554 }
 0x568   :  { %v557_v58 = vadd.f32 %v555_v57, %v551_v51 }
 0x56a   :  { %3380 = vtanh.f32 %v557_v58  ;;  %v664_v30 = vrot.slane %v557_v58, 6 }
 0x577   :  { %v3381_v60 = vpop.eup %3380 }
 0x578   :  { %v4024_v61 = vmul.f32 %v3381_v60, %v3379_v59 }
 0x57a   :  { %v566_v62 = vrot.slane %v4024_v61, 4 }
 0x57c   :  { %567 = vrot.lane.b32.xlu1 %v566_v62, %s3748_s3 }
 0x5ee   :  { %v568_v63 = vpop.permute.xlu1 %567 }
 0x5ef   :  { %3241 = vmatmul.mubr.msk.f32.vlgmr.msra.gmra.mxu0 %vm234_vm3, %v568_v63 }
 0x5f0   :  { %808 = vmatpush1.msra.mxu0 %v3852_v3  ;;  %855 = vmatprep.mubr.f32.mxu0 %v3747_v1 }
 0x5f1   :  { %809 = vmatprep.subr.mxu0 %v3854_v4 }
 0x5f2   :  { %810 = vmatpush1.msra.mxu0 %v3857_v5 }
 0x5f3   :  { %811 = vmatprep.subr.mxu0 %v3860_v6 }
 0x5f4   :  { %812 = vmatpush1.msra.mxu0 %v3863_v7 }
 0x5f5   :  { %813 = vmatprep.subr.mxu0 %v3869_v9 }
 0x5f6   :  { %814 = vmatpush1.msra.mxu0 %v3878_v12 }
 0x5f7   :  { %815 = vmatprep.subr.mxu0 %v3881_v13 }
 0x5f8   :  { %816 = vmatpush1.msra.mxu0 %v3885_v14 }
 0x5f9   :  { %817 = vmatprep.subr.mxu0 %v3889_v15 }
 0x5fa   :  { %818 = vmatpush1.msra.mxu0 %v3893_v16 }
 0x5fb   :  { %819 = vmatprep.subr.mxu0 %v3897_v17 }
 0x5fc   :  { %820 = vmatpush1.msra.mxu0 %v3901_v18 }
 0x5fd   :  { %821 = vmatprep.subr.mxu0 %v3905_v19 }
 0x5fe   :  { %822 = vmatpush1.msra.mxu0 %v3909_v20 }
 0x5ff   :  { %1035 = vmatprep.subr.mxu0 %v3850_v2 }
 0x6af   :  { %v637_v0 = vpop.f32.mrf.mxu0 }
 0x6b0   :  { %v644_v8 = vrot.slane %v637_v0, 2 }
 0x6b1   :  { %v639_v21 = vpop.f32.mrf.mxu0 }
 0x6b2   :  { %v648_v10 = vadd.f32 %v644_v8, %v3954_v27  ;;  %v645_v22 = vrot.slane %v639_v21, 2 }
 0x6b4   :  { %v3242_v11 = vmul.f32 -1.442695, %v648_v10  ;;  %v649_v24 = vadd.f32 %v645_v22, %v3963_v35 }
 0x6b6   :  { %3382 = vpow2.f32 %v3242_v11  ;;  %v3243_v2 = vmul.f32 -1.442695, %v649_v24 }
 0x6b7   :  { %3384 = vtanh.f32 %v649_v24 }
 0x6c3   :  { %v3383_v26 = vpop.eup %3382 }
 0x6c4   :  { %v653_v28 = vadd.f32 1.0, %v3383_v26  ;;  %v3385_v29 = vpop.eup %3384 }
 0x6c6   :  { %3386 = vrcp.f32 %v653_v28 }
 0x6c7   :  { %3388 = vpow2.f32 %v3243_v2 }
 0x6d3   :  { %v3387_v33 = vpop.eup %3386 }
 0x6d4   :  { %v667_v36 = vmul.f32 %v3387_v33, %v3385_v29  ;;  %v666_v37 = vmul.f32 %v3387_v33, %v664_v30  ;;  %v3389_v27 = vpop.eup %3388 }
 0x6d5   :  { %v660_v38 = vadd.f32 1.0, %v3389_v27 }
 0x6d6   :  { %669 = vrot.lane.b32.xlu0 %v667_v36, %s3748_s3 }
 0x6d7   :  { %3390 = vrcp.f32 %v660_v38 }
 0x6e4   :  { %v3391_v35 = vpop.eup %3390 }
 0x748   :  { %v670_v39 = vpop.permute.xlu0 %669 }
 0x749   :  { %v672_v40 = vadd.f32 %v670_v39, %v666_v37 }
 0x74b   :  { %3392 = vtanh.f32 %v672_v40  ;;  %v773_v57 = vrot.slane %v672_v40, 6 }
 0x758   :  { %v3393_v41 = vpop.eup %3392 }
 0x759   :  { %v4049_v42 = vmul.f32 %v3393_v41, %v3391_v35 }
 0x75b   :  { %v681_v43 = vrot.slane %v4049_v42, 6 }
 0x75d   :  { %682 = vrot.lane.b32.xlu1 %v681_v43, %s3748_s3 }
 0x7cf   :  { %v683_v44 = vpop.permute.xlu1 %682 }
 0x7d0   :  { %3244 = vmatmul.mubr.msk.f32.vlgmr.msra.gmra.mxu1 %vm234_vm3, %v683_v44 }
 0x7d1   :  { %922 = vmatpush1.msra.mxu1 %v3852_v3  ;;  %969 = vmatprep.mubr.f32.mxu1 %v3747_v1 }
 0x7d2   :  { %923 = vmatprep.subr.mxu1 %v3854_v4 }
 0x7d3   :  { %924 = vmatpush1.msra.mxu1 %v3857_v5 }
 0x7d4   :  { %925 = vmatprep.subr.mxu1 %v3860_v6 }
 0x7d5   :  { %926 = vmatpush1.msra.mxu1 %v3863_v7 }
 0x7d6   :  { %927 = vmatprep.subr.mxu1 %v3869_v9 }
 0x7d7   :  { %928 = vmatpush1.msra.mxu1 %v3878_v12 }
 0x7d8   :  { %929 = vmatprep.subr.mxu1 %v3881_v13 }
 0x7d9   :  { %930 = vmatpush1.msra.mxu1 %v3885_v14 }
 0x7da   :  { %931 = vmatprep.subr.mxu1 %v3889_v15 }
 0x7db   :  { %932 = vmatpush1.msra.mxu1 %v3893_v16 }
 0x7dc   :  { %933 = vmatprep.subr.mxu1 %v3897_v17 }
 0x7dd   :  { %934 = vmatpush1.msra.mxu1 %v3901_v18 }
 0x7de   :  { %935 = vmatprep.subr.mxu1 %v3905_v19 }
 0x7df   :  { %936 = vmatpush1.msra.mxu1 %v3909_v20 }
 0x890   :  { %v752_v46 = vpop.f32.mrf.mxu1 }
 0x891   :  { %v757_v47 = vadd.f32 %v752_v46, %v4072_v45 }
 0x892   :  { %v754_v49 = vpop.f32.mrf.mxu1 }
 0x893   :  { %v3245_v48 = vmul.f32 -1.442695, %v757_v47  ;;  %v758_v51 = vadd.f32 %v754_v49, %v4077_v50  ;;  %v1145_v49 = vld [vmem:[#allocation6 + $0x78] sm:$0xff] }
 0x894   :  { %1196 = vmatprep.subr.mxu1 %v1145_v49 }
 0x895   :  { %3394 = vpow2.f32 %v3245_v48  ;;  %v3246_v59 = vmul.f32 -1.442695, %v758_v51 }
 0x896   :  { %3396 = vtanh.f32 %v758_v51  ;;  %v1144_v51 = vld [vmem:[#allocation6 + $0x70] sm:$0xff] }
 0x8a2   :  { %v3395_v52 = vpop.eup %3394 }
 0x8a3   :  { %v762_v55 = vadd.f32 1.0, %v3395_v52  ;;  %v3397_v56 = vpop.eup %3396  ;;  %v1143_v52 = vld [vmem:[#allocation6 + $0x68] sm:$0xff] }
 0x8a5   :  { %3398 = vrcp.f32 %v762_v55  ;;  %v1142_v55 = vld [vmem:[#allocation6 + $0x60] sm:$0xff] }
 0x8a6   :  { %3400 = vpow2.f32 %v3246_v59 }
 0x8b2   :  { %v3399_v25 = vpop.eup %3398 }
 0x8b3   :  { %v776_v53 = vmul.f32 %v3399_v25, %v3397_v56  ;;  %v775_v58 = vmul.f32 %v3399_v25, %v773_v57  ;;  %v3401_v60 = vpop.eup %3400  ;;  %v4116_v56 = vld [vmem:[#allocation8 + $0x78] sm:$0xff] }
 0x8b4   :  { %v769_v62 = vadd.f32 1.0, %v3401_v60  ;;  %v1141_v60 = vld [vmem:[#allocation6 + $0x58] sm:$0xff] }
 0x8b5   :  { %778 = vrot.lane.b32.xlu0 %v776_v53, %s3748_s3 }
 0x8b6   :  { %3402 = vrcp.f32 %v769_v62  ;;  %v1140_v62 = vld [vmem:[#allocation6 + $0x50] sm:$0xff] }
 0x8c3   :  { %v3403_v54 = vpop.eup %3402 }
 0x927   :  { %v779_v63 = vpop.permute.xlu0 %778 }
 0x928   :  { %v781_v32 = vadd.f32 %v779_v63, %v775_v58  ;;  %v1139_v63 = vld [vmem:[#allocation6 + $0x48] sm:$0xff] }
 0x92a   :  { %3404 = vtanh.f32 %v781_v32 }
 0x937   :  { %v3405_v0 = vpop.eup %3404 }
 0x938   :  { %v783_v8 = vmul.f32 %v3405_v0, %v3403_v54  ;;  %v1137_v54 = vld [vmem:[#allocation6 + $0x38] sm:$0xff]  ;;  %v1136_v0 = vld [vmem:[#allocation6 + $0x30] sm:$0xff] }
 0x93a   :  { %785 = vrot.lane.b32.xlu1 %v783_v8, %s3748_s3  ;;  %v1135_v8 = vld [vmem:[#allocation6 + $0x28] sm:$0xff] }
 0x9ac   :  { %v786_v10 = vpop.permute.xlu1 %785 }
 0x9ad   :  { %788 = vst.msk [vmem:[#allocation2 + $0x8] sm:$0x3] %vm337_vm2, %v786_v10  ;;  %3247 = vmatmul.mubr.msk.f32.vlgmr.msra.gmra.mxu0 %vm234_vm3, %v786_v10 }
 0x9ae   :  { %1036 = vmatpush1.msra.mxu0 %v3852_v3  ;;  %1083 = vmatprep.mubr.f32.mxu0 %v3747_v1 }
 0x9af   :  { %1037 = vmatprep.subr.mxu0 %v3854_v4 }
 0x9b0   :  { %1038 = vmatpush1.msra.mxu0 %v3857_v5 }
 0x9b1   :  { %1039 = vmatprep.subr.mxu0 %v3860_v6 }
 0x9b2   :  { %1040 = vmatpush1.msra.mxu0 %v3863_v7 }
 0x9b3   :  { %1041 = vmatprep.subr.mxu0 %v3869_v9 }
 0x9b4   :  { %1042 = vmatpush1.msra.mxu0 %v3878_v12 }
 0x9b5   :  { %1043 = vmatprep.subr.mxu0 %v3881_v13 }
 0x9b6   :  { %1044 = vmatpush1.msra.mxu0 %v3885_v14 }
 0x9b7   :  { %1045 = vmatprep.subr.mxu0 %v3889_v15 }
 0x9b8   :  { %1046 = vmatpush1.msra.mxu0 %v3893_v16  ;;  %v884_v16 = vrot.slane %v781_v32, 6  ;;  %v1138_v32 = vld [vmem:[#allocation6 + $0x40] sm:$0xff] }
 0x9b9   :  { %1047 = vmatprep.subr.mxu0 %v3897_v17 }
 0x9ba   :  { %1048 = vmatpush1.msra.mxu0 %v3901_v18 }
 0x9bb   :  { %1049 = vmatprep.subr.mxu0 %v3905_v19 }
 0x9bc   :  { %1050 = vmatpush1.msra.mxu0 %v3909_v20 }
 0x9bd   :  { %1273 = vmatprep.subr.mxu0 %v4116_v56 }
 0xa6d   :  { %v857_v3 = vpop.f32.mrf.mxu0 }
 0xa6e   :  { %v864_v4 = vrot.slane %v857_v3, 6  ;;  %v1134_v3 = vld [vmem:[#allocation6 + $0x20] sm:$0xff] }
 0xa6f   :  { %v859_v7 = vpop.f32.mrf.mxu0 }
 0xa70   :  { %v868_v5 = vadd.f32 %v864_v4, %v4072_v45  ;;  %v865_v9 = vrot.slane %v859_v7, 6  ;;  %v1132_v7 = vld [vmem:[#allocation6 + $0x10] sm:$0xff] }
 0xa72   :  { %v3248_v6 = vmul.f32 -1.442695, %v868_v5  ;;  %v869_v12 = vadd.f32 %v865_v9, %v4077_v50  ;;  %v1133_v5 = vld [vmem:[#allocation6 + $0x18] sm:$0xff]  ;;  %v1131_v9 = vld [vmem:[#allocation6 + $0x8] sm:$0xff] }
 0xa74   :  { %3406 = vpow2.f32 %v3248_v6  ;;  %v3249_v20 = vmul.f32 -1.442695, %v869_v12 }
 0xa75   :  { %3408 = vtanh.f32 %v869_v12 }
 0xa81   :  { %v3407_v13 = vpop.eup %3406 }
 0xa82   :  { %v873_v14 = vadd.f32 1.0, %v3407_v13  ;;  %v3409_v15 = vpop.eup %3408  ;;  %v1130_v13 = vld [vmem:[#allocation6] sm:$0xff] }
 0xa84   :  { %3410 = vrcp.f32 %v873_v14  ;;  %v4131_v14 = vld [vmem:[#allocation8 + $0x70] sm:$0xff] }
 0xa85   :  { %3412 = vpow2.f32 %v3249_v20  ;;  %v4146_v20 = vld [vmem:[#allocation8 + $0x48] sm:$0xff] }
 0xa91   :  { %v3411_v17 = vpop.eup %3410 }
 0xa92   :  { %v887_v18 = vmul.f32 %v3411_v17, %v3409_v15  ;;  %v886_v19 = vmul.f32 %v3411_v17, %v884_v16  ;;  %v3413_v11 = vpop.eup %3412  ;;  %v4133_v16 = vld [vmem:[#allocation8 + $0x68] sm:$0xff]  ;;  %v4136_v17 = vld [vmem:[#allocation8 + $0x60] sm:$0xff] }
 0xa93   :  { %v880_v21 = vadd.f32 1.0, %v3413_v11  ;;  %v4150_v11 = vld [vmem:[#allocation8 + $0x40] sm:$0xff] }
 0xa94   :  { %889 = vrot.lane.b32.xlu0 %v887_v18, %s3748_s3  ;;  %v4139_v18 = vld [vmem:[#allocation8 + $0x58] sm:$0xff] }
 0xa95   :  { %3414 = vrcp.f32 %v880_v21  ;;  %v4153_v21 = vld [vmem:[#allocation8 + $0x38] sm:$0xff] }
 0xaa2   :  { %v3415_v26 = vpop.eup %3414 }
 0xb06   :  { %v890_v22 = vpop.permute.xlu0 %889 }
 0xb07   :  { %v892_v24 = vadd.f32 %v890_v22, %v886_v19  ;;  %v4143_v19 = vld [vmem:[#allocation8 + $0x50] sm:$0xff] }
 0xb08   :  { %v4156_v22 = vld [vmem:[#allocation8 + $0x30] sm:$0xff] }
 0xb09   :  { %3416 = vtanh.f32 %v892_v24  ;;  %v998_v44 = vrot.slane %v892_v24, 6  ;;  %v4159_v24 = vld [vmem:[#allocation8 + $0x28] sm:$0xff] }
 0xb16   :  { %v3417_v28 = vpop.eup %3416 }
 0xb17   :  { %v4103_v29 = vmul.f32 %v3417_v28, %v3415_v26  ;;  %v4162_v26 = vld [vmem:[#allocation8 + $0x20] sm:$0xff]  ;;  %v4165_v28 = vld [vmem:[#allocation8 + $0x18] sm:$0xff] }
 0xb19   :  { %v900_v30 = vrot.slane %v4103_v29, 2 }
 0xb1b   :  { %901 = vrot.lane.b32.xlu1 %v900_v30, %s3748_s3  ;;  %v4168_v30 = vld [vmem:[#allocation8 + $0x10] sm:$0xff] }
 0xb8d   :  { %v902_v33 = vpop.permute.xlu1 %901 }
 0xb8e   :  { %3250 = vmatmul.mubr.msk.f32.vlgmr.msra.gmra.mxu1 %vm234_vm3, %v902_v33 }
 0xb8f   :  { %1244 = vmatprep.mubr.f32.mxu1 %v3747_v1  ;;  %1197 = vmatpush1.msra.mxu1 %v1144_v51 }
 0xb90   :  { %1198 = vmatprep.subr.mxu1 %v1143_v52 }
 0xb91   :  { %1199 = vmatpush1.msra.mxu1 %v1142_v55 }
 0xb92   :  { %1200 = vmatprep.subr.mxu1 %v1141_v60 }
 0xb93   :  { %1201 = vmatpush1.msra.mxu1 %v1140_v62 }
 0xb94   :  { %1202 = vmatprep.subr.mxu1 %v1139_v63 }
 0xb95   :  { %1203 = vmatpush1.msra.mxu1 %v1138_v32 }
 0xb96   :  { %1204 = vmatprep.subr.mxu1 %v1137_v54 }
 0xb97   :  { %1205 = vmatpush1.msra.mxu1 %v1136_v0 }
 0xb98   :  { %1206 = vmatprep.subr.mxu1 %v1135_v8 }
 0xb99   :  { %1207 = vmatpush1.msra.mxu1 %v1134_v3 }
 0xb9a   :  { %1208 = vmatprep.subr.mxu1 %v1133_v5 }
 0xb9b   :  { %1209 = vmatpush1.msra.mxu1 %v1132_v7 }
 0xb9c   :  { %1210 = vmatprep.subr.mxu1 %v1131_v9 }
 0xb9d   :  { %1211 = vmatpush1.msra.mxu1 %v1130_v13 }
 0xb9e   :  { %1375 = vmatprep.subr.mxu1 %v4116_v56 }
 0xc4e   :  { %v971_v36 = vpop.f32.mrf.mxu1 }
 0xc4f   :  { %v978_v37 = vrot.slane %v971_v36, 4  ;;  %v4171_v36 = vld [vmem:[#allocation8 + $0x8] sm:$0xff] }
 0xc50   :  { %v973_v38 = vpop.f32.mrf.mxu1 }
 0xc51   :  { %v982_v2 = vadd.f32 %v978_v37, %v4072_v45  ;;  %v979_v39 = vrot.slane %v973_v38, 4  ;;  %v4175_v37 = vld [vmem:[#allocation8] sm:$0xff] }
 0xc53   :  { %v3251_v27 = vmul.f32 -1.442695, %v982_v2  ;;  %v983_v40 = vadd.f32 %v979_v39, %v4077_v50 }
 0xc55   :  { %3418 = vpow2.f32 %v3251_v27  ;;  %v3252_v57 = vmul.f32 -1.442695, %v983_v40 }
 0xc56   :  { %3420 = vtanh.f32 %v983_v40  ;;  %v1162_v40 = vld [vmem:[%s4698_s6] sm:$0x3] }
 0xc57   :  { %v4229_v55 = vrot.slane %v1162_v40, %v3957_v31 }
 0xc62   :  { %v3419_v35 = vpop.eup %3418 }
 0xc63   :  { %v987_v41 = vadd.f32 1.0, %v3419_v35  ;;  %v3421_v43 = vpop.eup %3420  ;;  %v4221_v35 = vrot.slane %v1162_v40, %v3945_v23 }
 0xc65   :  { %3422 = vrcp.f32 %v987_v41 }
 0xc66   :  { %3424 = vpow2.f32 %v3252_v57 }
 0xc72   :  { %v3423_v46 = vpop.eup %3422 }
 0xc73   :  { %v1001_v47 = vmul.f32 %v3423_v46, %v3421_v43  ;;  %v1000_v48 = vmul.f32 %v3423_v46, %v998_v44  ;;  %v3425_v25 = vpop.eup %3424 }
 0xc74   :  { %v994_v53 = vadd.f32 1.0, %v3425_v25 }
 0xc75   :  { %1003 = vrot.lane.b32.xlu0 %v1001_v47, %s3748_s3 }
 0xc76   :  { %3426 = vrcp.f32 %v994_v53 }
 0xc79   :  { %446 = vrot.lane.b32.xlu0 %v3999_v34, %s3748_s3 }
 0xc7d   :  { %676 = vrot.lane.b32.xlu0 %v4049_v42, %s3748_s3 }
 0xc83   :  { %v3427_v10 = vpop.eup %3426 }
 0xce7   :  { %v1004_v34 = vpop.permute.xlu0 %1003 }
 0xce8   :  { %v4119_v58 = vadd.f32 %v1004_v34, %v1000_v48 }
 0xcea   :  { %3428 = vtanh.f32 %v4119_v58 }
 0xceb   :  { %v447_v42 = vpop.permute.xlu0 %446 }
 0xcec   :  { %450 = vst.msk [vmem:[#allocation2] sm:$0xc] %vm449_vm4, %v447_v42 }
 0xcef   :  { %v677_v59 = vpop.permute.xlu0 %676 }
 0xcf0   :  { %680 = vst.msk [vmem:[#allocation2] sm:$0xc0] %vm679_vm5, %v677_v59 }
 0xcf7   :  { %v3429_v4 = vpop.eup %3428 }
 0xcf8   :  { %v4124_v6 = vmul.f32 %v3429_v4, %v3427_v10 }
 0xcfa   :  { %v1014_v12 = vrot.slane %v4124_v6, 4 }
 0xcfc   :  { %1015 = vrot.lane.b32.xlu1 %v1014_v12, %s3748_s3 }
 0xd00   :  { %561 = vrot.lane.b32.xlu1 %v4024_v61, %s3748_s3 }
 0xd6e   :  { %v1016_v15 = vpop.permute.xlu1 %1015 }
 0xd6f   :  { %3253 = vmatmul.mubr.msk.f32.vlgmr.msra.gmra.mxu0 %vm234_vm3, %v1016_v15 }
 0xd70   :  { %1274 = vmatpush1.msra.mxu0 %v4131_v14  ;;  %1321 = vmatprep.mubr.f32.mxu0 %v3747_v1 }
 0xd71   :  { %1275 = vmatprep.subr.mxu0 %v4133_v16 }
 0xd72   :  { %1276 = vmatpush1.msra.mxu0 %v4136_v17  ;;  %v562_v61 = vpop.permute.xlu1 %561 }
 0xd73   :  { %1277 = vmatprep.subr.mxu0 %v4139_v18  ;;  %565 = vst.msk [vmem:[#allocation2] sm:$0x30] %vm564_vm6, %v562_v61 }
 0xd74   :  { %1278 = vmatpush1.msra.mxu0 %v4143_v19 }
 0xd75   :  { %1279 = vmatprep.subr.mxu0 %v4146_v20 }
 0xd76   :  { %1280 = vmatpush1.msra.mxu0 %v4150_v11 }
 0xd77   :  { %1281 = vmatprep.subr.mxu0 %v4153_v21 }
 0xd78   :  { %1282 = vmatpush1.msra.mxu0 %v4156_v22 }
 0xd79   :  { %1283 = vmatprep.subr.mxu0 %v4159_v24 }
 0xd7a   :  { %1284 = vmatpush1.msra.mxu0 %v4162_v26  ;;  %v1128_v33 = vld [vmem:[#allocation2] sm:$0xff] }
 0xd7b   :  { %1285 = vmatprep.subr.mxu0 %v4165_v28  ;;  %3256 = vmatmul.mubr.msk.f32.vlgmr.msra.gmra.mxu1 %vm234_vm3, %v1128_v33 }
 0xd7c   :  { %1286 = vmatpush1.msra.mxu0 %v4168_v30  ;;  %1376 = vmatpush1.msra.mxu1 %v4131_v14 }
 0xd7d   :  { %1287 = vmatprep.subr.mxu0 %v4171_v36  ;;  %1377 = vmatprep.subr.mxu1 %v4133_v16 }
 0xd7e   :  { %1288 = vmatpush1.msra.mxu0 %v4175_v37  ;;  %1378 = vmatpush1.msra.mxu1 %v4136_v17 }
 0xd7f   :  { %1322 = vmatmul.mubr.f32.vlgmr.msra.gmra.mxu0 %v3747_v1  ;;  %1379 = vmatprep.subr.mxu1 %v4139_v18 }
 0xd80   :  { %1380 = vmatpush1.msra.mxu1 %v4143_v19  ;;  %1250 = vmatprep.mubr.f32.mxu1 %v3747_v1 }
 0xd81   :  { %1381 = vmatprep.subr.mxu1 %v4146_v20  ;;  %1489 = vmatprep.subr.mxu0 %v4116_v56 }
 0xd82   :  { %1382 = vmatpush1.msra.mxu1 %v4150_v11  ;;  %1490 = vmatpush1.msra.mxu0 %v4131_v14 }
 0xd83   :  { %1383 = vmatprep.subr.mxu1 %v4153_v21  ;;  %1491 = vmatprep.subr.mxu0 %v4133_v16 }
 0xd84   :  { %1384 = vmatpush1.msra.mxu1 %v4156_v22  ;;  %1492 = vmatpush1.msra.mxu0 %v4136_v17 }
 0xd85   :  { %1385 = vmatprep.subr.mxu1 %v4159_v24  ;;  %1493 = vmatprep.subr.mxu0 %v4139_v18 }
 0xd86   :  { %1386 = vmatpush1.msra.mxu1 %v4162_v26  ;;  %1494 = vmatpush1.msra.mxu0 %v4143_v19 }
 0xd87   :  { %1387 = vmatprep.subr.mxu1 %v4165_v28  ;;  %1495 = vmatprep.subr.mxu0 %v4146_v20 }
 0xd88   :  { %1388 = vmatpush1.msra.mxu1 %v4168_v30  ;;  %1496 = vmatpush1.msra.mxu0 %v4150_v11 }
 0xd89   :  { %1389 = vmatprep.subr.mxu1 %v4171_v36  ;;  %1497 = vmatprep.subr.mxu0 %v4153_v21 }
 0xd8a   :  { %1390 = vmatpush1.msra.mxu1 %v4175_v37  ;;  %1498 = vmatpush1.msra.mxu0 %v4156_v22 }
 0xd8b   :  { %1499 = vmatprep.subr.mxu0 %v4159_v24  ;;  %1537 = vmatprep.mubr.f32.mxu0 %v3747_v1 }
 0xd8c   :  { %1500 = vmatpush1.msra.mxu0 %v4162_v26  ;;  %1603 = vmatprep.subr.mxu1 %v4116_v56 }
 0xd8d   :  { %1501 = vmatprep.subr.mxu0 %v4165_v28 }
 0xd8e   :  { %1502 = vmatpush1.msra.mxu0 %v4168_v30 }
 0xd8f   :  { %1503 = vmatprep.subr.mxu0 %v4171_v36 }
 0xd90   :  { %1504 = vmatpush1.msra.mxu0 %v4175_v37 }
 0xd91   :  { %1717 = vmatprep.subr.mxu0 %v4116_v56 }
 0xe2f   :  { %v1085_v2 = vpop.f32.mrf.mxu0 }
 0xe30   :  { %v1092_v27 = vrot.slane %v1085_v2, 2 }
 0xe31   :  { %v1087_v41 = vpop.f32.mrf.mxu0 }
 0xe32   :  { %v1096_v38 = vadd.f32 %v1092_v27, %v4072_v45  ;;  %v1093_v46 = vrot.slane %v1087_v41, 2 }
 0xe34   :  { %v3254_v39 = vmul.f32 -1.442695, %v1096_v38  ;;  %v1097_v45 = vadd.f32 %v1093_v46, %v4077_v50  ;;  %v1112_v50 = vrot.slane %v4119_v58, 6 }
 0xe36   :  { %3430 = vpow2.f32 %v3254_v39  ;;  %v3255_v58 = vmul.f32 -1.442695, %v1097_v45 }
 0xe3b   :  { %v1246_v43 = vpop.f32.mrf.mxu1 }
 0xe3c   :  { %v4224_v44 = vadd.f32 %v1246_v43, %v4221_v35 }
 0xe3d   :  { %v1248_v57 = vpop.f32.mrf.mxu1 }
 0xe3e   :  { %v4232_v25 = vadd.f32 %v1248_v57, %v4229_v55 }
 0xe3f   :  { %v1323_v47 = vpop.f32.mrf.mxu0 }
 0xe40   :  { %v1328_v48 = vadd.f32 %v1323_v47, %v4224_v44 }
 0xe41   :  { %v1325_v53 = vpop.f32.mrf.mxu0 }
 0xe42   :  { %v3258_v49 = vmul.f32 -1.442695, %v1328_v48  ;;  %v1329_v34 = vadd.f32 %v1325_v53, %v4232_v25 }
 0xe43   :  { %v3431_v51 = vpop.eup %3430 }
 0xe44   :  { %v1101_v52 = vadd.f32 1.0, %v3431_v51  ;;  %3432 = vpow2.f32 %v3258_v49  ;;  %v3259_v10 = vmul.f32 -1.442695, %v1329_v34 }
 0xe45   :  { %3434 = vtanh.f32 %v1097_v45 }
 0xe46   :  { %3436 = vrcp.f32 %v1101_v52 }
 0xe47   :  { %3438 = vtanh.f32 %v1329_v34 }
 0xe51   :  { %v3433_v42 = vpop.eup %3432 }
 0xe52   :  { %v3435_v59 = vpop.eup %3434  ;;  %v1333_v60 = vadd.f32 1.0, %v3433_v42 }
 0xe53   :  { %v3437_v62 = vpop.eup %3436 }
 0xe54   :  { %3440 = vrcp.f32 %v1333_v60  ;;  %v1115_v63 = vmul.f32 %v3437_v62, %v3435_v59  ;;  %v1114_v32 = vmul.f32 %v3437_v62, %v1112_v50  ;;  %v3439_v54 = vpop.eup %3438 }
 0xe55   :  { %3442 = vpow2.f32 %v3255_v58 }
 0xe56   :  { %1117 = vrot.lane.b32.xlu1 %v1115_v63, %s3748_s3  ;;  %3444 = vpow2.f32 %v3259_v10 }
 0xe5a   :  { %896 = vrot.lane.b32.xlu1 %v4103_v29, %s3748_s3 }
 0xe61   :  { %v3441_v0 = vpop.eup %3440 }
 0xe62   :  { %v1344_v8 = vmul.f32 %v3441_v0, %v3439_v54  ;;  %v3443_v3 = vpop.eup %3442  ;;  %v1343_v13 = vmul.f32 0.0, %v3441_v0 }
 0xe63   :  { %v1108_v4 = vadd.f32 1.0, %v3443_v3  ;;  %v3445_v29 = vpop.eup %3444 }
 0xe64   :  { %1346 = vrot.lane.b32.xlu0 %v1344_v8, %s3748_s3  ;;  %v1340_v12 = vadd.f32 1.0, %v3445_v29 }
 0xe65   :  { %3446 = vrcp.f32 %v1108_v4 }
 0xe68   :  { %1010 = vrot.lane.b32.xlu0 %v4124_v6, %s3748_s3 }
 0xe72   :  { %v3447_v61 = vpop.eup %3446 }
 0xec8   :  { %v1118_v5 = vpop.permute.xlu1 %1117 }
 0xec9   :  { %v1120_v7 = vadd.f32 %v1118_v5, %v1114_v32 }
 0xecb   :  { %3448 = vtanh.f32 %v1120_v7 }
 0xecc   :  { %v897_v9 = vpop.permute.xlu1 %896  ;;  %3450 = vrcp.f32 %v1340_v12 }
 0xecd   :  { %899 = vst.msk [vmem:[#allocation2 + $0x8] sm:$0xc] %vm449_vm4, %v897_v9 }
 0xed6   :  { %v1347_v15 = vpop.permute.xlu0 %1346 }
 0xed7   :  { %v1349_v33 = vadd.f32 %v1347_v15, %v1343_v13 }
 0xed8   :  { %v3449_v6 = vpop.eup %3448 }
 0xed9   :  { %3452 = vtanh.f32 %v1349_v33  ;;  %v1122_v2 = vmul.f32 %v3449_v6, %v3447_v61  ;;  %v3451_v38 = vpop.eup %3450  ;;  %v1452_v60 = vrot.slane %v1349_v33, 6 }
 0xeda   :  { %v1011_v27 = vpop.permute.xlu0 %1010 }
 0xedb   :  { %1013 = vst.msk [vmem:[#allocation2 + $0x8] sm:$0x30] %vm564_vm6, %v1011_v27  ;;  %1124 = vrot.lane.b32.xlu1 %v1122_v2, %s3748_s3 }
 0xee6   :  { %v3453_v39 = vpop.eup %3452 }
 0xee7   :  { %v1351_v40 = vmul.f32 %v3453_v39, %v3451_v38 }
 0xee9   :  { %1353 = vrot.lane.b32.xlu0 %v1351_v40, %s3748_s3 }
 0xf4d   :  { %v1125_v41 = vpop.permute.xlu1 %1124 }
 0xf4e   :  { %1127 = vst.msk [vmem:[#allocation2 + $0x8] sm:$0xc0] %vm679_vm5, %v1125_v41 }
 0xf55   :  { %v1129_v43 = vld [vmem:[#allocation2 + $0x8] sm:$0xff] }
 0xf56   :  { %3257 = vmatmul.mubr.msk.f32.gmra.mxu1 %vm234_vm3, %v1129_v43 }
 0xf57   :  { %1423 = vmatprep.mubr.f32.mxu1 %v3747_v1 }
 0xf5b   :  { %v1354_v46 = vpop.permute.xlu0 %1353 }
 0xf5c   :  { %1356 = vst.msk [vmem:[#allocation2] sm:$0x3] %vm337_vm2, %v1354_v46  ;;  %3260 = vmatmul.mubr.msk.f32.vlgmr.msra.gmra.mxu1 %vm234_vm3, %v1354_v46 }
 0xf5d   :  { %1604 = vmatpush1.msra.mxu1 %v4131_v14  ;;  %1651 = vmatprep.mubr.f32.mxu1 %v3747_v1 }
 0xf5e   :  { %1605 = vmatprep.subr.mxu1 %v4133_v16 }
 0xf5f   :  { %1606 = vmatpush1.msra.mxu1 %v4136_v17 }
 0xf60   :  { %1607 = vmatprep.subr.mxu1 %v4139_v18 }
 0xf61   :  { %1608 = vmatpush1.msra.mxu1 %v4143_v19 }
 0xf62   :  { %1609 = vmatprep.subr.mxu1 %v4146_v20 }
 0xf63   :  { %1610 = vmatpush1.msra.mxu1 %v4150_v11 }
 0xf64   :  { %1611 = vmatprep.subr.mxu1 %v4153_v21 }
 0xf65   :  { %1612 = vmatpush1.msra.mxu1 %v4156_v22 }
 0xf66   :  { %1613 = vmatprep.subr.mxu1 %v4159_v24 }
 0xf67   :  { %1614 = vmatpush1.msra.mxu1 %v4162_v26 }
 0xf68   :  { %1615 = vmatprep.subr.mxu1 %v4165_v28 }
 0xf69   :  { %1616 = vmatpush1.msra.mxu1 %v4168_v30 }
 0xf6a   :  { %1617 = vmatprep.subr.mxu1 %v4171_v36 }
 0xf6b   :  { %1618 = vmatpush1.msra.mxu1 %v4175_v37 }
 0xf6c   :  { %1822 = vmatprep.subr.mxu1 %v4116_v56 }
0x1016   :  { %v4268_v47 = vpop.f32.mrf.mxu1 }
0x1018   :  { %v4270_v48 = vpop.f32.mrf.mxu1 }
0x101c   :  { %v1425_v45 = vpop.f32.mrf.mxu1 }
0x101d   :  { %v1432_v49 = vrot.slane %v1425_v45, 6 }
0x101e   :  { %v1427_v57 = vpop.f32.mrf.mxu1 }
0x101f   :  { %v1436_v51 = vadd.f32 %v1432_v49, %v4224_v44  ;;  %v1433_v53 = vrot.slane %v1427_v57, 6 }
0x1021   :  { %v3261_v52 = vmul.f32 -1.442695, %v1436_v51  ;;  %v1437_v34 = vadd.f32 %v1433_v53, %v4232_v25 }
0x1023   :  { %3454 = vpow2.f32 %v3261_v52  ;;  %v3262_v54 = vmul.f32 -1.442695, %v1437_v34 }
0x1024   :  { %3456 = vtanh.f32 %v1437_v34 }
0x1030   :  { %v3455_v42 = vpop.eup %3454 }
0x1031   :  { %v1441_v59 = vadd.f32 1.0, %v3455_v42  ;;  %v3457_v50 = vpop.eup %3456 }
0x1033   :  { %3458 = vrcp.f32 %v1441_v59 }
0x1034   :  { %3460 = vpow2.f32 %v3262_v54 }
0x1040   :  { %v3459_v62 = vpop.eup %3458 }
0x1041   :  { %v1455_v63 = vmul.f32 %v3459_v62, %v3457_v50  ;;  %v1454_v32 = vmul.f32 %v3459_v62, %v1452_v60  ;;  %v3461_v0 = vpop.eup %3460 }
0x1042   :  { %v1448_v8 = vadd.f32 1.0, %v3461_v0 }
0x1043   :  { %1457 = vrot.lane.b32.xlu1 %v1455_v63, %s3748_s3 }
0x1044   :  { %3462 = vrcp.f32 %v1448_v8 }
0x1051   :  { %v3463_v3 = vpop.eup %3462 }
0x10b5   :  { %v1458_v58 = vpop.permute.xlu1 %1457 }
0x10b6   :  { %v1460_v10 = vadd.f32 %v1458_v58, %v1454_v32 }
0x10b8   :  { %3464 = vtanh.f32 %v1460_v10  ;;  %v1566_v39 = vrot.slane %v1460_v10, 6 }
0x10c5   :  { %v3465_v4 = vpop.eup %3464 }
0x10c6   :  { %v4275_v5 = vmul.f32 %v3465_v4, %v3463_v3 }
0x10c8   :  { %v1468_v7 = vrot.slane %v4275_v5, 2 }
0x10ca   :  { %1469 = vrot.lane.b32.xlu0 %v1468_v7, %s3748_s3 }
0x113c   :  { %v1470_v9 = vpop.permute.xlu0 %1469 }
0x113d   :  { %3263 = vmatmul.mubr.msk.f32.vlgmr.msra.gmra.mxu0 %vm234_vm3, %v1470_v9 }
0x113e   :  { %1718 = vmatpush1.msra.mxu0 %v4131_v14  ;;  %1765 = vmatprep.mubr.f32.mxu0 %v3747_v1 }
0x113f   :  { %1719 = vmatprep.subr.mxu0 %v4133_v16 }
0x1140   :  { %1720 = vmatpush1.msra.mxu0 %v4136_v17 }
0x1141   :  { %1721 = vmatprep.subr.mxu0 %v4139_v18 }
0x1142   :  { %1722 = vmatpush1.msra.mxu0 %v4143_v19 }
0x1143   :  { %1723 = vmatprep.subr.mxu0 %v4146_v20 }
0x1144   :  { %1724 = vmatpush1.msra.mxu0 %v4150_v11 }
0x1145   :  { %1725 = vmatprep.subr.mxu0 %v4153_v21 }
0x1146   :  { %1726 = vmatpush1.msra.mxu0 %v4156_v22 }
0x1147   :  { %1727 = vmatprep.subr.mxu0 %v4159_v24 }
0x1148   :  { %1728 = vmatpush1.msra.mxu0 %v4162_v26 }
0x1149   :  { %1729 = vmatprep.subr.mxu0 %v4165_v28 }
0x114a   :  { %1730 = vmatpush1.msra.mxu0 %v4168_v30 }
0x114b   :  { %1731 = vmatprep.subr.mxu0 %v4171_v36 }
0x114c   :  { %1732 = vmatpush1.msra.mxu0 %v4175_v37 }
0x114d   :  { %1936 = vmatprep.subr.mxu0 %v4116_v56 }
0x11fd   :  { %v1539_v29 = vpop.f32.mrf.mxu0 }
0x11fe   :  { %v1546_v12 = vrot.slane %v1539_v29, 4 }
0x11ff   :  { %v1541_v61 = vpop.f32.mrf.mxu0 }
0x1200   :  { %v1550_v13 = vadd.f32 %v1546_v12, %v4224_v44  ;;  %v1547_v33 = vrot.slane %v1541_v61, 4 }
0x1202   :  { %v3264_v15 = vmul.f32 -1.442695, %v1550_v13  ;;  %v1551_v6 = vadd.f32 %v1547_v33, %v4232_v25 }
0x1204   :  { %3466 = vpow2.f32 %v3264_v15  ;;  %v3265_v46 = vmul.f32 -1.442695, %v1551_v6 }
0x1205   :  { %3468 = vtanh.f32 %v1551_v6 }
0x1211   :  { %v3467_v2 = vpop.eup %3466 }
0x1212   :  { %v1555_v27 = vadd.f32 1.0, %v3467_v2  ;;  %v3469_v38 = vpop.eup %3468  ;;  %v4348_v2 = vadd.f32 %v4268_v47, %v4221_v35 }
0x1214   :  { %3470 = vrcp.f32 %v1555_v27 }
0x1215   :  { %3472 = vpow2.f32 %v3265_v46 }
0x1221   :  { %v3471_v40 = vpop.eup %3470 }
0x1222   :  { %v1569_v41 = vmul.f32 %v3471_v40, %v3469_v38  ;;  %v1568_v43 = vmul.f32 %v3471_v40, %v1566_v39  ;;  %v3473_v45 = vpop.eup %3472 }
0x1223   :  { %v1562_v49 = vadd.f32 1.0, %v3473_v45 }
0x1224   :  { %1571 = vrot.lane.b32.xlu1 %v1569_v41, %s3748_s3  ;;  %v4353_v41 = vadd.f32 %v4270_v48, %v4229_v55 }
0x1225   :  { %3474 = vrcp.f32 %v1562_v49 }
0x1232   :  { %v3475_v57 = vpop.eup %3474 }
0x1296   :  { %v1572_v51 = vpop.permute.xlu1 %1571 }
0x1297   :  { %v1574_v52 = vadd.f32 %v1572_v51, %v1568_v43 }
0x1299   :  { %3476 = vtanh.f32 %v1574_v52  ;;  %v1680_v3 = vrot.slane %v1574_v52, 6 }
0x12a6   :  { %v3477_v53 = vpop.eup %3476 }
0x12a7   :  { %v4300_v34 = vmul.f32 %v3477_v53, %v3475_v57 }
0x12a9   :  { %v1582_v42 = vrot.slane %v4300_v34, 4 }
0x12ab   :  { %1583 = vrot.lane.b32.xlu0 %v1582_v42, %s3748_s3 }
0x131d   :  { %v1584_v59 = vpop.permute.xlu0 %1583 }
0x131e   :  { %3266 = vmatmul.mubr.msk.f32.vlgmr.msra.gmra.mxu1 %vm234_vm3, %v1584_v59 }
0x131f   :  { %1823 = vmatpush1.msra.mxu1 %v4131_v14  ;;  %1870 = vmatprep.mubr.f32.mxu1 %v3747_v1 }
0x1320   :  { %1824 = vmatprep.subr.mxu1 %v4133_v16 }
0x1321   :  { %1825 = vmatpush1.msra.mxu1 %v4136_v17 }
0x1322   :  { %1826 = vmatprep.subr.mxu1 %v4139_v18 }
0x1323   :  { %1827 = vmatpush1.msra.mxu1 %v4143_v19 }
0x1324   :  { %1828 = vmatprep.subr.mxu1 %v4146_v20 }
0x1325   :  { %1829 = vmatpush1.msra.mxu1 %v4150_v11 }
0x1326   :  { %1830 = vmatprep.subr.mxu1 %v4153_v21 }
0x1327   :  { %1831 = vmatpush1.msra.mxu1 %v4156_v22 }
0x1328   :  { %1832 = vmatprep.subr.mxu1 %v4159_v24 }
0x1329   :  { %1833 = vmatpush1.msra.mxu1 %v4162_v26 }
0x132a   :  { %1834 = vmatprep.subr.mxu1 %v4165_v28 }
0x132b   :  { %1835 = vmatpush1.msra.mxu1 %v4168_v30 }
0x132c   :  { %1836 = vmatprep.subr.mxu1 %v4171_v36 }
0x132d   :  { %1837 = vmatpush1.msra.mxu1 %v4175_v37 }
0x132e   :  { %2050 = vmatprep.subr.mxu1 %v4116_v56 }
0x13de   :  { %v1653_v50 = vpop.f32.mrf.mxu1 }
0x13df   :  { %v1660_v60 = vrot.slane %v1653_v50, 2 }
0x13e0   :  { %v1655_v32 = vpop.f32.mrf.mxu1 }
0x13e1   :  { %v1664_v62 = vadd.f32 %v1660_v60, %v4224_v44  ;;  %v1661_v54 = vrot.slane %v1655_v32, 2 }
0x13e3   :  { %v3267_v63 = vmul.f32 -1.442695, %v1664_v62  ;;  %v1665_v0 = vadd.f32 %v1661_v54, %v4232_v25 }
0x13e5   :  { %3478 = vpow2.f32 %v3267_v63  ;;  %v3268_v56 = vmul.f32 -1.442695, %v1665_v0 }
0x13e6   :  { %3480 = vtanh.f32 %v1665_v0 }
0x13f2   :  { %v3479_v8 = vpop.eup %3478 }
0x13f3   :  { %v1669_v58 = vadd.f32 1.0, %v3479_v8  ;;  %v3481_v10 = vpop.eup %3480 }
0x13f5   :  { %3482 = vrcp.f32 %v1669_v58 }
0x13f6   :  { %3484 = vpow2.f32 %v3268_v56 }
0x1402   :  { %v3483_v4 = vpop.eup %3482 }
0x1403   :  { %v1683_v7 = vmul.f32 %v3483_v4, %v3481_v10  ;;  %v1682_v9 = vmul.f32 %v3483_v4, %v1680_v3  ;;  %v3485_v44 = vpop.eup %3484 }
0x1404   :  { %v1676_v29 = vadd.f32 1.0, %v3485_v44 }
0x1405   :  { %1685 = vrot.lane.b32.xlu1 %v1683_v7, %s3748_s3 }
0x1406   :  { %3486 = vrcp.f32 %v1676_v29 }
0x1413   :  { %v3487_v25 = vpop.eup %3486 }
0x1477   :  { %v1686_v12 = vpop.permute.xlu1 %1685 }
0x1478   :  { %v1688_v13 = vadd.f32 %v1686_v12, %v1682_v9 }
0x147a   :  { %3488 = vtanh.f32 %v1688_v13  ;;  %v1788_v51 = vrot.slane %v1688_v13, 6 }
0x1487   :  { %v3489_v15 = vpop.eup %3488 }
0x1488   :  { %v4325_v61 = vmul.f32 %v3489_v15, %v3487_v25 }
0x148a   :  { %v1696_v33 = vrot.slane %v4325_v61, 6 }
0x148c   :  { %1697 = vrot.lane.b32.xlu0 %v1696_v33, %s3748_s3 }
0x14fe   :  { %v1698_v6 = vpop.permute.xlu0 %1697 }
0x14ff   :  { %3269 = vmatmul.mubr.msk.f32.vlgmr.msra.gmra.mxu0 %vm234_vm3, %v1698_v6 }
0x1500   :  { %1937 = vmatpush1.msra.mxu0 %v4131_v14  ;;  %1984 = vmatprep.mubr.f32.mxu0 %v3747_v1 }
0x1501   :  { %1938 = vmatprep.subr.mxu0 %v4133_v16 }
0x1502   :  { %1939 = vmatpush1.msra.mxu0 %v4136_v17 }
0x1503   :  { %1940 = vmatprep.subr.mxu0 %v4139_v18 }
0x1504   :  { %1941 = vmatpush1.msra.mxu0 %v4143_v19 }
0x1505   :  { %1942 = vmatprep.subr.mxu0 %v4146_v20 }
0x1506   :  { %1943 = vmatpush1.msra.mxu0 %v4150_v11 }
0x1507   :  { %1944 = vmatprep.subr.mxu0 %v4153_v21 }
0x1508   :  { %1945 = vmatpush1.msra.mxu0 %v4156_v22 }
0x1509   :  { %1946 = vmatprep.subr.mxu0 %v4159_v24 }
0x150a   :  { %1947 = vmatpush1.msra.mxu0 %v4162_v26 }
0x150b   :  { %1948 = vmatprep.subr.mxu0 %v4165_v28 }
0x150c   :  { %1949 = vmatpush1.msra.mxu0 %v4168_v30 }
0x150d   :  { %1950 = vmatprep.subr.mxu0 %v4171_v36 }
0x150e   :  { %1951 = vmatpush1.msra.mxu0 %v4175_v37 }
0x15bf   :  { %v1767_v27 = vpop.f32.mrf.mxu0 }
0x15c0   :  { %v1772_v38 = vadd.f32 %v1767_v27, %v4348_v2 }
0x15c1   :  { %v1769_v40 = vpop.f32.mrf.mxu0 }
0x15c2   :  { %v3270_v39 = vmul.f32 -1.442695, %v1772_v38  ;;  %v1773_v43 = vadd.f32 %v1769_v40, %v4353_v41  ;;  %v2160_v40 = vld [vmem:[#allocation9 + $0x78] sm:$0xff] }
0x15c3   :  { %2211 = vmatprep.subr.mxu0 %v2160_v40 }
0x15c4   :  { %3490 = vpow2.f32 %v3270_v39  ;;  %v3271_v57 = vmul.f32 -1.442695, %v1773_v43 }
0x15c5   :  { %3492 = vtanh.f32 %v1773_v43  ;;  %v2159_v43 = vld [vmem:[#allocation9 + $0x70] sm:$0xff] }
0x15d1   :  { %v3491_v46 = vpop.eup %3490 }
0x15d2   :  { %v1777_v45 = vadd.f32 1.0, %v3491_v46  ;;  %v3493_v49 = vpop.eup %3492  ;;  %v2158_v46 = vld [vmem:[#allocation9 + $0x68] sm:$0xff] }
0x15d4   :  { %3494 = vrcp.f32 %v1777_v45  ;;  %v2157_v45 = vld [vmem:[#allocation9 + $0x60] sm:$0xff] }
0x15d5   :  { %3496 = vpow2.f32 %v3271_v57 }
0x15e1   :  { %v3495_v35 = vpop.eup %3494 }
0x15e2   :  { %v1791_v47 = vmul.f32 %v3495_v35, %v3493_v49  ;;  %v1790_v52 = vmul.f32 %v3495_v35, %v1788_v51  ;;  %v3497_v53 = vpop.eup %3496  ;;  %v4392_v49 = vld [vmem:[#allocation11 + $0x78] sm:$0xff] }
0x15e3   :  { %v1784_v42 = vadd.f32 1.0, %v3497_v53  ;;  %v2156_v53 = vld [vmem:[#allocation9 + $0x58] sm:$0xff] }
0x15e4   :  { %1793 = vrot.lane.b32.xlu1 %v1791_v47, %s3748_s3 }
0x15e5   :  { %3498 = vrcp.f32 %v1784_v42  ;;  %v2155_v42 = vld [vmem:[#allocation9 + $0x50] sm:$0xff] }
0x15f2   :  { %v3499_v48 = vpop.eup %3498 }
0x1656   :  { %v1794_v59 = vpop.permute.xlu1 %1793 }
0x1657   :  { %v1796_v55 = vadd.f32 %v1794_v59, %v1790_v52  ;;  %v2154_v59 = vld [vmem:[#allocation9 + $0x48] sm:$0xff] }
0x1659   :  { %3500 = vtanh.f32 %v1796_v55 }
0x1666   :  { %v3501_v50 = vpop.eup %3500 }
0x1667   :  { %v1798_v60 = vmul.f32 %v3501_v50, %v3499_v48  ;;  %v2152_v48 = vld [vmem:[#allocation9 + $0x38] sm:$0xff]  ;;  %v2151_v50 = vld [vmem:[#allocation9 + $0x30] sm:$0xff] }
0x1669   :  { %1800 = vrot.lane.b32.xlu0 %v1798_v60, %s3748_s3  ;;  %v2150_v60 = vld [vmem:[#allocation9 + $0x28] sm:$0xff] }
0x16db   :  { %v1801_v62 = vpop.permute.xlu0 %1800 }
0x16dc   :  { %1803 = vst.msk [vmem:[#allocation2 + $0x8] sm:$0x3] %vm337_vm2, %v1801_v62  ;;  %3272 = vmatmul.mubr.msk.f32.vlgmr.msra.gmra.mxu1 %vm234_vm3, %v1801_v62 }
0x16dd   :  { %2051 = vmatpush1.msra.mxu1 %v4131_v14  ;;  %2098 = vmatprep.mubr.f32.mxu1 %v3747_v1 }
0x16de   :  { %2052 = vmatprep.subr.mxu1 %v4133_v16 }
0x16df   :  { %2053 = vmatpush1.msra.mxu1 %v4136_v17 }
0x16e0   :  { %2054 = vmatprep.subr.mxu1 %v4139_v18 }
0x16e1   :  { %2055 = vmatpush1.msra.mxu1 %v4143_v19 }
0x16e2   :  { %2056 = vmatprep.subr.mxu1 %v4146_v20 }
0x16e3   :  { %2057 = vmatpush1.msra.mxu1 %v4150_v11 }
0x16e4   :  { %2058 = vmatprep.subr.mxu1 %v4153_v21 }
0x16e5   :  { %2059 = vmatpush1.msra.mxu1 %v4156_v22 }
0x16e6   :  { %2060 = vmatprep.subr.mxu1 %v4159_v24 }
0x16e7   :  { %2061 = vmatpush1.msra.mxu1 %v4162_v26  ;;  %v1899_v26 = vrot.slane %v1796_v55, 6  ;;  %v2153_v55 = vld [vmem:[#allocation9 + $0x40] sm:$0xff] }
0x16e8   :  { %2062 = vmatprep.subr.mxu1 %v4165_v28 }
0x16e9   :  { %2063 = vmatpush1.msra.mxu1 %v4168_v30 }
0x16ea   :  { %2064 = vmatprep.subr.mxu1 %v4171_v36 }
0x16eb   :  { %2065 = vmatpush1.msra.mxu1 %v4175_v37 }
0x16ec   :  { %2288 = vmatprep.subr.mxu1 %v4392_v49 }
0x179c   :  { %v1872_v14 = vpop.f32.mrf.mxu1 }
0x179d   :  { %v1879_v16 = vrot.slane %v1872_v14, 6  ;;  %v2149_v14 = vld [vmem:[#allocation9 + $0x20] sm:$0xff] }
0x179e   :  { %v1874_v19 = vpop.f32.mrf.mxu1 }
0x179f   :  { %v1883_v17 = vadd.f32 %v1879_v16, %v4348_v2  ;;  %v1880_v20 = vrot.slane %v1874_v19, 6  ;;  %v2147_v19 = vld [vmem:[#allocation9 + $0x10] sm:$0xff] }
0x17a1   :  { %v3273_v18 = vmul.f32 -1.442695, %v1883_v17  ;;  %v1884_v11 = vadd.f32 %v1880_v20, %v4353_v41  ;;  %v2148_v17 = vld [vmem:[#allocation9 + $0x18] sm:$0xff]  ;;  %v2146_v20 = vld [vmem:[#allocation9 + $0x8] sm:$0xff] }
0x17a3   :  { %3502 = vpow2.f32 %v3273_v18  ;;  %v3274_v37 = vmul.f32 -1.442695, %v1884_v11 }
0x17a4   :  { %3504 = vtanh.f32 %v1884_v11 }
0x17b0   :  { %v3503_v21 = vpop.eup %3502 }
0x17b1   :  { %v1888_v22 = vadd.f32 1.0, %v3503_v21  ;;  %v3505_v24 = vpop.eup %3504  ;;  %v2145_v21 = vld [vmem:[#allocation9] sm:$0xff] }
0x17b3   :  { %3506 = vrcp.f32 %v1888_v22  ;;  %v4407_v22 = vld [vmem:[#allocation11 + $0x70] sm:$0xff] }
0x17b4   :  { %3508 = vpow2.f32 %v3274_v37  ;;  %v4422_v37 = vld [vmem:[#allocation11 + $0x48] sm:$0xff] }
0x17c0   :  { %v3507_v28 = vpop.eup %3506 }
0x17c1   :  { %v1902_v30 = vmul.f32 %v3507_v28, %v3505_v24  ;;  %v1901_v36 = vmul.f32 %v3507_v28, %v1899_v26  ;;  %v3509_v63 = vpop.eup %3508  ;;  %v4409_v26 = vld [vmem:[#allocation11 + $0x68] sm:$0xff]  ;;  %v4412_v28 = vld [vmem:[#allocation11 + $0x60] sm:$0xff] }
0x17c2   :  { %v1895_v32 = vadd.f32 1.0, %v3509_v63  ;;  %v4426_v63 = vld [vmem:[#allocation11 + $0x40] sm:$0xff] }
0x17c3   :  { %1904 = vrot.lane.b32.xlu1 %v1902_v30, %s3748_s3  ;;  %v4415_v30 = vld [vmem:[#allocation11 + $0x58] sm:$0xff] }
0x17c4   :  { %3510 = vrcp.f32 %v1895_v32  ;;  %v4429_v32 = vld [vmem:[#allocation11 + $0x38] sm:$0xff] }
0x17d1   :  { %v3511_v8 = vpop.eup %3510 }
0x1835   :  { %v1905_v54 = vpop.permute.xlu1 %1904 }
0x1836   :  { %v1907_v0 = vadd.f32 %v1905_v54, %v1901_v36  ;;  %v4419_v36 = vld [vmem:[#allocation11 + $0x50] sm:$0xff] }
0x1837   :  { %v4432_v54 = vld [vmem:[#allocation11 + $0x30] sm:$0xff] }
0x1838   :  { %3512 = vtanh.f32 %v1907_v0  ;;  %v2013_v6 = vrot.slane %v1907_v0, 6  ;;  %v4435_v0 = vld [vmem:[#allocation11 + $0x28] sm:$0xff] }
0x1845   :  { %v3513_v58 = vpop.eup %3512 }
0x1846   :  { %v4379_v10 = vmul.f32 %v3513_v58, %v3511_v8  ;;  %v4438_v8 = vld [vmem:[#allocation11 + $0x20] sm:$0xff]  ;;  %v4441_v58 = vld [vmem:[#allocation11 + $0x18] sm:$0xff] }
0x1848   :  { %v1915_v3 = vrot.slane %v4379_v10, 2 }
0x184a   :  { %1916 = vrot.lane.b32.xlu0 %v1915_v3, %s3748_s3  ;;  %v4444_v3 = vld [vmem:[#allocation11 + $0x10] sm:$0xff] }
0x18bc   :  { %v1917_v4 = vpop.permute.xlu0 %1916 }
0x18bd   :  { %3275 = vmatmul.mubr.msk.f32.vlgmr.msra.gmra.mxu0 %vm234_vm3, %v1917_v4 }
0x18be   :  { %2259 = vmatprep.mubr.f32.mxu0 %v3747_v1  ;;  %2212 = vmatpush1.msra.mxu0 %v2159_v43 }
0x18bf   :  { %2213 = vmatprep.subr.mxu0 %v2158_v46 }
0x18c0   :  { %2214 = vmatpush1.msra.mxu0 %v2157_v45 }
0x18c1   :  { %2215 = vmatprep.subr.mxu0 %v2156_v53 }
0x18c2   :  { %2216 = vmatpush1.msra.mxu0 %v2155_v42 }
0x18c3   :  { %2217 = vmatprep.subr.mxu0 %v2154_v59 }
0x18c4   :  { %2218 = vmatpush1.msra.mxu0 %v2153_v55 }
0x18c5   :  { %2219 = vmatprep.subr.mxu0 %v2152_v48 }
0x18c6   :  { %2220 = vmatpush1.msra.mxu0 %v2151_v50 }
0x18c7   :  { %2221 = vmatprep.subr.mxu0 %v2150_v60 }
0x18c8   :  { %2222 = vmatpush1.msra.mxu0 %v2149_v14 }
0x18c9   :  { %2223 = vmatprep.subr.mxu0 %v2148_v17 }
0x18ca   :  { %2224 = vmatpush1.msra.mxu0 %v2147_v19 }
0x18cb   :  { %2225 = vmatprep.subr.mxu0 %v2146_v20 }
0x18cc   :  { %2226 = vmatpush1.msra.mxu0 %v2145_v21 }
0x18cd   :  { %2388 = vmatprep.subr.mxu0 %v4392_v49 }
0x197d   :  { %v1986_v7 = vpop.f32.mrf.mxu0 }
0x197e   :  { %v1993_v9 = vrot.slane %v1986_v7, 4  ;;  %v4447_v7 = vld [vmem:[#allocation11 + $0x8] sm:$0xff] }
0x197f   :  { %v1988_v29 = vpop.f32.mrf.mxu0 }
0x1980   :  { %v1997_v56 = vadd.f32 %v1993_v9, %v4348_v2  ;;  %v1994_v12 = vrot.slane %v1988_v29, 4  ;;  %v4451_v9 = vld [vmem:[#allocation11] sm:$0xff] }
0x1982   :  { %v3276_v44 = vmul.f32 -1.442695, %v1997_v56  ;;  %v1998_v13 = vadd.f32 %v1994_v12, %v4353_v41 }
0x1984   :  { %3514 = vpow2.f32 %v3276_v44  ;;  %v3277_v51 = vmul.f32 -1.442695, %v1998_v13 }
0x1985   :  { %3516 = vtanh.f32 %v1998_v13  ;;  %v2177_v13 = vld [vmem:[%s4701_s9] sm:$0x3] }
0x1991   :  { %v3515_v25 = vpop.eup %3514 }
0x1992   :  { %v2002_v15 = vadd.f32 1.0, %v3515_v25  ;;  %v3517_v33 = vpop.eup %3516  ;;  %v4497_v25 = vrot.slane %v2177_v13, %v3945_v23  ;;  %v4505_v23 = vrot.slane %v2177_v13, %v3957_v31 }
0x1994   :  { %3518 = vrcp.f32 %v2002_v15 }
0x1995   :  { %3520 = vpow2.f32 %v3277_v51 }
0x19a1   :  { %v3519_v27 = vpop.eup %3518 }
0x19a2   :  { %v2016_v38 = vmul.f32 %v3519_v27, %v3517_v33  ;;  %v2015_v39 = vmul.f32 %v3519_v27, %v2013_v6  ;;  %v3521_v35 = vpop.eup %3520 }
0x19a3   :  { %v2009_v47 = vadd.f32 1.0, %v3521_v35 }
0x19a4   :  { %2018 = vrot.lane.b32.xlu1 %v2016_v38, %s3748_s3 }
0x19a5   :  { %3522 = vrcp.f32 %v2009_v47 }
0x19a8   :  { %1464 = vrot.lane.b32.xlu1 %v4275_v5, %s3748_s3 }
0x19ac   :  { %1692 = vrot.lane.b32.xlu1 %v4325_v61, %s3748_s3 }
0x19b2   :  { %v3523_v62 = vpop.eup %3522 }
0x1a16   :  { %v2019_v5 = vpop.permute.xlu1 %2018 }
0x1a17   :  { %v4395_v52 = vadd.f32 %v2019_v5, %v2015_v39 }
0x1a19   :  { %3524 = vtanh.f32 %v4395_v52 }
0x1a1a   :  { %v1465_v61 = vpop.permute.xlu1 %1464 }
0x1a1b   :  { %1467 = vst.msk [vmem:[#allocation2] sm:$0xc] %vm449_vm4, %v1465_v61 }
0x1a1e   :  { %v1693_v57 = vpop.permute.xlu1 %1692 }
0x1a1f   :  { %1695 = vst.msk [vmem:[#allocation2] sm:$0xc0] %vm679_vm5, %v1693_v57 }
0x1a26   :  { %v3525_v16 = vpop.eup %3524 }
0x1a27   :  { %v4400_v18 = vmul.f32 %v3525_v16, %v3523_v62 }
0x1a29   :  { %v2029_v11 = vrot.slane %v4400_v18, 4 }
0x1a2b   :  { %2030 = vrot.lane.b32.xlu0 %v2029_v11, %s3748_s3 }
0x1a2f   :  { %1578 = vrot.lane.b32.xlu0 %v4300_v34, %s3748_s3 }
0x1a9d   :  { %v2031_v24 = vpop.permute.xlu0 %2030 }
0x1a9e   :  { %3278 = vmatmul.mubr.msk.f32.vlgmr.msra.gmra.mxu1 %vm234_vm3, %v2031_v24 }
0x1a9f   :  { %2289 = vmatpush1.msra.mxu1 %v4407_v22  ;;  %2336 = vmatprep.mubr.f32.mxu1 %v3747_v1 }
0x1aa0   :  { %2290 = vmatprep.subr.mxu1 %v4409_v26 }
0x1aa1   :  { %2291 = vmatpush1.msra.mxu1 %v4412_v28  ;;  %v1579_v34 = vpop.permute.xlu0 %1578 }
0x1aa2   :  { %2292 = vmatprep.subr.mxu1 %v4415_v30  ;;  %1581 = vst.msk [vmem:[#allocation2] sm:$0x30] %vm564_vm6, %v1579_v34 }
0x1aa3   :  { %2293 = vmatpush1.msra.mxu1 %v4419_v36 }
0x1aa4   :  { %2294 = vmatprep.subr.mxu1 %v4422_v37 }
0x1aa5   :  { %2295 = vmatpush1.msra.mxu1 %v4426_v63 }
0x1aa6   :  { %2296 = vmatprep.subr.mxu1 %v4429_v32 }
0x1aa7   :  { %2297 = vmatpush1.msra.mxu1 %v4432_v54 }
0x1aa8   :  { %2298 = vmatprep.subr.mxu1 %v4435_v0 }
0x1aa9   :  { %2299 = vmatpush1.msra.mxu1 %v4438_v8  ;;  %v2143_v4 = vld [vmem:[#allocation2] sm:$0xff] }
0x1aaa   :  { %2300 = vmatprep.subr.mxu1 %v4441_v58  ;;  %3281 = vmatmul.mubr.msk.f32.vlgmr.msra.gmra.mxu0 %vm234_vm3, %v2143_v4 }
0x1aab   :  { %2301 = vmatpush1.msra.mxu1 %v4444_v3  ;;  %2389 = vmatpush1.msra.mxu0 %v4407_v22 }
0x1aac   :  { %2302 = vmatprep.subr.mxu1 %v4447_v7  ;;  %2390 = vmatprep.subr.mxu0 %v4409_v26 }
0x1aad   :  { %2303 = vmatpush1.msra.mxu1 %v4451_v9  ;;  %2391 = vmatpush1.msra.mxu0 %v4412_v28 }
0x1aae   :  { %2337 = vmatmul.mubr.f32.vlgmr.msra.gmra.mxu1 %v3747_v1  ;;  %2392 = vmatprep.subr.mxu0 %v4415_v30 }
0x1aaf   :  { %2393 = vmatpush1.msra.mxu0 %v4419_v36  ;;  %2265 = vmatprep.mubr.f32.mxu0 %v3747_v1 }
0x1ab0   :  { %2394 = vmatprep.subr.mxu0 %v4422_v37  ;;  %2498 = vmatprep.subr.mxu1 %v4392_v49 }
0x1ab1   :  { %2395 = vmatpush1.msra.mxu0 %v4426_v63  ;;  %2499 = vmatpush1.msra.mxu1 %v4407_v22 }
0x1ab2   :  { %2396 = vmatprep.subr.mxu0 %v4429_v32  ;;  %2500 = vmatprep.subr.mxu1 %v4409_v26 }
0x1ab3   :  { %2397 = vmatpush1.msra.mxu0 %v4432_v54  ;;  %2501 = vmatpush1.msra.mxu1 %v4412_v28 }
0x1ab4   :  { %2398 = vmatprep.subr.mxu0 %v4435_v0  ;;  %2502 = vmatprep.subr.mxu1 %v4415_v30 }
0x1ab5   :  { %2399 = vmatpush1.msra.mxu0 %v4438_v8  ;;  %2503 = vmatpush1.msra.mxu1 %v4419_v36 }
0x1ab6   :  { %2400 = vmatprep.subr.mxu0 %v4441_v58  ;;  %2504 = vmatprep.subr.mxu1 %v4422_v37 }
0x1ab7   :  { %2401 = vmatpush1.msra.mxu0 %v4444_v3  ;;  %2505 = vmatpush1.msra.mxu1 %v4426_v63 }
0x1ab8   :  { %2402 = vmatprep.subr.mxu0 %v4447_v7  ;;  %2506 = vmatprep.subr.mxu1 %v4429_v32 }
0x1ab9   :  { %2403 = vmatpush1.msra.mxu0 %v4451_v9  ;;  %2507 = vmatpush1.msra.mxu1 %v4432_v54 }
0x1aba   :  { %2508 = vmatprep.subr.mxu1 %v4435_v0  ;;  %2546 = vmatprep.mubr.f32.mxu1 %v3747_v1 }
0x1abb   :  { %2509 = vmatpush1.msra.mxu1 %v4438_v8  ;;  %2608 = vmatprep.subr.mxu0 %v4392_v49 }
0x1abc   :  { %2510 = vmatprep.subr.mxu1 %v4441_v58 }
0x1abd   :  { %2511 = vmatpush1.msra.mxu1 %v4444_v3 }
0x1abe   :  { %2512 = vmatprep.subr.mxu1 %v4447_v7 }
0x1abf   :  { %2513 = vmatpush1.msra.mxu1 %v4451_v9 }
0x1ac0   :  { %2718 = vmatprep.subr.mxu1 %v4392_v49 }
0x1b5e   :  { %v2100_v56 = vpop.f32.mrf.mxu1 }
0x1b5f   :  { %v2107_v44 = vrot.slane %v2100_v56, 2 }
0x1b60   :  { %v2102_v15 = vpop.f32.mrf.mxu1 }
0x1b61   :  { %v2111_v29 = vadd.f32 %v2107_v44, %v4348_v2  ;;  %v2108_v27 = vrot.slane %v2102_v15, 2 }
0x1b63   :  { %v3279_v12 = vmul.f32 -1.442695, %v2111_v29  ;;  %v2112_v2 = vadd.f32 %v2108_v27, %v4353_v41  ;;  %v2127_v41 = vrot.slane %v4395_v52, 6 }
0x1b65   :  { %3526 = vpow2.f32 %v3279_v12  ;;  %v3280_v52 = vmul.f32 -1.442695, %v2112_v2 }
0x1b6a   :  { %v2261_v33 = vpop.f32.mrf.mxu0 }
0x1b6b   :  { %v4500_v6 = vadd.f32 %v2261_v33, %v4497_v25 }
0x1b6c   :  { %v2263_v45 = vpop.f32.mrf.mxu0 }
0x1b6d   :  { %v4508_v51 = vadd.f32 %v2263_v45, %v4505_v23 }
0x1b6e   :  { %v2338_v38 = vpop.f32.mrf.mxu1 }
0x1b6f   :  { %v2343_v39 = vadd.f32 %v2338_v38, %v4500_v6 }
0x1b70   :  { %v2340_v35 = vpop.f32.mrf.mxu1 }
0x1b71   :  { %v3283_v40 = vmul.f32 -1.442695, %v2343_v39  ;;  %v2344_v47 = vadd.f32 %v2340_v35, %v4508_v51 }
0x1b72   :  { %v3527_v43 = vpop.eup %3526 }
0x1b73   :  { %v2116_v46 = vadd.f32 1.0, %v3527_v43  ;;  %3528 = vpow2.f32 %v3283_v40  ;;  %v3284_v50 = vmul.f32 -1.442695, %v2344_v47 }
0x1b74   :  { %3530 = vtanh.f32 %v2112_v2 }
0x1b75   :  { %3532 = vrcp.f32 %v2116_v46 }
0x1b76   :  { %3534 = vtanh.f32 %v2344_v47 }
0x1b80   :  { %v3529_v5 = vpop.eup %3528 }
0x1b81   :  { %v3531_v61 = vpop.eup %3530  ;;  %v2348_v57 = vadd.f32 1.0, %v3529_v5 }
0x1b82   :  { %v3533_v53 = vpop.eup %3532 }
0x1b83   :  { %3536 = vrcp.f32 %v2348_v57  ;;  %v2130_v42 = vmul.f32 %v3533_v53, %v3531_v61  ;;  %v2129_v59 = vmul.f32 %v3533_v53, %v2127_v41  ;;  %v3535_v31 = vpop.eup %3534 }
0x1b84   :  { %3538 = vpow2.f32 %v3280_v52 }
0x1b85   :  { %2132 = vrot.lane.b32.xlu0 %v2130_v42, %s3748_s3  ;;  %3540 = vpow2.f32 %v3284_v50 }
0x1b89   :  { %1911 = vrot.lane.b32.xlu0 %v4379_v10, %s3748_s3 }
0x1b90   :  { %v3537_v55 = vpop.eup %3536 }
0x1b91   :  { %v2359_v48 = vmul.f32 %v3537_v55, %v3535_v31  ;;  %v3539_v60 = vpop.eup %3538  ;;  %v2358_v20 = vmul.f32 0.0, %v3537_v55 }
0x1b92   :  { %v2123_v62 = vadd.f32 1.0, %v3539_v60  ;;  %v3541_v10 = vpop.eup %3540 }
0x1b93   :  { %2361 = vrot.lane.b32.xlu1 %v2359_v48, %s3748_s3  ;;  %v2355_v19 = vadd.f32 1.0, %v3541_v10 }
0x1b94   :  { %3542 = vrcp.f32 %v2123_v62 }
0x1b97   :  { %2025 = vrot.lane.b32.xlu1 %v4400_v18, %s3748_s3 }
0x1ba1   :  { %v3543_v21 = vpop.eup %3542 }
0x1bf7   :  { %v2133_v14 = vpop.permute.xlu0 %2132 }
0x1bf8   :  { %v2135_v16 = vadd.f32 %v2133_v14, %v2129_v59 }
0x1bfa   :  { %3544 = vtanh.f32 %v2135_v16 }
0x1bfb   :  { %v1912_v17 = vpop.permute.xlu0 %1911  ;;  %3546 = vrcp.f32 %v2355_v19 }
0x1bfc   :  { %1914 = vst.msk [vmem:[#allocation2 + $0x8] sm:$0xc] %vm449_vm4, %v1912_v17 }
0x1c05   :  { %v2362_v11 = vpop.permute.xlu1 %2361 }
0x1c06   :  { %v2364_v24 = vadd.f32 %v2362_v11, %v2358_v20 }
0x1c07   :  { %v3545_v18 = vpop.eup %3544 }
0x1c08   :  { %3548 = vtanh.f32 %v2364_v24  ;;  %v2137_v34 = vmul.f32 %v3545_v18, %v3543_v21  ;;  %v3547_v56 = vpop.eup %3546  ;;  %v2465_v61 = vrot.slane %v2364_v24, 6 }
0x1c09   :  { %v2026_v4 = vpop.permute.xlu1 %2025 }
0x1c0a   :  { %2028 = vst.msk [vmem:[#allocation2 + $0x8] sm:$0x30] %vm564_vm6, %v2026_v4  ;;  %2139 = vrot.lane.b32.xlu0 %v2137_v34, %s3748_s3 }
0x1c15   :  { %v3549_v44 = vpop.eup %3548 }
0x1c16   :  { %v2366_v29 = vmul.f32 %v3549_v44, %v3547_v56 }
0x1c18   :  { %2368 = vrot.lane.b32.xlu1 %v2366_v29, %s3748_s3 }
0x1c7c   :  { %v2140_v12 = vpop.permute.xlu0 %2139 }
0x1c7d   :  { %2142 = vst.msk [vmem:[#allocation2 + $0x8] sm:$0xc0] %vm679_vm5, %v2140_v12 }
0x1c84   :  { %v2144_v13 = vld [vmem:[#allocation2 + $0x8] sm:$0xff] }
0x1c85   :  { %3282 = vmatmul.mubr.msk.f32.gmra.mxu0 %vm234_vm3, %v2144_v13 }
0x1c86   :  { %2436 = vmatprep.mubr.f32.mxu0 %v3747_v1 }
0x1c8a   :  { %v2369_v15 = vpop.permute.xlu1 %2368 }
0x1c8b   :  { %3285 = vmatmul.mubr.msk.f32.vlgmr.msra.gmra.mxu0 %vm234_vm3, %v2369_v15 }
0x1c8c   :  { %2609 = vmatpush1.msra.mxu0 %v4407_v22  ;;  %2656 = vmatprep.mubr.f32.mxu0 %v3747_v1 }
0x1c8d   :  { %2610 = vmatprep.subr.mxu0 %v4409_v26 }
0x1c8e   :  { %2611 = vmatpush1.msra.mxu0 %v4412_v28 }
0x1c8f   :  { %2612 = vmatprep.subr.mxu0 %v4415_v30 }
0x1c90   :  { %2613 = vmatpush1.msra.mxu0 %v4419_v36 }
0x1c91   :  { %2614 = vmatprep.subr.mxu0 %v4422_v37 }
0x1c92   :  { %2615 = vmatpush1.msra.mxu0 %v4426_v63 }
0x1c93   :  { %2616 = vmatprep.subr.mxu0 %v4429_v32 }
0x1c94   :  { %2617 = vmatpush1.msra.mxu0 %v4432_v54 }
0x1c95   :  { %2618 = vmatprep.subr.mxu0 %v4435_v0 }
0x1c96   :  { %2619 = vmatpush1.msra.mxu0 %v4438_v8 }
0x1c97   :  { %2620 = vmatprep.subr.mxu0 %v4441_v58 }
0x1c98   :  { %2621 = vmatpush1.msra.mxu0 %v4444_v3 }
0x1c99   :  { %2622 = vmatprep.subr.mxu0 %v4447_v7 }
0x1c9a   :  { %2623 = vmatpush1.msra.mxu0 %v4451_v9 }
0x1c9b   :  { %2821 = vmatprep.subr.mxu0 %v4392_v49 }
0x1d45   :  { %v4543_v33 = vpop.f32.mrf.mxu0 }
0x1d47   :  { %v4545_v27 = vpop.f32.mrf.mxu0 }
0x1d4b   :  { %v2438_v38 = vpop.f32.mrf.mxu0 }
0x1d4c   :  { %v2445_v39 = vrot.slane %v2438_v38, 6 }
0x1d4d   :  { %v2440_v43 = vpop.f32.mrf.mxu0 }
0x1d4e   :  { %v2449_v2 = vadd.f32 %v2445_v39, %v4500_v6  ;;  %v2446_v46 = vrot.slane %v2440_v43, 6 }
0x1d50   :  { %v3286_v40 = vmul.f32 -1.442695, %v2449_v2  ;;  %v2450_v45 = vadd.f32 %v2446_v46, %v4508_v51 }
0x1d52   :  { %3550 = vpow2.f32 %v3286_v40  ;;  %v3287_v42 = vmul.f32 -1.442695, %v2450_v45 }
0x1d53   :  { %3552 = vtanh.f32 %v2450_v45 }
0x1d5f   :  { %v3551_v35 = vpop.eup %3550 }
0x1d60   :  { %v2454_v47 = vadd.f32 1.0, %v3551_v35  ;;  %v3553_v5 = vpop.eup %3552 }
0x1d62   :  { %3554 = vrcp.f32 %v2454_v47 }
0x1d63   :  { %3556 = vpow2.f32 %v3287_v42 }
0x1d6f   :  { %v3555_v41 = vpop.eup %3554 }
0x1d70   :  { %v2468_v57 = vmul.f32 %v3555_v41, %v3553_v5  ;;  %v2467_v53 = vmul.f32 %v3555_v41, %v2465_v61  ;;  %v3557_v59 = vpop.eup %3556 }
0x1d71   :  { %v2461_v31 = vadd.f32 1.0, %v3557_v59 }
0x1d72   :  { %2470 = vrot.lane.b32.xlu0 %v2468_v57, %s3748_s3 }
0x1d73   :  { %3558 = vrcp.f32 %v2461_v31 }
0x1d80   :  { %v3559_v52 = vpop.eup %3558 }
0x1de4   :  { %v2471_v55 = vpop.permute.xlu0 %2470 }
0x1de5   :  { %v2473_v48 = vadd.f32 %v2471_v55, %v2467_v53 }
0x1de7   :  { %3560 = vtanh.f32 %v2473_v48  ;;  %v2575_v4 = vrot.slane %v2473_v48, 6 }
0x1df4   :  { %v3561_v50 = vpop.eup %3560 }
0x1df5   :  { %v2475_v60 = vmul.f32 %v3561_v50, %v3559_v52 }
0x1df7   :  { %v2477_v62 = vrot.slane %v2475_v60, 2 }
0x1df9   :  { %2478 = vrot.lane.b32.xlu1 %v2477_v62, %s3748_s3 }
0x1e6b   :  { %v2479_v14 = vpop.permute.xlu1 %2478 }
0x1e6c   :  { %3288 = vmatmul.mubr.msk.f32.vlgmr.msra.gmra.mxu1 %vm234_vm3, %v2479_v14 }
0x1e6d   :  { %2719 = vmatpush1.msra.mxu1 %v4407_v22  ;;  %2766 = vmatprep.mubr.f32.mxu1 %v3747_v1 }
0x1e6e   :  { %2720 = vmatprep.subr.mxu1 %v4409_v26 }
0x1e6f   :  { %2721 = vmatpush1.msra.mxu1 %v4412_v28 }
0x1e70   :  { %2722 = vmatprep.subr.mxu1 %v4415_v30 }
0x1e71   :  { %2723 = vmatpush1.msra.mxu1 %v4419_v36 }
0x1e72   :  { %2724 = vmatprep.subr.mxu1 %v4422_v37 }
0x1e73   :  { %2725 = vmatpush1.msra.mxu1 %v4426_v63 }
0x1e74   :  { %2726 = vmatprep.subr.mxu1 %v4429_v32 }
0x1e75   :  { %2727 = vmatpush1.msra.mxu1 %v4432_v54 }
0x1e76   :  { %2728 = vmatprep.subr.mxu1 %v4435_v0 }
0x1e77   :  { %2729 = vmatpush1.msra.mxu1 %v4438_v8 }
0x1e78   :  { %2730 = vmatprep.subr.mxu1 %v4441_v58 }
0x1e79   :  { %2731 = vmatpush1.msra.mxu1 %v4444_v3 }
0x1e7a   :  { %2732 = vmatprep.subr.mxu1 %v4447_v7 }
0x1e7b   :  { %2733 = vmatpush1.msra.mxu1 %v4451_v9 }
0x1e7c   :  { %2931 = vmatprep.subr.mxu1 %v4392_v49 }
0x1f2c   :  { %v2548_v16 = vpop.f32.mrf.mxu1 }
0x1f2d   :  { %v2555_v17 = vrot.slane %v2548_v16, 4 }
0x1f2e   :  { %v2550_v20 = vpop.f32.mrf.mxu1 }
0x1f2f   :  { %v2559_v10 = vadd.f32 %v2555_v17, %v4500_v6  ;;  %v2556_v11 = vrot.slane %v2550_v20, 4  ;;  %v4615_v20 = vadd.f32 %v4543_v33, %v4497_v25 }
0x1f31   :  { %v3289_v19 = vmul.f32 -1.442695, %v2559_v10  ;;  %v2560_v21 = vadd.f32 %v2556_v11, %v4508_v51 }
0x1f33   :  { %3562 = vpow2.f32 %v3289_v19  ;;  %v3290_v12 = vmul.f32 -1.442695, %v2560_v21 }
0x1f34   :  { %3564 = vtanh.f32 %v2560_v21 }
0x1f40   :  { %v3563_v24 = vpop.eup %3562 }
0x1f41   :  { %v2564_v18 = vadd.f32 1.0, %v3563_v24  ;;  %v3565_v34 = vpop.eup %3564 }
0x1f43   :  { %3566 = vrcp.f32 %v2564_v18 }
0x1f44   :  { %3568 = vpow2.f32 %v3290_v12 }
0x1f50   :  { %v3567_v56 = vpop.eup %3566 }
0x1f51   :  { %v2578_v44 = vmul.f32 %v3567_v56, %v3565_v34  ;;  %v2577_v29 = vmul.f32 %v3567_v56, %v2575_v4  ;;  %v3569_v13 = vpop.eup %3568  ;;  %v4620_v34 = vadd.f32 %v4545_v27, %v4505_v23 }
0x1f52   :  { %v2571_v15 = vadd.f32 1.0, %v3569_v13 }
0x1f53   :  { %2580 = vrot.lane.b32.xlu0 %v2578_v44, %s3748_s3 }
0x1f54   :  { %3570 = vrcp.f32 %v2571_v15 }
0x1f61   :  { %v3571_v2 = vpop.eup %3570 }
0x1fc5   :  { %v2581_v38 = vpop.permute.xlu0 %2580 }
0x1fc6   :  { %v2583_v39 = vadd.f32 %v2581_v38, %v2577_v29 }
0x1fc8   :  { %3572 = vtanh.f32 %v2583_v39  ;;  %v2685_v55 = vrot.slane %v2583_v39, 6 }
0x1fd5   :  { %v3573_v40 = vpop.eup %3572 }
0x1fd6   :  { %v2585_v43 = vmul.f32 %v3573_v40, %v3571_v2 }
0x1fd8   :  { %v2587_v46 = vrot.slane %v2585_v43, 4 }
0x1fda   :  { %2588 = vrot.lane.b32.xlu1 %v2587_v46, %s3748_s3 }
0x204c   :  { %v2589_v45 = vpop.permute.xlu1 %2588 }
0x204d   :  { %3291 = vmatmul.mubr.msk.f32.vlgmr.msra.gmra.mxu0 %vm234_vm3, %v2589_v45 }
0x204e   :  { %2822 = vmatpush1.msra.mxu0 %v4407_v22  ;;  %2869 = vmatprep.mubr.f32.mxu0 %v3747_v1 }
0x204f   :  { %2823 = vmatprep.subr.mxu0 %v4409_v26 }
0x2050   :  { %2824 = vmatpush1.msra.mxu0 %v4412_v28 }
0x2051   :  { %2825 = vmatprep.subr.mxu0 %v4415_v30 }
0x2052   :  { %2826 = vmatpush1.msra.mxu0 %v4419_v36 }
0x2053   :  { %2827 = vmatprep.subr.mxu0 %v4422_v37 }
0x2054   :  { %2828 = vmatpush1.msra.mxu0 %v4426_v63 }
0x2055   :  { %2829 = vmatprep.subr.mxu0 %v4429_v32 }
0x2056   :  { %2830 = vmatpush1.msra.mxu0 %v4432_v54 }
0x2057   :  { %2831 = vmatprep.subr.mxu0 %v4435_v0 }
0x2058   :  { %2832 = vmatpush1.msra.mxu0 %v4438_v8 }
0x2059   :  { %2833 = vmatprep.subr.mxu0 %v4441_v58 }
0x205a   :  { %2834 = vmatpush1.msra.mxu0 %v4444_v3 }
0x205b   :  { %2835 = vmatprep.subr.mxu0 %v4447_v7 }
0x205c   :  { %2836 = vmatpush1.msra.mxu0 %v4451_v9 }
0x205d   :  { %3041 = vmatprep.subr.mxu0 %v4392_v49 }
0x210d   :  { %v2658_v35 = vpop.f32.mrf.mxu0 }
0x210e   :  { %v2665_v47 = vrot.slane %v2658_v35, 2 }
0x210f   :  { %v2660_v41 = vpop.f32.mrf.mxu0 }
0x2110   :  { %v2669_v5 = vadd.f32 %v2665_v47, %v4500_v6  ;;  %v2666_v57 = vrot.slane %v2660_v41, 2 }
0x2112   :  { %v3292_v61 = vmul.f32 -1.442695, %v2669_v5  ;;  %v2670_v53 = vadd.f32 %v2666_v57, %v4508_v51 }
0x2114   :  { %3574 = vpow2.f32 %v3292_v61  ;;  %v3293_v49 = vmul.f32 -1.442695, %v2670_v53 }
0x2115   :  { %3576 = vtanh.f32 %v2670_v53 }
0x2121   :  { %v3575_v42 = vpop.eup %3574 }
0x2122   :  { %v2674_v59 = vadd.f32 1.0, %v3575_v42  ;;  %v3577_v31 = vpop.eup %3576 }
0x2124   :  { %3578 = vrcp.f32 %v2674_v59 }
0x2125   :  { %3580 = vpow2.f32 %v3293_v49 }
0x2131   :  { %v3579_v48 = vpop.eup %3578 }
0x2132   :  { %v2688_v52 = vmul.f32 %v3579_v48, %v3577_v31  ;;  %v2687_v50 = vmul.f32 %v3579_v48, %v2685_v55  ;;  %v3581_v6 = vpop.eup %3580 }
0x2133   :  { %v2681_v60 = vadd.f32 1.0, %v3581_v6 }
0x2134   :  { %2690 = vrot.lane.b32.xlu0 %v2688_v52, %s3748_s3 }
0x2135   :  { %3582 = vrcp.f32 %v2681_v60 }
0x2142   :  { %v3583_v51 = vpop.eup %3582 }
0x21a6   :  { %v2691_v62 = vpop.permute.xlu0 %2690 }
0x21a7   :  { %v2693_v14 = vadd.f32 %v2691_v62, %v2687_v50 }
0x21a9   :  { %3584 = vtanh.f32 %v2693_v14  ;;  %v2789_v12 = vrot.slane %v2693_v14, 6 }
0x21b6   :  { %v3585_v16 = vpop.eup %3584 }
0x21b7   :  { %v2695_v17 = vmul.f32 %v3585_v16, %v3583_v51 }
0x21b9   :  { %v2697_v10 = vrot.slane %v2695_v17, 6 }
0x21bb   :  { %2698 = vrot.lane.b32.xlu1 %v2697_v10, %s3748_s3 }
0x222d   :  { %v2699_v19 = vpop.permute.xlu1 %2698 }
0x222e   :  { %3294 = vmatmul.mubr.msk.f32.vlgmr.msra.gmra.mxu1 %vm234_vm3, %v2699_v19 }
0x222f   :  { %2932 = vmatpush1.msra.mxu1 %v4407_v22  ;;  %2979 = vmatprep.mubr.f32.mxu1 %v3747_v1 }
0x2230   :  { %2933 = vmatprep.subr.mxu1 %v4409_v26 }
0x2231   :  { %2934 = vmatpush1.msra.mxu1 %v4412_v28 }
0x2232   :  { %2935 = vmatprep.subr.mxu1 %v4415_v30 }
0x2233   :  { %2936 = vmatpush1.msra.mxu1 %v4419_v36 }
0x2234   :  { %2937 = vmatprep.subr.mxu1 %v4422_v37 }
0x2235   :  { %2938 = vmatpush1.msra.mxu1 %v4426_v63 }
0x2236   :  { %2939 = vmatprep.subr.mxu1 %v4429_v32 }
0x2237   :  { %2940 = vmatpush1.msra.mxu1 %v4432_v54 }
0x2238   :  { %2941 = vmatprep.subr.mxu1 %v4435_v0 }
0x2239   :  { %2942 = vmatpush1.msra.mxu1 %v4438_v8 }
0x223a   :  { %2943 = vmatprep.subr.mxu1 %v4441_v58 }
0x223b   :  { %2944 = vmatpush1.msra.mxu1 %v4444_v3 }
0x223c   :  { %2945 = vmatprep.subr.mxu1 %v4447_v7 }
0x223d   :  { %2946 = vmatpush1.msra.mxu1 %v4451_v9 }
0x223e   :  { %3317 = vmatprep.subr.mxu1 %v3747_v1 }
0x22ee   :  { %v2768_v11 = vpop.f32.mrf.mxu1 }
0x22ef   :  { %v2773_v21 = vadd.f32 %v2768_v11, %v4615_v20 }
0x22f0   :  { %v2770_v18 = vpop.f32.mrf.mxu1 }
0x22f1   :  { %v3295_v24 = vmul.f32 -1.442695, %v2773_v21  ;;  %v2774_v4 = vadd.f32 %v2770_v18, %v4620_v34 }
0x22f3   :  { %3586 = vpow2.f32 %v3295_v24  ;;  %v3296_v15 = vmul.f32 -1.442695, %v2774_v4 }
0x22f4   :  { %3588 = vtanh.f32 %v2774_v4 }
0x2300   :  { %v3587_v56 = vpop.eup %3586 }
0x2301   :  { %v2778_v44 = vadd.f32 1.0, %v3587_v56  ;;  %v3589_v29 = vpop.eup %3588 }
0x2303   :  { %3590 = vrcp.f32 %v2778_v44 }
0x2304   :  { %3592 = vpow2.f32 %v3296_v15 }
0x2310   :  { %v3591_v25 = vpop.eup %3590 }
0x2311   :  { %v2792_v33 = vmul.f32 %v3591_v25, %v3589_v29  ;;  %v2791_v13 = vmul.f32 %v3591_v25, %v2789_v12  ;;  %v3593_v38 = vpop.eup %3592 }
0x2312   :  { %v2785_v39 = vadd.f32 1.0, %v3593_v38 }
0x2313   :  { %2794 = vrot.lane.b32.xlu0 %v2792_v33, %s3748_s3 }
0x2314   :  { %3594 = vrcp.f32 %v2785_v39 }
0x2321   :  { %v3595_v27 = vpop.eup %3594 }
0x2385   :  { %v2795_v2 = vpop.permute.xlu0 %2794 }
0x2386   :  { %v2797_v23 = vadd.f32 %v2795_v2, %v2791_v13 }
0x2388   :  { %3596 = vtanh.f32 %v2797_v23 }
0x2395   :  { %v3597_v40 = vpop.eup %3596 }
0x2396   :  { %v2799_v43 = vmul.f32 %v3597_v40, %v3595_v27 }
0x2398   :  { %2801 = vrot.lane.b32.xlu1 %v2799_v43, %s3748_s3 }
0x240a   :  { %v2802_v46 = vpop.permute.xlu1 %2801 }
0x240b   :  { %3297 = vmatmul.mubr.msk.f32.vlgmr.msra.gmra.mxu0 %vm234_vm3, %v2802_v46 }
0x240c   :  { %3042 = vmatpush1.msra.mxu0 %v4407_v22  ;;  %3089 = vmatprep.mubr.f32.mxu0 %v3747_v1 }
0x240d   :  { %3043 = vmatprep.subr.mxu0 %v4409_v26 }
0x240e   :  { %3044 = vmatpush1.msra.mxu0 %v4412_v28 }
0x240f   :  { %3045 = vmatprep.subr.mxu0 %v4415_v30 }
0x2410   :  { %3046 = vmatpush1.msra.mxu0 %v4419_v36 }
0x2411   :  { %3047 = vmatprep.subr.mxu0 %v4422_v37 }
0x2412   :  { %3048 = vmatpush1.msra.mxu0 %v4426_v63 }
0x2413   :  { %3049 = vmatprep.subr.mxu0 %v4429_v32 }
0x2414   :  { %3050 = vmatpush1.msra.mxu0 %v4432_v54 }
0x2415   :  { %3051 = vmatprep.subr.mxu0 %v4435_v0 }
0x2416   :  { %3052 = vmatpush1.msra.mxu0 %v4438_v8  ;;  %v2898_v8 = vrot.slane %v2797_v23, 6 }
0x2417   :  { %3053 = vmatprep.subr.mxu0 %v4441_v58 }
0x2418   :  { %3054 = vmatpush1.msra.mxu0 %v4444_v3 }
0x2419   :  { %3055 = vmatprep.subr.mxu0 %v4447_v7 }
0x241a   :  { %3056 = vmatpush1.msra.mxu0 %v4451_v9 }
0x24cb   :  { %v2871_v22 = vpop.f32.mrf.mxu0 }
0x24cc   :  { %v2878_v26 = vrot.slane %v2871_v22, 6 }
0x24cd   :  { %v2873_v36 = vpop.f32.mrf.mxu0 }
0x24ce   :  { %v2882_v28 = vadd.f32 %v2878_v26, %v4615_v20  ;;  %v2879_v37 = vrot.slane %v2873_v36, 6  ;;  %v3135_v26 = vld [vmem:[%s4702_s10 + $0x30] sm:$0xff] }
0x24cf   :  { %v3131_v36 = vld [vmem:[%s4702_s10 + $0x10] sm:$0xff] }
0x24d0   :  { %v3298_v30 = vmul.f32 -1.442695, %v2882_v28  ;;  %v2883_v63 = vadd.f32 %v2879_v37, %v4620_v34  ;;  %v3133_v28 = vld [vmem:[%s4702_s10 + $0x20] sm:$0xff]  ;;  %v3130_v37 = vld [vmem:[%s4702_s10 + $0x8] sm:$0xff] }
0x24d2   :  { %3598 = vpow2.f32 %v3298_v30  ;;  %v3299_v9 = vmul.f32 -1.442695, %v2883_v63  ;;  %v3132_v30 = vld [vmem:[%s4702_s10 + $0x18] sm:$0xff] }
0x24d3   :  { %3600 = vtanh.f32 %v2883_v63  ;;  %v3129_v63 = vld [vmem:[%s4702_s10] sm:$0xff] }
0x24df   :  { %v3599_v32 = vpop.eup %3598 }
0x24e0   :  { %v2887_v54 = vadd.f32 1.0, %v3599_v32  ;;  %v3601_v0 = vpop.eup %3600 }
0x24e2   :  { %3602 = vrcp.f32 %v2887_v54 }
0x24e3   :  { %3604 = vpow2.f32 %v3299_v9 }
0x24ef   :  { %v3603_v58 = vpop.eup %3602 }
0x24f0   :  { %v2901_v3 = vmul.f32 %v3603_v58, %v3601_v0  ;;  %v2900_v7 = vmul.f32 %v3603_v58, %v2898_v8  ;;  %v3605_v45 = vpop.eup %3604 }
0x24f1   :  { %v2894_v35 = vadd.f32 1.0, %v3605_v45 }
0x24f2   :  { %2903 = vrot.lane.b32.xlu0 %v2901_v3, %s3748_s3 }
0x24f3   :  { %3606 = vrcp.f32 %v2894_v35 }
0x2500   :  { %v3607_v61 = vpop.eup %3606 }
0x2564   :  { %v2904_v47 = vpop.permute.xlu0 %2903 }
0x2565   :  { %v2906_v5 = vadd.f32 %v2904_v47, %v2900_v7  ;;  %v3306_v47 = vld [vmem:[#allocation3] ss:$0 sm:$0xff] }
0x2567   :  { %3608 = vtanh.f32 %v2906_v5  ;;  %v3008_v14 = vrot.slane %v2906_v5, 6 }
0x2574   :  { %v3609_v41 = vpop.eup %3608 }
0x2575   :  { %v2908_v57 = vmul.f32 %v3609_v41, %v3607_v61 }
0x2577   :  { %v2910_v53 = vrot.slane %v2908_v57, 2 }
0x2579   :  { %2911 = vrot.lane.b32.xlu1 %v2910_v53, %s3748_s3 }
0x25eb   :  { %v2912_v42 = vpop.permute.xlu1 %2911 }
0x25ec   :  { %3300 = vmatmul.mubr.msk.f32.vlgmr.msra.gmra.mxu1 %vm234_vm3, %v2912_v42 }
0x25ed   :  { %3333 = vmatprep.mubr.msk.f32.mxu1 %vm3749_vm7, %v3747_v1 }
0x26ac   :  { %v2981_v59 = vpop.f32.mrf.mxu1 }
0x26ad   :  { %v2988_v31 = vrot.slane %v2981_v59, 4 }
0x26ae   :  { %v2983_v52 = vpop.f32.mrf.mxu1 }
0x26af   :  { %v2992_v55 = vadd.f32 %v2988_v31, %v4615_v20  ;;  %v2989_v50 = vrot.slane %v2983_v52, 4 }
0x26b1   :  { %v3301_v48 = vmul.f32 -1.442695, %v2992_v55  ;;  %v2993_v49 = vadd.f32 %v2989_v50, %v4620_v34 }
0x26b3   :  { %3610 = vpow2.f32 %v3301_v48  ;;  %v3302_v10 = vmul.f32 -1.442695, %v2993_v49 }
0x26b4   :  { %3612 = vtanh.f32 %v2993_v49 }
0x26c0   :  { %v3611_v6 = vpop.eup %3610 }
0x26c1   :  { %v2997_v60 = vadd.f32 1.0, %v3611_v6  ;;  %v3613_v62 = vpop.eup %3612 }
0x26c3   :  { %3614 = vrcp.f32 %v2997_v60 }
0x26c4   :  { %3616 = vpow2.f32 %v3302_v10 }
0x26d0   :  { %v3615_v51 = vpop.eup %3614 }
0x26d1   :  { %v3011_v16 = vmul.f32 %v3615_v51, %v3613_v62  ;;  %v3010_v17 = vmul.f32 %v3615_v51, %v3008_v14  ;;  %v3617_v19 = vpop.eup %3616 }
0x26d2   :  { %v3004_v11 = vadd.f32 1.0, %v3617_v19 }
0x26d3   :  { %3013 = vrot.lane.b32.xlu0 %v3011_v16, %s3748_s3 }
0x26d4   :  { %3618 = vrcp.f32 %v3004_v11 }
0x26e1   :  { %v3619_v18 = vpop.eup %3618 }
0x2745   :  { %v3014_v21 = vpop.permute.xlu0 %3013 }
0x2746   :  { %v3016_v24 = vadd.f32 %v3014_v21, %v3010_v17 }
0x2748   :  { %3620 = vtanh.f32 %v3016_v24  ;;  %v3118_v40 = vrot.slane %v3016_v24, 6 }
0x2755   :  { %v3621_v4 = vpop.eup %3620 }
0x2756   :  { %v3018_v56 = vmul.f32 %v3621_v4, %v3619_v18 }
0x2758   :  { %v3020_v44 = vrot.slane %v3018_v56, 4 }
0x275a   :  { %3021 = vrot.lane.b32.xlu1 %v3020_v44, %s3748_s3 }
0x27cc   :  { %v3022_v29 = vpop.permute.xlu1 %3021 }
0x27cd   :  { %3303 = vmatmul.mubr.msk.f32.vlgmr.msra.gmra.mxu0 %vm234_vm3, %v3022_v29 }
0x288d   :  { %v3091_v12 = vpop.f32.mrf.mxu0 }
0x288e   :  { %v3098_v25 = vrot.slane %v3091_v12, 2 }
0x288f   :  { %v3093_v15 = vpop.f32.mrf.mxu0 }
0x2890   :  { %v3102_v33 = vadd.f32 %v3098_v25, %v4615_v20  ;;  %v3099_v38 = vrot.slane %v3093_v15, 2  ;;  %v3136_v20 = vld [vmem:[%s4702_s10 + $0x38] sm:$0xff] }
0x2891   :  { %3318 = vmatpush3.msra.mxu1 %v3136_v20 }
0x2892   :  { %v3304_v13 = vmul.f32 -1.442695, %v3102_v33  ;;  %v3103_v39 = vadd.f32 %v3099_v38, %v4620_v34  ;;  %3319 = vmatprep.subr.mxu1 %v3747_v1  ;;  %v3134_v34 = vld [vmem:[%s4702_s10 + $0x28] sm:$0xff] }
0x2893   :  { %3320 = vmatpush3.msra.mxu1 %v3135_v26 }
0x2894   :  { %3622 = vpow2.f32 %v3304_v13  ;;  %3321 = vmatprep.subr.mxu1 %v3747_v1  ;;  %v3305_v32 = vmul.f32 -1.442695, %v3103_v39 }
0x2895   :  { %3624 = vtanh.f32 %v3103_v39  ;;  %3322 = vmatpush3.msra.mxu1 %v3134_v34 }
0x2896   :  { %3323 = vmatprep.subr.mxu1 %v3747_v1 }
0x2897   :  { %3324 = vmatpush3.msra.mxu1 %v3133_v28 }
0x2898   :  { %3325 = vmatprep.subr.mxu1 %v3747_v1 }
0x2899   :  { %3326 = vmatpush3.msra.mxu1 %v3132_v30 }
0x289a   :  { %3327 = vmatprep.subr.mxu1 %v3747_v1 }
0x289b   :  { %3328 = vmatpush3.msra.mxu1 %v3131_v36 }
0x289c   :  { %3329 = vmatprep.subr.mxu1 %v3747_v1 }
0x289d   :  { %3330 = vmatpush3.msra.mxu1 %v3130_v37 }
0x289e   :  { %3331 = vmatprep.subr.mxu1 %v3747_v1 }
0x289f   :  { %3332 = vmatpush3.msra.mxu1 %v3129_v63 }
0x28a1   :  { %v3623_v2 = vpop.eup %3622 }
0x28a2   :  { %v3107_v23 = vadd.f32 1.0, %v3623_v2  ;;  %v3625_v27 = vpop.eup %3624 }
0x28a4   :  { %3626 = vrcp.f32 %v3107_v23 }
0x28a5   :  { %3628 = vpow2.f32 %v3305_v32 }
0x28b1   :  { %v3627_v43 = vpop.eup %3626 }
0x28b2   :  { %v3121_v46 = vmul.f32 %v3627_v43, %v3625_v27  ;;  %v3120_v22 = vmul.f32 %v3627_v43, %v3118_v40  ;;  %v3629_v54 = vpop.eup %3628 }
0x28b3   :  { %v3114_v0 = vadd.f32 1.0, %v3629_v54 }
0x28b4   :  { %3123 = vrot.lane.b32.xlu0 %v3121_v46, %s3748_s3 }
0x28b5   :  { %3630 = vrcp.f32 %v3114_v0 }
0x28c2   :  { %v3631_v3 = vpop.eup %3630 }
0x2926   :  { %v3124_v8 = vpop.permute.xlu0 %3123 }
0x2927   :  { %v3126_v58 = vadd.f32 %v3124_v8, %v3120_v22 }
0x2929   :  { %3632 = vtanh.f32 %v3126_v58 }
0x2936   :  { %v3633_v7 = vpop.eup %3632 }
0x2937   :  { %v3128_v9 = vmul.f32 %v3633_v7, %v3631_v3 }
0x2939   :  { %v3145_v45 = vrot.slane %v3128_v9, 6 }
0x293b   :  { %3146 = vrot.lane.b32.xlu1 %v3145_v45, %s3748_s3 }
0x29ad   :  { %v3147_v35 = vpop.permute.xlu1 %3146 }
0x29ae   :  { %3334 = vmatmul.mubr.msk.f32.vlgmr.msra.gmra.mxu1 %vm234_vm3, %v3147_v35 }
0x2a6e   :  { %v3216_v1 = vpop.f32.mrf.mxu1 }
0x2a6f   :  { %v3217_v5 = vadd.f32 %v3306_v47, %v3216_v1 }
0x2a70   :  { %v3335_v61 = vpop.f32.mrf.mxu1 }
0x2a71   :  { %3221 = vst.msk [vmem:[%s4704_s12] sm:$0x3] %vm3220_vm8, %v3217_v5 }
0x2a72   :  { %3226 = vsyncpa [#allocation5], 1 }
0x2a73   :  { %3227 = vsyncpa [#allocation7], 1 }
0x2a74   :  { %3228 = vsyncpa [#allocation10], 1 }

</bundles_post_ra>
